<compile_context>
chip_gen: v7x
topology: tpu7x:2x2x1
jax: 0.10.0
libtpu: 0.0.40
codegen_flags: <defaults>
</compile_context>

<pallas_src>
import jax
import jax.numpy as jnp
from jax.experimental import pallas as pl
from jax.experimental.pallas import tpu as pltpu


def _round_up(x, m):
    return ((x + m - 1) // m) * m


def _decoder_kernel(x_ref, w1_ref, b1_ref, w2_ref, b2_ref, o_ref, h_ref):
    # x_ref : (TILE_N, node_dim)   VMEM, bf16
    # w1_ref: (node_dim, node_dim) VMEM, bf16 (resident: constant index_map)
    # b1_ref: (1, node_dim)        VMEM, f32
    # w2_ref: (node_dim, out_dim)  VMEM, f32 (resident)
    # b2_ref: (1, out_dim)         VMEM, f32
    # o_ref : (TILE_N, out_dim)
    # h_ref : (TILE_N, node_dim)   VMEM scratch, f32

    # Layer 1: bf16 x bf16 on the MXU with f32 accumulation; bias + ReLU on the VPU.
    h = jnp.dot(x_ref[...], w1_ref[...], preferred_element_type=jnp.float32)
    h = jnp.maximum(h + b1_ref[...], 0.0)

    # Stage the f32 activation in VMEM scratch (bounds vreg live range at large tiles).
    h_ref[...] = h

    # Layer 2 (tiny: K=node_dim, N=out_dim), f32 for parity with the f32 reference.
    y = jnp.dot(h_ref[...], w2_ref[...], preferred_element_type=jnp.float32)
    o_ref[...] = (y + b2_ref[...]).astype(o_ref.dtype)


def decoder_forward(h_node, w1, b1, w2, b2, *, tile_n=2048,
                    compute_dtype=jnp.bfloat16):
    """y = relu(h_node @ w1 + b1) @ w2 + b2  via a single fused Pallas kernel."""
    n, node_dim = h_node.shape
    out_dim = w2.shape[1]
    out_dtype = h_node.dtype

    # Node tile: multiple of 256, shrunk for small graphs so we do not pad a tiny
    # input all the way up to the default tile.
    tile_n = max(256, _round_up(min(tile_n, _round_up(n, 256)), 256))
    n_pad = _round_up(n, tile_n)
    if n_pad != n:
        h_node = jnp.pad(h_node, ((0, n_pad - n), (0, 0)))

    # bf16 on the dominant HBM read (x) and the layer-1 weights (native MXU dtype).
    x = h_node.astype(compute_dtype)
    w1c = w1.astype(compute_dtype)
    b1c = b1.astype(jnp.float32)
    w2c = w2.astype(jnp.float32)
    b2c = b2.astype(jnp.float32)

    grid = (n_pad // tile_n,)

    bytes_in = (x.size * x.dtype.itemsize
                + w1c.size * w1c.dtype.itemsize
                + b1c.size * 4 + w2c.size * 4 + b2c.size * 4)
    bytes_out = n_pad * out_dim * jnp.dtype(out_dtype).itemsize
    cost = pl.CostEstimate(
        flops=2 * n_pad * (node_dim * node_dim + node_dim * out_dim),
        transcendentals=0,
        bytes_accessed=bytes_in + bytes_out,
    )

    y = pl.pallas_call(
        _decoder_kernel,
        out_shape=jax.ShapeDtypeStruct((n_pad, out_dim), out_dtype),
        grid_spec=pltpu.PrefetchScalarGridSpec(
            num_scalar_prefetch=0,
            grid=grid,
            in_specs=[
                pl.BlockSpec((tile_n, node_dim), lambda i: (i, 0)),    # x tile
                pl.BlockSpec((node_dim, node_dim), lambda i: (0, 0)),  # W1 (whole, resident)
                pl.BlockSpec((1, node_dim), lambda i: (0, 0)),         # b1
                pl.BlockSpec((node_dim, out_dim), lambda i: (0, 0)),   # W2 (whole, resident)
                pl.BlockSpec((1, out_dim), lambda i: (0, 0)),          # b2
            ],
            out_specs=pl.BlockSpec((tile_n, out_dim), lambda i: (i, 0)),
            scratch_shapes=[pltpu.VMEM((tile_n, node_dim), jnp.float32)],
        ),
        compiler_params=pltpu.CompilerParams(
            dimension_semantics=("parallel",)),
        cost_estimate=cost,
    )(x, w1c, b1c, w2c, b2c)

    return y[:n]


if __name__ == "__main__":
    # MeshGraphNets defaults: hidden_size=64 (decoder node_dim), out_dim=2.
    # N is deliberately NOT a multiple of the tile to exercise the padding path.
    N, NODE_DIM, OUT_DIM = 2500, 64, 2

    key = jax.random.PRNGKey(0)
    k_x, k_w1, k_b1, k_w2, k_b2 = jax.random.split(key, 5)

    h_node = jax.random.normal(k_x, (N, NODE_DIM), dtype=jnp.float32)
    # nn.Linear weights stored transposed as [in, out].
    w1 = jax.random.normal(k_w1, (NODE_DIM, NODE_DIM), dtype=jnp.float32) * 0.1
    b1 = jax.random.normal(k_b1, (1, NODE_DIM), dtype=jnp.float32) * 0.1
    w2 = jax.random.normal(k_w2, (NODE_DIM, OUT_DIM), dtype=jnp.float32) * 0.1
    b2 = jax.random.normal(k_b2, (1, OUT_DIM), dtype=jnp.float32) * 0.1

    y = decoder_forward(h_node, w1, b1, w2, b2)
    y = jax.block_until_ready(y)
    assert y.shape == (N, OUT_DIM)

    # Reference with matched compute dtypes (bf16 layer-1 operands, f32 accumulation).
    h_ref = jnp.maximum(
        jnp.dot(h_node.astype(jnp.bfloat16), w1.astype(jnp.bfloat16),
                preferred_element_type=jnp.float32) + b1, 0.0)
    ref = jnp.dot(h_ref, w2, preferred_element_type=jnp.float32) + b2
    assert jnp.allclose(y, ref, atol=1e-4, rtol=1e-4), "mismatch vs matched-dtype reference"

    # Loose check vs the exact f32 PyTorch-equivalent math (only bf16 layer-1 rounding differs).
    ref_f32 = jnp.maximum(h_node @ w1 + b1, 0.0) @ w2 + b2
    assert jnp.allclose(y, ref_f32, atol=5e-2, rtol=5e-2), "mismatch vs f32 reference"

    print("KERNEL_OK")
</pallas_src>

<mosaic_0001>
module attributes {stable_mosaic.version = 11 : i64} {
  func.func @_decoder_kernel(%arg0: i32, %arg1: memref<2048x64xbf16, #tpu.memory_space<vmem>>, %arg2: memref<64x64xbf16, #tpu.memory_space<vmem>>, %arg3: memref<1x64xf32, #tpu.memory_space<vmem>>, %arg4: memref<64x2xf32, #tpu.memory_space<vmem>>, %arg5: memref<1x2xf32, #tpu.memory_space<vmem>>, %arg6: memref<2048x2xf32, #tpu.memory_space<vmem>>, %arg7: memref<2048x64xf32, #tpu.memory_space<vmem>>) attributes {dimension_semantics = [#tpu.dimension_semantics<parallel>], iteration_bounds = array<i64: 2>, scalar_prefetch = 0 : i64, scratch_operands = 1 : i64, tpu.core_type = #tpu.core_type<tc>, window_params = [{transform_indices = @transform_0, window_bounds = array<i64: 2048, 64>}, {pipeline_mode = #tpu.pipeline_mode<synchronous>, transform_indices = @transform_1, window_bounds = array<i64: 64, 64>}, {pipeline_mode = #tpu.pipeline_mode<synchronous>, transform_indices = @transform_2, window_bounds = array<i64: 1, 64>}, {pipeline_mode = #tpu.pipeline_mode<synchronous>, transform_indices = @transform_3, window_bounds = array<i64: 64, 2>}, {pipeline_mode = #tpu.pipeline_mode<synchronous>, transform_indices = @transform_4, window_bounds = array<i64: 1, 2>}, {transform_indices = @transform_5, window_bounds = array<i64: 2048, 2>}]} {
    %c0 = arith.constant 0 : index
    %c0_0 = arith.constant 0 : index
    %0 = vector.load %arg1[%c0, %c0_0] : memref<2048x64xbf16, #tpu.memory_space<vmem>>, vector<2048x64xbf16>
    %c0_1 = arith.constant 0 : index
    %c0_2 = arith.constant 0 : index
    %1 = vector.load %arg2[%c0_1, %c0_2] : memref<64x64xbf16, #tpu.memory_space<vmem>>, vector<64x64xbf16>
    %cst = arith.constant dense<0.000000e+00> : vector<2048x64xf32>
    %2 = tpu.matmul %0, %1, %cst {dimension_numbers = #tpu.dot_dimension_numbers<[1], [0], [0], [1], [0, 0, 1, 1], [], []>} : vector<2048x64xbf16>, vector<64x64xbf16>, vector<2048x64xf32> -> vector<2048x64xf32>
    %c0_3 = arith.constant 0 : index
    %c0_4 = arith.constant 0 : index
    %3 = vector.load %arg3[%c0_3, %c0_4] : memref<1x64xf32, #tpu.memory_space<vmem>>, vector<1x64xf32>
    %4 = vector.broadcast %3 : vector<1x64xf32> to vector<2048x64xf32>
    %5 = arith.addf %2, %4 : vector<2048x64xf32>
    %cst_5 = arith.constant 0.000000e+00 : f32
    %6 = vector.broadcast %cst_5 : f32 to vector<2048x64xf32>
    %7 = arith.maximumf %5, %6 : vector<2048x64xf32>
    %c0_6 = arith.constant 0 : index
    %c0_7 = arith.constant 0 : index
    %8 = vector.load %arg7[%c0_6, %c0_7] : memref<2048x64xf32, #tpu.memory_space<vmem>>, vector<2048x64xf32>
    tpu.vector_store %arg7[%c0_6, %c0_7], %7 {strides = array<i32>} : memref<2048x64xf32, #tpu.memory_space<vmem>>, vector<2048x64xf32>,
    %c0_8 = arith.constant 0 : index
    %c0_9 = arith.constant 0 : index
    %9 = vector.load %arg7[%c0_8, %c0_9] : memref<2048x64xf32, #tpu.memory_space<vmem>>, vector<2048x64xf32>
    %c0_10 = arith.constant 0 : index
    %c0_11 = arith.constant 0 : index
    %10 = vector.load %arg4[%c0_10, %c0_11] : memref<64x2xf32, #tpu.memory_space<vmem>>, vector<64x2xf32>
    %cst_12 = arith.constant dense<0.000000e+00> : vector<2048x2xf32>
    %11 = tpu.matmul %9, %10, %cst_12 {dimension_numbers = #tpu.dot_dimension_numbers<[1], [0], [0], [1], [0, 0, 1, 1], [], []>} : vector<2048x64xf32>, vector<64x2xf32>, vector<2048x2xf32> -> vector<2048x2xf32>
    %c0_13 = arith.constant 0 : index
    %c0_14 = arith.constant 0 : index
    %12 = vector.load %arg5[%c0_13, %c0_14] : memref<1x2xf32, #tpu.memory_space<vmem>>, vector<1x2xf32>
    %13 = vector.broadcast %12 : vector<1x2xf32> to vector<2048x2xf32>
    %14 = arith.addf %11, %13 : vector<2048x2xf32>
    %c0_15 = arith.constant 0 : index
    %c0_16 = arith.constant 0 : index
    %15 = vector.load %arg6[%c0_15, %c0_16] : memref<2048x2xf32, #tpu.memory_space<vmem>>, vector<2048x2xf32>
    tpu.vector_store %arg6[%c0_15, %c0_16], %14 {strides = array<i32>} : memref<2048x2xf32, #tpu.memory_space<vmem>>, vector<2048x2xf32>,
    return
  }
  func.func @transform_0(%arg0: i32) -> (i32, i32) {
    %c0_i32 = arith.constant 0 : i32
    %c0_i32_0 = arith.constant 0 : i32
    return %arg0, %c0_i32 : i32, i32
  }
  func.func @transform_1(%arg0: i32) -> (i32, i32) {
    %c0_i32 = arith.constant 0 : i32
    %c0_i32_0 = arith.constant 0 : i32
    %c0_i32_1 = arith.constant 0 : i32
    return %c0_i32, %c0_i32_0 : i32, i32
  }
  func.func @transform_2(%arg0: i32) -> (i32, i32) {
    %c0_i32 = arith.constant 0 : i32
    %c0_i32_0 = arith.constant 0 : i32
    %c0_i32_1 = arith.constant 0 : i32
    return %c0_i32, %c0_i32_0 : i32, i32
  }
  func.func @transform_3(%arg0: i32) -> (i32, i32) {
    %c0_i32 = arith.constant 0 : i32
    %c0_i32_0 = arith.constant 0 : i32
    %c0_i32_1 = arith.constant 0 : i32
    return %c0_i32, %c0_i32_0 : i32, i32
  }
  func.func @transform_4(%arg0: i32) -> (i32, i32) {
    %c0_i32 = arith.constant 0 : i32
    %c0_i32_0 = arith.constant 0 : i32
    %c0_i32_1 = arith.constant 0 : i32
    return %c0_i32, %c0_i32_0 : i32, i32
  }
  func.func @transform_5(%arg0: i32) -> (i32, i32) {
    %c0_i32 = arith.constant 0 : i32
    %c0_i32_0 = arith.constant 0 : i32
    return %arg0, %c0_i32 : i32, i32
  }
}

</mosaic_0001>

<bundles_post_ra>
// kernel: tpu_custom_call.1
= control target key start
LH: loop header
LB: loop body
LE: loop exit
PB: predicated region body
PF: predicated region fallthrough
CT: control target
= control target key end

     0   :  { %10 = vsyncpa [#allocation4], 0  ;;  %s9773_s0 = inlined_call_operand.vmem [shape: bf16[4096,64], index: 0, kind: input, shape index: {}]   ;;  %s9774_s1 = inlined_call_operand.hbm [shape: bf16[64,64], index: 1, kind: input, shape index: {}]   ;;  %s9775_s2 = inlined_call_operand.hbm [shape: f32[1,64], index: 2, kind: input, shape index: {}]   ;;  %s9776_s3 = inlined_call_operand.vmem [shape: f32[64,2], index: 3, kind: input, shape index: {}]   ;;  %s9777_s4 = inlined_call_operand.hbm [shape: f32[1,2], index: 4, kind: input, shape index: {}]   ;;  %s9778_s5 = inlined_call_operand.vmem [shape: f32[4096,2], index: 5, kind: output, shape index: {}]  }
   0x1   :  { %11 = vsyncpa [#allocation6], 0  ;;  %s7812_s18 = smov 0  }
   0x2 LB: > { %s7777_s19 = smov [#allocation5]   ;;  %s5886_s21 = sadd.s32 4294967295, %s7775_s18   ;;  %s7775_s18 = sphi %s7812_s18, %s17_s18  }
   0x3   : > { %s184_s20 = sshll.u32 %s7777_s19, 4  ;;  %p5888_p0 = scmp.ge.s32.totalorder %s7775_s18, 1  ;;  %s185_s20 = int_to_ptr.vmem [resolvable:$true] %s184_s20 }
   0x4   : > { %p158_p1 = scmp.lt.s32.totalorder %s7775_s18, 3  ;;  %p7822_p2 = scmp.eq.s32.totalorder %s5886_s21, 0 }
   0x5   : > { %s7778_s24 = smov [#allocation3]   ;;  %s7779_s27 = smov [#allocation7]  }
   0x6   : > { %s9782_s22 = scalar_select %p7822_p2, 1, 0 }
   0x7   : > { %p7826_p3 = pnand %p5888_p0, %p158_p1  ;;  %s170_s25 = sshll.u32 %s7778_s24, 4  ;;  %s7838_s25 = int_to_ptr.vmem [resolvable:$true] %s170_s25 }
   0x8   : > { %s198_s28 = sshll.u32 %s7779_s27, 4  ;;  %s7677_s6 = scalar_lea.hbm %s9775_s2, 16  ;;  %s7840_s28 = int_to_ptr.vmem [resolvable:$true] %s198_s28 }
   0x9   : > { %s9783_s23 = scalar_select %p7826_p3, 1, 0 }
   0xa   : > { %p7509_p4 = pneg %p7826_p3  ;;  %p7678_p6 = scmp.ne.s32.totalorder %s9775_s2, %s7677_s6 }
   0xb   : > { %p7684_p10 = scmp.lt.u32.totalorder %s7677_s6, %s9775_s2 }
   0xc   : > { %p7834_p5 = pnand %p7822_p2, %p7509_p4 }
   0xe   : > { %p7850_p7 = pneg %p7834_p5 }
  0x10   : > { %p7680_p8 = pnand %p7850_p7, %p7678_p6 }
  0x12   : > { %p7681_p9 = pneg %p7680_p8 }
  0x14   : > { %p7686_p11 = pnand %p7684_p10, %p7681_p9 }
  0x16   : > { %7689 = shalt.err (!%p7686_p11)
}
  0x17   : > { %s7690_s12 = scalar_lea.vmem %s185_s20, 16  ;;  %s7697_s13 = scalar_lea.vmem %s185_s20, 32 }
  0x18   : > { %p7691_p12 = scmp.ne.s32.totalorder %s185_s20, %s7690_s12  ;;  %p7698_p1 = scmp.lt.s32.totalorder %s185_s20, %s185_s20 }
  0x19   : > { %p7699_p4 = scmp.lt.s32.totalorder %s7697_s13, %s7690_s12 }
  0x1a   : > { %p7693_p13 = pnand %p7691_p12, %p7850_p7 }
  0x1b   : > { %p7700_p2 = por %p7699_p4, %p7698_p1 }
  0x1c   : > { %p7694_p0 = pneg %p7693_p13 }
  0x1e   : > { %p7701_p3 = pnand %p7700_p2, %p7694_p0 }
  0x20   : > { %7704 = shalt.err (!%p7701_p3)
}
  0x21   : > { %7515 = dma.hbm_to_vmem [thread:$0]  (!%p7834_p5), %s9775_s2, 16, %s185_s20, [#allocation6]  }
  0x22   : > { %s7705_s19 = scalar_lea.hbm %s9774_s1, 512 }
  0x23   : > { %p7706_p6 = scmp.ne.s32.totalorder %s9774_s1, %s7705_s19  ;;  %p7712_p2 = scmp.lt.u32.totalorder %s7705_s19, %s9774_s1 }
  0x25   : > { %p7708_p8 = pnand %p7706_p6, %p7850_p7 }
  0x27   : > { %p7709_p9 = pneg %p7708_p8 }
  0x29   : > { %p7714_p3 = pnand %p7712_p2, %p7709_p9 }
  0x2b   : > { %7717 = shalt.err (!%p7714_p3)
}
  0x2c   : > { %s7718_s20 = scalar_lea.vmem %s7838_s25, 512  ;;  %p7726_p13 = scmp.lt.s32.totalorder %s7838_s25, %s7838_s25 }
  0x2d   : > { %p7719_p10 = scmp.ne.s32.totalorder %s7838_s25, %s7718_s20  ;;  %p7727_p0 = scmp.lt.s32.totalorder %s7718_s20, %s7718_s20 }
  0x2f   : > { %p7721_p11 = pnand %p7719_p10, %p7850_p7  ;;  %p7728_p1 = por %p7727_p0, %p7726_p13 }
  0x31   : > { %p7722_p12 = pneg %p7721_p11 }
  0x33   : > { %p7729_p4 = pnand %p7728_p1, %p7722_p12 }
  0x35   : > { %7732 = shalt.err (!%p7729_p4)
}
  0x36   : > { %s7780_s6 = smov 64   ;;  %s7781_s7 = smov 4  }
  0x37   : > { %7512 = dma.hbm_to_vmem [thread:$0]  (!%p7834_p5), %s9774_s1, 512, %s7838_s25, [#allocation4], %s7780_s6, %s7780_s6, %s7781_s7  }
  0x38   : > { %s7733_s13 = scalar_lea.hbm %s9777_s4, 16 }
  0x39   : > { %p7734_p6 = scmp.ne.s32.totalorder %s9777_s4, %s7733_s13  ;;  %p7740_p2 = scmp.lt.u32.totalorder %s7733_s13, %s9777_s4 }
  0x3b   : > { %p7736_p8 = pnand %p7734_p6, %p7850_p7 }
  0x3d   : > { %p7737_p9 = pneg %p7736_p8 }
  0x3f   : > { %p7742_p3 = pnand %p7740_p2, %p7737_p9 }
  0x41   : > { %7745 = shalt.err (!%p7742_p3)
}
  0x42   : > { %s7746_s25 = scalar_lea.vmem %s7840_s28, 16  ;;  %s7753_s19 = scalar_lea.vmem %s7840_s28, 32 }
  0x43   : > { %p7747_p10 = scmp.ne.s32.totalorder %s7840_s28, %s7746_s25  ;;  %p7754_p13 = scmp.lt.s32.totalorder %s7840_s28, %s7840_s28 }
  0x44   : > { %p7755_p0 = scmp.lt.s32.totalorder %s7753_s19, %s7746_s25 }
  0x45   : > { %p7749_p11 = pnand %p7747_p10, %p7850_p7 }
  0x46   : > { %p7756_p1 = por %p7755_p0, %p7754_p13 }
  0x47   : > { %p7750_p12 = pneg %p7749_p11 }
  0x49   : > { %p7757_p4 = pnand %p7756_p1, %p7750_p12 }
  0x4b   : > { %7760 = shalt.err (!%p7757_p4)
}
  0x4c   : > { %7518 = dma.hbm_to_vmem [thread:$0]  (!%p7834_p5), %s9777_s4, 16, %s7840_s28, [#allocation6]  }
  0x4d   : > { %p9786_p6 = scmp.ne.s32.totalorder %s9783_s23, 0 }
  0x4e   : > { %p9787_p7 = scmp.ne.s32.totalorder (!%p9786_p6), %s9782_s22, 0 }
  0x4f   : > { %220 = sbr.rel (%p9786_p6) target bundleno = 1057 (0x421), region = 40 }
  0x56   : > { %7766 = dma.done.wait (%p9787_p7), [#allocation4], 512  }
  0x57   : > { %7768 = vsyncadd (%p9787_p7), [#allocation4], 4294966784 }
  0x58   : > { %7770 = dma.done.wait (%p9787_p7), [#allocation6], 32  }
  0x59   : > { %7772 = vsyncadd (%p9787_p7), [#allocation6], 4294967264  ;;  %s5897_s26 = sshll.u32 %s5886_s21, 8  ;;  %v7538_v0 = vld [vmem:[#allocation3] sm:$0xff]   ;;  %v7539_v1 = vld [vmem:[#allocation3 + $0x8] sm:$0xff]   ;;  %vm1204_vm0 = vcmask 523264  }
  0x5a   : > { %p257_p8 = scmp.lt.s32.totalorder %s5897_s26, 511  ;;  %6817 = vmatprep.subr.bf16.mxu0 %v7538_v0  ;;  %v7540_v2 = vld [vmem:[#allocation3 + $0x10] sm:$0xff]   ;;  %v7541_v4 = vld [vmem:[#allocation3 + $0x18] sm:$0xff]   ;;  %v3414_v27 = vld [vmem:[%s9776_s3] sm:$0xff]  ;;  %vm5542_vm1 = vcmask 15360  }
  0x5b   : > { %6818 = vmatpush3.bf16.msra.mxu0 %v7538_v0  ;;  %v3415_v28 = vld [vmem:[%s9776_s3 + $0x8] sm:$0xff]  ;;  %v3416_v31 = vld [vmem:[%s9776_s3 + $0x10] sm:$0xff]  ;;  %v3417_v32 = vld [vmem:[%s9776_s3 + $0x18] sm:$0xff] }
  0x5c   : > { %s9789_s26 = smov (!%p257_p8, %s5897_s26), 511  ;;  %6819 = vmatprep.subr.bf16.mxu0 %v7539_v1  ;;  %v7481_v29 = vpack.c.bf16 %v3415_v28, %v3414_v27  ;;  %v7485_v34 = vpack.c.bf16 %v3417_v32, %v3416_v31  ;;  %v3418_v35 = vld [vmem:[%s9776_s3 + $0x20] sm:$0xff]  ;;  %v3419_v36 = vld [vmem:[%s9776_s3 + $0x28] sm:$0xff]  ;;  %v3420_v39 = vld [vmem:[%s9776_s3 + $0x30] sm:$0xff] }
  0x5d   : > { %s5898_s23 = sshll.u32 %s9789_s26, 2  ;;  %v7489_v37 = vpack.c.bf16 %v3419_v36, %v3418_v35  ;;  %v3421_v40 = vld [vmem:[%s9776_s3 + $0x38] sm:$0xff]  ;;  %s5900_s19 = sshll.u32 %s9789_s26, 3 }
  0x5e   : > { %s7931_s29 = scalar_lea.vmem %s9773_s0, %s5898_s23  ;;  %7482 = vmatprep.subr.bf16.mxu1 %v7481_v29  ;;  %v7493_v42 = vpack.c.bf16 %v3421_v40, %v3420_v39  ;;  %s8524_s26 = scalar_lea.vmem %s9778_s5, %s5900_s19 }
  0x5f   : > { %v7542_v3 = vld [vmem:[%s7931_s29] sm:$0xff]   ;;  %6820 = vmatpush3.bf16.msra.mxu0 %v7539_v1  ;;  %v7543_v5 = vld [vmem:[%s7931_s29 + $0x8] sm:$0xff]   ;;  %v7544_v6 = vld [vmem:[%s7931_s29 + $0x10] sm:$0xff]   ;;  %7484 = vmatpush3.bf16.msra.mxu1 %v7481_v29 }
  0x60   : > { %6825 = vmatprep.mubr.msk.bf16.mxu0 %vm1204_vm0, %v7542_v3  ;;  %6821 = vmatprep.subr.bf16.mxu0 %v7540_v2  ;;  %v7545_v7 = vld [vmem:[%s7931_s29 + $0x18] sm:$0xff]   ;;  %v7546_v8 = vld [vmem:[%s7931_s29 + $0x20] sm:$0xff]   ;;  %v7547_v9 = vld [vmem:[%s7931_s29 + $0x28] sm:$0xff]  }
  0x61   : > { %v7548_v10 = vld [vmem:[%s7931_s29 + $0x30] sm:$0xff]   ;;  %v7549_v11 = vld [vmem:[%s7931_s29 + $0x38] sm:$0xff]   ;;  %v7550_v12 = vld [vmem:[%s7931_s29 + $0x40] sm:$0xff]   ;;  %7486 = vmatprep.subr.bf16.mxu1 %v7485_v34 }
  0x62   : > { %v7551_v13 = vld [vmem:[%s7931_s29 + $0x48] sm:$0xff]   ;;  %v7552_v14 = vld [vmem:[%s7931_s29 + $0x50] sm:$0xff]   ;;  %v7553_v15 = vld [vmem:[%s7931_s29 + $0x58] sm:$0xff]  }
  0x63   : > { %6822 = vmatpush3.bf16.msra.mxu0 %v7540_v2  ;;  %v7554_v16 = vld [vmem:[%s7931_s29 + $0x60] sm:$0xff]   ;;  %v7555_v17 = vld [vmem:[%s7931_s29 + $0x68] sm:$0xff]   ;;  %v7556_v18 = vld [vmem:[%s7931_s29 + $0x70] sm:$0xff]   ;;  %7488 = vmatpush3.bf16.msra.mxu1 %v7485_v34 }
  0x64   : > { %6823 = vmatprep.subr.bf16.mxu0 %v7541_v4  ;;  %v7557_v19 = vld [vmem:[%s7931_s29 + $0x78] sm:$0xff]   ;;  %v7558_v20 = vld [vmem:[%s7931_s29 + $0x80] sm:$0xff]   ;;  %v7559_v21 = vld [vmem:[%s7931_s29 + $0x88] sm:$0xff]   ;;  %7490 = vmatprep.subr.bf16.mxu1 %v7489_v37 }
  0x65   : > { %v7560_v22 = vld [vmem:[%s7931_s29 + $0x90] sm:$0xff]   ;;  %v7561_v23 = vld [vmem:[%s7931_s29 + $0x98] sm:$0xff]   ;;  %v7562_v24 = vld [vmem:[%s7931_s29 + $0xa0] sm:$0xff]  }
  0x66   : > { %v7563_v25 = vld [vmem:[%s7931_s29 + $0xa8] sm:$0xff]   ;;  %v7564_v26 = vld [vmem:[%s7931_s29 + $0xb0] sm:$0xff]   ;;  %v7565_v30 = vld [vmem:[%s7931_s29 + $0xb8] sm:$0xff]  }
  0x67   : > { %6824 = vmatpush3.bf16.msra.mxu0 %v7541_v4  ;;  %v7566_v33 = vld [vmem:[%s7931_s29 + $0xc0] sm:$0xff]   ;;  %v7567_v38 = vld [vmem:[%s7931_s29 + $0xc8] sm:$0xff]   ;;  %7492 = vmatpush3.bf16.msra.mxu1 %v7489_v37  ;;  %v7568_v41 = vld [vmem:[%s7931_s29 + $0xd0] sm:$0xff]  }
  0x68   : > { %7494 = vmatprep.subr.bf16.mxu1 %v7493_v42  ;;  %v7569_v43 = vld [vmem:[%s7931_s29 + $0xd8] sm:$0xff]   ;;  %v7570_v44 = vld [vmem:[%s7931_s29 + $0xe0] sm:$0xff]   ;;  %v7571_v45 = vld [vmem:[%s7931_s29 + $0xe8] sm:$0xff]  }
  0x69   : > { %v7572_v46 = vld [vmem:[%s7931_s29 + $0xf0] sm:$0xff]   ;;  %v7573_v47 = vld [vmem:[%s7931_s29 + $0xf8] sm:$0xff]   ;;  %v7574_v48 = vld [vmem:[%s7931_s29 + $0x100] sm:$0xff]  }
  0x6a   : > { %6826 = vmatmul.mubr.msk.bf16.vlgmr.msra.gmra.mrb[0].mxu0 %vm1204_vm0, %v7543_v5  ;;  %v7575_v49 = vld [vmem:[%s7931_s29 + $0x108] sm:$0xff]   ;;  %v7576_v50 = vld [vmem:[%s7931_s29 + $0x110] sm:$0xff]   ;;  %v7577_v51 = vld [vmem:[%s7931_s29 + $0x118] sm:$0xff]  }
  0x6b   : > { %6829 = vmatprep.mubr.msk.bf16.mxu0 %vm1204_vm0, %v7544_v6  ;;  %7496 = vmatpush3.bf16.msra.mxu1 %v7493_v42  ;;  %v7578_v52 = vld [vmem:[%s7931_s29 + $0x120] sm:$0xff]   ;;  %v7579_v53 = vld [vmem:[%s7931_s29 + $0x128] sm:$0xff]   ;;  %v7580_v54 = vld [vmem:[%s7931_s29 + $0x130] sm:$0xff]  }
  0x6c   : > { %v7581_v55 = vld [vmem:[%s7931_s29 + $0x138] sm:$0xff]   ;;  %v7582_v56 = vld [vmem:[%s7931_s29 + $0x140] sm:$0xff]   ;;  %v7583_v57 = vld [vmem:[%s7931_s29 + $0x148] sm:$0xff]  }
  0x6d   : > { %v7584_v58 = vld [vmem:[%s7931_s29 + $0x150] sm:$0xff]   ;;  %v7585_v59 = vld [vmem:[%s7931_s29 + $0x158] sm:$0xff]   ;;  %v7586_v60 = vld [vmem:[%s7931_s29 + $0x160] sm:$0xff]  }
  0x6e   : > { %v7587_v61 = vld [vmem:[%s7931_s29 + $0x168] sm:$0xff]   ;;  %v7588_v62 = vld [vmem:[%s7931_s29 + $0x170] sm:$0xff]   ;;  %v7589_v63 = vld [vmem:[%s7931_s29 + $0x178] sm:$0xff]  }
  0x6f   : > { %v7590_v0 = vld [vmem:[%s7931_s29 + $0x180] sm:$0xff]   ;;  %v7591_v1 = vld [vmem:[%s7931_s29 + $0x188] sm:$0xff]   ;;  %v7592_v2 = vld [vmem:[%s7931_s29 + $0x190] sm:$0xff]  }
  0x70   : > { %v7593_v3 = vld [vmem:[%s7931_s29 + $0x198] sm:$0xff]   ;;  %v7594_v4 = vld [vmem:[%s7931_s29 + $0x1a0] sm:$0xff]   ;;  %v7595_v5 = vld [vmem:[%s7931_s29 + $0x1a8] sm:$0xff]  }
  0x71   : > { %v7596_v6 = vld [vmem:[%s7931_s29 + $0x1b0] sm:$0xff]   ;;  %v7601_v42 = vld [vmem:[%s7931_s29 + $0x1d8] sm:$0xff]  }
  0x72   : > { %6830 = vmatmul.mubr.msk.bf16.gmra.mrb[4].mxu0 %vm1204_vm0, %v7545_v7  ;;  %v8066_v7 = vld [vmem:[#allocation5] ss:$0 sm:$0xff]  ;;  %v7600_v28 = vld [vmem:[%s7931_s29 + $0x1d0] sm:$0xff]  }
  0x73   : > { %6833 = vmatprep.mubr.msk.bf16.mxu0 %vm1204_vm0, %v7546_v8 }
  0x7a   : > { %6834 = vmatmul.mubr.msk.bf16.gmra.mrb[8].mxu0 %vm1204_vm0, %v7547_v9 }
  0x7b   : > { %6837 = vmatprep.mubr.msk.bf16.mxu0 %vm1204_vm0, %v7548_v10 }
  0x82   : > { %6838 = vmatmul.mubr.msk.bf16.gmra.mrb[12].mxu0 %vm1204_vm0, %v7549_v11  ;;  %v7597_v11 = vld [vmem:[%s7931_s29 + $0x1b8] sm:$0xff]  }
  0x83   : > { %6841 = vmatprep.mubr.msk.bf16.mxu0 %vm1204_vm0, %v7550_v12 }
  0x8a   : > { %6842 = vmatmul.mubr.msk.bf16.gmra.mrb[16].mxu0 %vm1204_vm0, %v7551_v13 }
  0x8b   : > { %6845 = vmatprep.mubr.msk.bf16.mxu0 %vm1204_vm0, %v7552_v14  ;;  %v7598_v14 = vld [vmem:[%s7931_s29 + $0x1c0] sm:$0xff]  }
  0x92   : > { %6846 = vmatmul.mubr.msk.bf16.gmra.mrb[20].mxu0 %vm1204_vm0, %v7553_v15 }
  0x93   : > { %6849 = vmatprep.mubr.msk.bf16.mxu0 %vm1204_vm0, %v7554_v16 }
  0x9a   : > { %6850 = vmatmul.mubr.msk.bf16.gmra.mrb[24].mxu0 %vm1204_vm0, %v7555_v17 }
  0x9b   : > { %6853 = vmatprep.mubr.msk.bf16.mxu0 %vm1204_vm0, %v7556_v18 }
  0xa2   : > { %6854 = vmatmul.mubr.msk.bf16.gmra.mrb[28].mxu0 %vm1204_vm0, %v7557_v19 }
  0xa3   : > { %6857 = vmatprep.mubr.msk.bf16.mxu0 %vm1204_vm0, %v7558_v20 }
  0xaa   : > { %6858 = vmatmul.mubr.msk.bf16.gmra.mrb[32].mxu0 %vm1204_vm0, %v7559_v21 }
  0xab   : > { %6861 = vmatprep.mubr.msk.bf16.mxu0 %vm1204_vm0, %v7560_v22 }
  0xb2   : > { %6862 = vmatmul.mubr.msk.bf16.gmra.mrb[36].mxu0 %vm1204_vm0, %v7561_v23 }
  0xb3   : > { %6865 = vmatprep.mubr.msk.bf16.mxu0 %vm1204_vm0, %v7562_v24 }
  0xba   : > { %6866 = vmatmul.mubr.msk.bf16.gmra.mrb[40].mxu0 %vm1204_vm0, %v7563_v25  ;;  %v7599_v25 = vld [vmem:[%s7931_s29 + $0x1c8] sm:$0xff]  }
  0xbb   : > { %6869 = vmatprep.mubr.msk.bf16.mxu0 %vm1204_vm0, %v7564_v26 }
  0xc2   : > { %6870 = vmatmul.mubr.msk.bf16.gmra.mrb[44].mxu0 %vm1204_vm0, %v7565_v30 }
  0xc3   : > { %6873 = vmatprep.mubr.msk.bf16.mxu0 %vm1204_vm0, %v7566_v33 }
  0xca   : > { %6874 = vmatmul.mubr.msk.bf16.gmra.mrb[48].mxu0 %vm1204_vm0, %v7567_v38 }
  0xcb   : > { %6877 = vmatprep.mubr.msk.bf16.mxu0 %vm1204_vm0, %v7568_v41 }
  0xd2   : > { %6878 = vmatmul.mubr.msk.bf16.gmra.mrb[52].mxu0 %vm1204_vm0, %v7569_v43 }
  0xd3   : > { %6881 = vmatprep.mubr.msk.bf16.mxu0 %vm1204_vm0, %v7570_v44 }
  0xda   : > { %6882 = vmatmul.mubr.msk.bf16.gmra.mrb[56].mxu0 %vm1204_vm0, %v7571_v45  ;;  %v7602_v45 = vld [vmem:[%s7931_s29 + $0x1e0] sm:$0xff]  }
  0xdb   : > { %6885 = vmatprep.mubr.msk.bf16.mxu0 %vm1204_vm0, %v7572_v46 }
  0xe2   : > { %6886 = vmatmul.mubr.msk.bf16.gmra.mrb[60].mxu0 %vm1204_vm0, %v7573_v47 }
  0xe3   : > { %6889 = vmatprep.mubr.msk.bf16.mxu0 %vm1204_vm0, %v7574_v48 }
  0xea   : > { %6890 = vmatmul.mubr.msk.bf16.gmra.mrb[64].mxu0 %vm1204_vm0, %v7575_v49 }
  0xeb   : > { %6893 = vmatprep.mubr.msk.bf16.mxu0 %vm1204_vm0, %v7576_v50 }
  0xf2   : > { %6894 = vmatmul.mubr.msk.bf16.gmra.mrb[68].mxu0 %vm1204_vm0, %v7577_v51 }
  0xf3   : > { %6897 = vmatprep.mubr.msk.bf16.mxu0 %vm1204_vm0, %v7578_v52 }
  0xfa   : > { %6898 = vmatmul.mubr.msk.bf16.gmra.mrb[72].mxu0 %vm1204_vm0, %v7579_v53 }
  0xfb   : > { %6901 = vmatprep.mubr.msk.bf16.mxu0 %vm1204_vm0, %v7580_v54 }
 0x102   : > { %6902 = vmatmul.mubr.msk.bf16.gmra.mrb[76].mxu0 %vm1204_vm0, %v7581_v55 }
 0x103   : > { %6905 = vmatprep.mubr.msk.bf16.mxu0 %vm1204_vm0, %v7582_v56 }
 0x10a   : > { %6906 = vmatmul.mubr.msk.bf16.gmra.mrb[80].mxu0 %vm1204_vm0, %v7583_v57 }
 0x10b   : > { %6909 = vmatprep.mubr.msk.bf16.mxu0 %vm1204_vm0, %v7584_v58 }
 0x112   : > { %6910 = vmatmul.mubr.msk.bf16.gmra.mrb[84].mxu0 %vm1204_vm0, %v7585_v59 }
 0x113   : > { %6913 = vmatprep.mubr.msk.bf16.mxu0 %vm1204_vm0, %v7586_v60  ;;  %v7603_v60 = vld [vmem:[%s7931_s29 + $0x1e8] sm:$0xff]  }
 0x11a   : > { %6914 = vmatmul.mubr.msk.bf16.gmra.mrb[88].mxu0 %vm1204_vm0, %v7587_v61 }
 0x11b   : > { %6917 = vmatprep.mubr.msk.bf16.mxu0 %vm1204_vm0, %v7588_v62 }
 0x122   : > { %6918 = vmatmul.mubr.msk.bf16.gmra.mrb[92].mxu0 %vm1204_vm0, %v7589_v63  ;;  %v7604_v63 = vld [vmem:[%s7931_s29 + $0x1f0] sm:$0xff]  }
 0x123   : > { %6921 = vmatprep.mubr.msk.bf16.mxu0 %vm1204_vm0, %v7590_v0 }
 0x12a   : > { %6922 = vmatmul.mubr.msk.bf16.gmra.mrb[96].mxu0 %vm1204_vm0, %v7591_v1 }
 0x12b   : > { %6925 = vmatprep.mubr.msk.bf16.mxu0 %vm1204_vm0, %v7592_v2 }
 0x132   : > { %6926 = vmatmul.mubr.msk.bf16.gmra.mrb[100].mxu0 %vm1204_vm0, %v7593_v3 }
 0x133   : > { %6929 = vmatprep.mubr.msk.bf16.mxu0 %vm1204_vm0, %v7594_v4 }
 0x13a   : > { %6930 = vmatmul.mubr.msk.bf16.gmra.mrb[104].mxu0 %vm1204_vm0, %v7595_v5 }
 0x13b   : > { %6933 = vmatprep.mubr.msk.bf16.mxu0 %vm1204_vm0, %v7596_v6 }
 0x13d   : > { %v6827_v8 = vpop.f32.mrb[0].mxu0 }
 0x13e   : > { %v1632_v9 = vadd.f32 %v6827_v8, %v8066_v7  ;;  %v1623_v10 = vpop.f32.mrb[1].mxu0 }
 0x13f   : > { %v1624_v12 = vadd.f32 %v8066_v7, %v1623_v10  ;;  %v6828_v13 = vpop.f32.mrb[2].mxu0 }
 0x140   : > { %v2648_v15 = vmax.f32 %v1632_v9, 0.0  ;;  %v1635_v16 = vadd.f32 %v6828_v13, %v8066_v7  ;;  %v1626_v17 = vpop.f32.mrb[3].mxu0 }
 0x141   : > { %v2646_v18 = vmax.f32 %v1624_v12, 0.0  ;;  %v1627_v19 = vadd.f32 %v8066_v7, %v1626_v17 }
 0x142   : > { %2904 = vst.msk [vmem:[#allocation2 + $0x10] sm:$0xff] %vm1204_vm0, %v2648_v15  ;;  %v2649_v20 = vmax.f32 %v1635_v16, 0.0  ;;  %6934 = vmatmul.mubr.msk.bf16.gmra.mrb[108].mxu0 %vm1204_vm0, %v7597_v11  ;;  %v7605_v15 = vld [vmem:[%s7931_s29 + $0x1f8] sm:$0xff]  }
 0x143   : > { %2902 = vst.msk [vmem:[#allocation2] sm:$0xff] %vm1204_vm0, %v2646_v18  ;;  %v2647_v21 = vmax.f32 %v1627_v19, 0.0  ;;  %6937 = vmatprep.mubr.msk.bf16.mxu0 %vm1204_vm0, %v7598_v14  ;;  %v7606_v18 = vld [vmem:[%s7931_s29 + $0x200] sm:$0xff]  }
 0x144   : > { %2905 = vst.msk [vmem:[#allocation2 + $0x18] sm:$0xff] %vm1204_vm0, %v2649_v20 }
 0x145   : > { %2903 = vst.msk [vmem:[#allocation2 + $0x8] sm:$0xff] %vm1204_vm0, %v2647_v21  ;;  %v6831_v22 = vpop.f32.mrb[4].mxu0 }
 0x146   : > { %v1648_v23 = vadd.f32 %v6831_v22, %v8066_v7  ;;  %v1639_v24 = vpop.f32.mrb[5].mxu0 }
 0x147   : > { %v1640_v26 = vadd.f32 %v8066_v7, %v1639_v24  ;;  %v6832_v27 = vpop.f32.mrb[6].mxu0 }
 0x148   : > { %v2652_v29 = vmax.f32 %v1648_v23, 0.0  ;;  %v1651_v30 = vadd.f32 %v6832_v27, %v8066_v7  ;;  %v1642_v31 = vpop.f32.mrb[7].mxu0 }
 0x149   : > { %v2650_v32 = vmax.f32 %v1640_v26, 0.0  ;;  %v1643_v33 = vadd.f32 %v8066_v7, %v1642_v31  ;;  %v3160_v39 = vld [vmem:[#allocation2 + $0x10] sm:$0xff] }
 0x14a   : > { %2908 = vst.msk [vmem:[#allocation2 + $0x30] sm:$0xff] %vm1204_vm0, %v2652_v29  ;;  %v2653_v34 = vmax.f32 %v1651_v30, 0.0  ;;  %6938 = vmatmul.mubr.msk.bf16.gmra.mrb[112].mxu0 %vm1204_vm0, %v7599_v25  ;;  %v3158_v35 = vld [vmem:[#allocation2] sm:$0xff] }
 0x14b   : > { %2906 = vst.msk [vmem:[#allocation2 + $0x20] sm:$0xff] %vm1204_vm0, %v2650_v32  ;;  %v2651_v36 = vmax.f32 %v1643_v33, 0.0  ;;  %7097 = vmatprep.mubr.msk.f32.mxu1 %vm1204_vm0, %v3158_v35  ;;  %6941 = vmatprep.mubr.msk.bf16.mxu0 %vm1204_vm0, %v7600_v28  ;;  %v3161_v49 = vld [vmem:[#allocation2 + $0x18] sm:$0xff]  ;;  %v7607_v33 = vld [vmem:[%s7931_s29 + $0x208] sm:$0xff]  }
 0x14c   : > { %2909 = vst.msk [vmem:[#allocation2 + $0x38] sm:$0xff] %vm1204_vm0, %v2653_v34  ;;  %v3159_v37 = vld [vmem:[#allocation2 + $0x8] sm:$0xff] }
 0x14d   : > { %2907 = vst.msk [vmem:[#allocation2 + $0x28] sm:$0xff] %vm1204_vm0, %v2651_v36  ;;  %v6835_v38 = vpop.f32.mrb[8].mxu0  ;;  %7098 = vmatmul.mubr.msk.f32.vlgmr.msra.gmra.mrb[0].mxu1 %vm1204_vm0, %v3159_v37  ;;  %v7608_v36 = vld [vmem:[%s7931_s29 + $0x210] sm:$0xff]  }
 0x14e   : > { %v1664_v40 = vadd.f32 %v6835_v38, %v8066_v7  ;;  %v1655_v41 = vpop.f32.mrb[9].mxu0  ;;  %7100 = vmatprep.mubr.msk.f32.mxu1 %vm1204_vm0, %v3160_v39 }
 0x14f   : > { %v1656_v43 = vadd.f32 %v8066_v7, %v1655_v41  ;;  %v6836_v44 = vpop.f32.mrb[10].mxu0 }
 0x150   : > { %v2656_v46 = vmax.f32 %v1664_v40, 0.0  ;;  %v1667_v47 = vadd.f32 %v6836_v44, %v8066_v7  ;;  %v1658_v48 = vpop.f32.mrb[11].mxu0 }
 0x151   : > { %v2654_v50 = vmax.f32 %v1656_v43, 0.0  ;;  %v1659_v51 = vadd.f32 %v8066_v7, %v1658_v48  ;;  %7101 = vmatmul.mubr.msk.f32.gmra.mrb[2].mxu1 %vm1204_vm0, %v3161_v49  ;;  %v3164_v57 = vld [vmem:[#allocation2 + $0x30] sm:$0xff] }
 0x152   : > { %2912 = vst.msk [vmem:[#allocation2 + $0x50] sm:$0xff] %vm1204_vm0, %v2656_v46  ;;  %v2657_v52 = vmax.f32 %v1667_v47, 0.0  ;;  %6942 = vmatmul.mubr.msk.bf16.gmra.mrb[116].mxu0 %vm1204_vm0, %v7601_v42  ;;  %v3162_v53 = vld [vmem:[#allocation2 + $0x20] sm:$0xff] }
 0x153   : > { %2910 = vst.msk [vmem:[#allocation2 + $0x40] sm:$0xff] %vm1204_vm0, %v2654_v50  ;;  %v2655_v54 = vmax.f32 %v1659_v51, 0.0  ;;  %7103 = vmatprep.mubr.msk.f32.mxu1 %vm1204_vm0, %v3162_v53  ;;  %6945 = vmatprep.mubr.msk.bf16.mxu0 %vm1204_vm0, %v7602_v45  ;;  %v3165_v3 = vld [vmem:[#allocation2 + $0x38] sm:$0xff] }
 0x154   : > { %2913 = vst.msk [vmem:[#allocation2 + $0x58] sm:$0xff] %vm1204_vm0, %v2657_v52  ;;  %v3163_v55 = vld [vmem:[#allocation2 + $0x28] sm:$0xff]  ;;  %v7609_v51 = vld [vmem:[%s7931_s29 + $0x218] sm:$0xff]  }
 0x155   : > { %2911 = vst.msk [vmem:[#allocation2 + $0x48] sm:$0xff] %vm1204_vm0, %v2655_v54  ;;  %v6839_v56 = vpop.f32.mrb[12].mxu0  ;;  %7104 = vmatmul.mubr.msk.f32.gmra.mrb[4].mxu1 %vm1204_vm0, %v3163_v55  ;;  %v7610_v54 = vld [vmem:[%s7931_s29 + $0x220] sm:$0xff]  }
 0x156   : > { %v1680_v58 = vadd.f32 %v6839_v56, %v8066_v7  ;;  %v1671_v59 = vpop.f32.mrb[13].mxu0  ;;  %7106 = vmatprep.mubr.msk.f32.mxu1 %vm1204_vm0, %v3164_v57 }
 0x157   : > { %v1672_v61 = vadd.f32 %v8066_v7, %v1671_v59  ;;  %v6840_v62 = vpop.f32.mrb[14].mxu0 }
 0x158   : > { %v2660_v0 = vmax.f32 %v1680_v58, 0.0  ;;  %v1683_v1 = vadd.f32 %v6840_v62, %v8066_v7  ;;  %v1674_v2 = vpop.f32.mrb[15].mxu0 }
 0x159   : > { %v2658_v4 = vmax.f32 %v1672_v61, 0.0  ;;  %v1675_v5 = vadd.f32 %v8066_v7, %v1674_v2  ;;  %7107 = vmatmul.mubr.msk.f32.gmra.mrb[6].mxu1 %vm1204_vm0, %v3165_v3  ;;  %v3168_v12 = vld [vmem:[#allocation2 + $0x50] sm:$0xff] }
 0x15a   : > { %2916 = vst.msk [vmem:[#allocation2 + $0x70] sm:$0xff] %vm1204_vm0, %v2660_v0  ;;  %v2661_v6 = vmax.f32 %v1683_v1, 0.0  ;;  %6946 = vmatmul.mubr.msk.bf16.gmra.mrb[120].mxu0 %vm1204_vm0, %v7603_v60  ;;  %v3166_v8 = vld [vmem:[#allocation2 + $0x40] sm:$0xff] }
 0x15b   : > { %2914 = vst.msk [vmem:[#allocation2 + $0x60] sm:$0xff] %vm1204_vm0, %v2658_v4  ;;  %v2659_v9 = vmax.f32 %v1675_v5, 0.0  ;;  %7109 = vmatprep.mubr.msk.f32.mxu1 %vm1204_vm0, %v3166_v8  ;;  %6949 = vmatprep.mubr.msk.bf16.mxu0 %vm1204_vm0, %v7604_v63  ;;  %v3169_v22 = vld [vmem:[#allocation2 + $0x58] sm:$0xff]  ;;  %v7611_v5 = vld [vmem:[%s7931_s29 + $0x228] sm:$0xff]  }
 0x15c   : > { %2917 = vst.msk [vmem:[#allocation2 + $0x78] sm:$0xff] %vm1204_vm0, %v2661_v6  ;;  %v3167_v10 = vld [vmem:[#allocation2 + $0x48] sm:$0xff] }
 0x15d   : > { %2915 = vst.msk [vmem:[#allocation2 + $0x68] sm:$0xff] %vm1204_vm0, %v2659_v9  ;;  %v6843_v11 = vpop.f32.mrb[16].mxu0  ;;  %7110 = vmatmul.mubr.msk.f32.gmra.mrb[8].mxu1 %vm1204_vm0, %v3167_v10  ;;  %v7612_v9 = vld [vmem:[%s7931_s29 + $0x230] sm:$0xff]  }
 0x15e   : > { %v1696_v13 = vadd.f32 %v6843_v11, %v8066_v7  ;;  %v1687_v14 = vpop.f32.mrb[17].mxu0  ;;  %7112 = vmatprep.mubr.msk.f32.mxu1 %vm1204_vm0, %v3168_v12 }
 0x15f   : > { %v1688_v16 = vadd.f32 %v8066_v7, %v1687_v14  ;;  %v6844_v17 = vpop.f32.mrb[18].mxu0 }
 0x160   : > { %v2664_v19 = vmax.f32 %v1696_v13, 0.0  ;;  %v1699_v20 = vadd.f32 %v6844_v17, %v8066_v7  ;;  %v1690_v21 = vpop.f32.mrb[19].mxu0 }
 0x161   : > { %v2662_v23 = vmax.f32 %v1688_v16, 0.0  ;;  %v1691_v24 = vadd.f32 %v8066_v7, %v1690_v21  ;;  %7113 = vmatmul.mubr.msk.f32.gmra.mrb[10].mxu1 %vm1204_vm0, %v3169_v22  ;;  %v3172_v30 = vld [vmem:[#allocation2 + $0x70] sm:$0xff] }
 0x162   : > { %2920 = vst.msk [vmem:[#allocation2 + $0x90] sm:$0xff] %vm1204_vm0, %v2664_v19  ;;  %v2665_v25 = vmax.f32 %v1699_v20, 0.0  ;;  %6950 = vmatmul.mubr.msk.bf16.gmra.mrb[124].mxu0 %vm1204_vm0, %v7605_v15  ;;  %v3170_v26 = vld [vmem:[#allocation2 + $0x60] sm:$0xff] }
 0x163   : > { %2918 = vst.msk [vmem:[#allocation2 + $0x80] sm:$0xff] %vm1204_vm0, %v2662_v23  ;;  %v2663_v27 = vmax.f32 %v1691_v24, 0.0  ;;  %7115 = vmatprep.mubr.msk.f32.mxu1 %vm1204_vm0, %v3170_v26  ;;  %6953 = vmatprep.mubr.msk.bf16.mxu0 %vm1204_vm0, %v7606_v18  ;;  %v3173_v40 = vld [vmem:[#allocation2 + $0x78] sm:$0xff] }
 0x164   : > { %2921 = vst.msk [vmem:[#allocation2 + $0x98] sm:$0xff] %vm1204_vm0, %v2665_v25  ;;  %v3171_v28 = vld [vmem:[#allocation2 + $0x68] sm:$0xff]  ;;  %v7613_v24 = vld [vmem:[%s7931_s29 + $0x238] sm:$0xff]  }
 0x165   : > { %2919 = vst.msk [vmem:[#allocation2 + $0x88] sm:$0xff] %vm1204_vm0, %v2663_v27  ;;  %v6847_v29 = vpop.f32.mrb[20].mxu0  ;;  %7116 = vmatmul.mubr.msk.f32.gmra.mrb[12].mxu1 %vm1204_vm0, %v3171_v28  ;;  %v7614_v27 = vld [vmem:[%s7931_s29 + $0x240] sm:$0xff]  }
 0x166   : > { %v1712_v31 = vadd.f32 %v6847_v29, %v8066_v7  ;;  %v1703_v32 = vpop.f32.mrb[21].mxu0  ;;  %7118 = vmatprep.mubr.msk.f32.mxu1 %vm1204_vm0, %v3172_v30 }
 0x167   : > { %v1704_v34 = vadd.f32 %v8066_v7, %v1703_v32  ;;  %v6848_v35 = vpop.f32.mrb[22].mxu0 }
 0x168   : > { %v2668_v37 = vmax.f32 %v1712_v31, 0.0  ;;  %v1715_v38 = vadd.f32 %v6848_v35, %v8066_v7  ;;  %v1706_v39 = vpop.f32.mrb[23].mxu0 }
 0x169   : > { %v2666_v41 = vmax.f32 %v1704_v34, 0.0  ;;  %v1707_v42 = vadd.f32 %v8066_v7, %v1706_v39  ;;  %7119 = vmatmul.mubr.msk.f32.gmra.mrb[14].mxu1 %vm1204_vm0, %v3173_v40  ;;  %v3176_v48 = vld [vmem:[#allocation2 + $0x90] sm:$0xff] }
 0x16a   : > { %2924 = vst.msk [vmem:[#allocation2 + $0xb0] sm:$0xff] %vm1204_vm0, %v2668_v37  ;;  %v2669_v43 = vmax.f32 %v1715_v38, 0.0  ;;  %6954 = vmatmul.mubr.msk.bf16.gmra.mrb[128].mxu0 %vm1204_vm0, %v7607_v33  ;;  %v3174_v44 = vld [vmem:[#allocation2 + $0x80] sm:$0xff] }
 0x16b   : > { %2922 = vst.msk [vmem:[#allocation2 + $0xa0] sm:$0xff] %vm1204_vm0, %v2666_v41  ;;  %v2667_v45 = vmax.f32 %v1707_v42, 0.0  ;;  %7121 = vmatprep.mubr.msk.f32.mxu1 %vm1204_vm0, %v3174_v44  ;;  %6957 = vmatprep.mubr.msk.bf16.mxu0 %vm1204_vm0, %v7608_v36  ;;  %v3177_v58 = vld [vmem:[#allocation2 + $0x98] sm:$0xff]  ;;  %v7615_v42 = vld [vmem:[%s7931_s29 + $0x248] sm:$0xff]  }
 0x16c   : > { %2925 = vst.msk [vmem:[#allocation2 + $0xb8] sm:$0xff] %vm1204_vm0, %v2669_v43  ;;  %v3175_v46 = vld [vmem:[#allocation2 + $0x88] sm:$0xff] }
 0x16d   : > { %2923 = vst.msk [vmem:[#allocation2 + $0xa8] sm:$0xff] %vm1204_vm0, %v2667_v45  ;;  %v6851_v47 = vpop.f32.mrb[24].mxu0  ;;  %7122 = vmatmul.mubr.msk.f32.gmra.mrb[16].mxu1 %vm1204_vm0, %v3175_v46  ;;  %v7616_v45 = vld [vmem:[%s7931_s29 + $0x250] sm:$0xff]  }
 0x16e   : > { %v1728_v49 = vadd.f32 %v6851_v47, %v8066_v7  ;;  %v1719_v50 = vpop.f32.mrb[25].mxu0  ;;  %7124 = vmatprep.mubr.msk.f32.mxu1 %vm1204_vm0, %v3176_v48 }
 0x16f   : > { %v1720_v52 = vadd.f32 %v8066_v7, %v1719_v50  ;;  %v6852_v53 = vpop.f32.mrb[26].mxu0 }
 0x170   : > { %v2672_v55 = vmax.f32 %v1728_v49, 0.0  ;;  %v1731_v56 = vadd.f32 %v6852_v53, %v8066_v7  ;;  %v1722_v57 = vpop.f32.mrb[27].mxu0 }
 0x171   : > { %v2670_v59 = vmax.f32 %v1720_v52, 0.0  ;;  %v1723_v60 = vadd.f32 %v8066_v7, %v1722_v57  ;;  %7125 = vmatmul.mubr.msk.f32.gmra.mrb[18].mxu1 %vm1204_vm0, %v3177_v58  ;;  %v3180_v2 = vld [vmem:[#allocation2 + $0xb0] sm:$0xff] }
 0x172   : > { %2928 = vst.msk [vmem:[#allocation2 + $0xd0] sm:$0xff] %vm1204_vm0, %v2672_v55  ;;  %v2673_v61 = vmax.f32 %v1731_v56, 0.0  ;;  %6958 = vmatmul.mubr.msk.bf16.gmra.mrb[132].mxu0 %vm1204_vm0, %v7609_v51  ;;  %v3178_v62 = vld [vmem:[#allocation2 + $0xa0] sm:$0xff] }
 0x173   : > { %2926 = vst.msk [vmem:[#allocation2 + $0xc0] sm:$0xff] %vm1204_vm0, %v2670_v59  ;;  %v2671_v63 = vmax.f32 %v1723_v60, 0.0  ;;  %7127 = vmatprep.mubr.msk.f32.mxu1 %vm1204_vm0, %v3178_v62  ;;  %6961 = vmatprep.mubr.msk.bf16.mxu0 %vm1204_vm0, %v7610_v54  ;;  %v3181_v13 = vld [vmem:[#allocation2 + $0xb8] sm:$0xff] }
 0x174   : > { %2929 = vst.msk [vmem:[#allocation2 + $0xd8] sm:$0xff] %vm1204_vm0, %v2673_v61  ;;  %v3179_v0 = vld [vmem:[#allocation2 + $0xa8] sm:$0xff]  ;;  %v7617_v60 = vld [vmem:[%s7931_s29 + $0x258] sm:$0xff]  }
 0x175   : > { %2927 = vst.msk [vmem:[#allocation2 + $0xc8] sm:$0xff] %vm1204_vm0, %v2671_v63  ;;  %v6855_v1 = vpop.f32.mrb[28].mxu0  ;;  %7128 = vmatmul.mubr.msk.f32.gmra.mrb[20].mxu1 %vm1204_vm0, %v3179_v0  ;;  %v7618_v63 = vld [vmem:[%s7931_s29 + $0x260] sm:$0xff]  }
 0x176   : > { %v1744_v3 = vadd.f32 %v6855_v1, %v8066_v7  ;;  %v1735_v4 = vpop.f32.mrb[29].mxu0  ;;  %7130 = vmatprep.mubr.msk.f32.mxu1 %vm1204_vm0, %v3180_v2 }
 0x177   : > { %v1736_v6 = vadd.f32 %v8066_v7, %v1735_v4  ;;  %v6856_v8 = vpop.f32.mrb[30].mxu0 }
 0x178   : > { %v2676_v10 = vmax.f32 %v1744_v3, 0.0  ;;  %v1747_v11 = vadd.f32 %v6856_v8, %v8066_v7  ;;  %v1738_v12 = vpop.f32.mrb[31].mxu0 }
 0x179   : > { %v2674_v14 = vmax.f32 %v1736_v6, 0.0  ;;  %v1739_v15 = vadd.f32 %v8066_v7, %v1738_v12  ;;  %7131 = vmatmul.mubr.msk.f32.gmra.mrb[22].mxu1 %vm1204_vm0, %v3181_v13  ;;  %v3184_v21 = vld [vmem:[#allocation2 + $0xd0] sm:$0xff] }
 0x17a   : > { %2932 = vst.msk [vmem:[#allocation2 + $0xf0] sm:$0xff] %vm1204_vm0, %v2676_v10  ;;  %v2677_v16 = vmax.f32 %v1747_v11, 0.0  ;;  %6962 = vmatmul.mubr.msk.bf16.gmra.mrb[136].mxu0 %vm1204_vm0, %v7611_v5  ;;  %v3182_v17 = vld [vmem:[#allocation2 + $0xc0] sm:$0xff] }
 0x17b   : > { %2930 = vst.msk [vmem:[#allocation2 + $0xe0] sm:$0xff] %vm1204_vm0, %v2674_v14  ;;  %v2675_v18 = vmax.f32 %v1739_v15, 0.0  ;;  %7133 = vmatprep.mubr.msk.f32.mxu1 %vm1204_vm0, %v3182_v17  ;;  %6965 = vmatprep.mubr.msk.bf16.mxu0 %vm1204_vm0, %v7612_v9  ;;  %v3185_v31 = vld [vmem:[#allocation2 + $0xd8] sm:$0xff]  ;;  %v7619_v15 = vld [vmem:[%s7931_s29 + $0x268] sm:$0xff]  }
 0x17c   : > { %2933 = vst.msk [vmem:[#allocation2 + $0xf8] sm:$0xff] %vm1204_vm0, %v2677_v16  ;;  %v3183_v19 = vld [vmem:[#allocation2 + $0xc8] sm:$0xff] }
 0x17d   : > { %2931 = vst.msk [vmem:[#allocation2 + $0xe8] sm:$0xff] %vm1204_vm0, %v2675_v18  ;;  %v6859_v20 = vpop.f32.mrb[32].mxu0  ;;  %7134 = vmatmul.mubr.msk.f32.gmra.mrb[24].mxu1 %vm1204_vm0, %v3183_v19  ;;  %v7620_v18 = vld [vmem:[%s7931_s29 + $0x270] sm:$0xff]  }
 0x17e   : > { %v1760_v22 = vadd.f32 %v6859_v20, %v8066_v7  ;;  %v1751_v23 = vpop.f32.mrb[33].mxu0  ;;  %7136 = vmatprep.mubr.msk.f32.mxu1 %vm1204_vm0, %v3184_v21 }
 0x17f   : > { %v1752_v25 = vadd.f32 %v8066_v7, %v1751_v23  ;;  %v6860_v26 = vpop.f32.mrb[34].mxu0 }
 0x180   : > { %v2680_v28 = vmax.f32 %v1760_v22, 0.0  ;;  %v1763_v29 = vadd.f32 %v6860_v26, %v8066_v7  ;;  %v1754_v30 = vpop.f32.mrb[35].mxu0 }
 0x181   : > { %v2678_v32 = vmax.f32 %v1752_v25, 0.0  ;;  %v1755_v33 = vadd.f32 %v8066_v7, %v1754_v30  ;;  %7137 = vmatmul.mubr.msk.f32.gmra.mrb[26].mxu1 %vm1204_vm0, %v3185_v31  ;;  %v3188_v39 = vld [vmem:[#allocation2 + $0xf0] sm:$0xff] }
 0x182   : > { %2936 = vst.msk [vmem:[#allocation2 + $0x110] sm:$0xff] %vm1204_vm0, %v2680_v28  ;;  %v2681_v34 = vmax.f32 %v1763_v29, 0.0  ;;  %6966 = vmatmul.mubr.msk.bf16.gmra.mrb[140].mxu0 %vm1204_vm0, %v7613_v24  ;;  %v3186_v35 = vld [vmem:[#allocation2 + $0xe0] sm:$0xff] }
 0x183   : > { %2934 = vst.msk [vmem:[#allocation2 + $0x100] sm:$0xff] %vm1204_vm0, %v2678_v32  ;;  %v2679_v36 = vmax.f32 %v1755_v33, 0.0  ;;  %7139 = vmatprep.mubr.msk.f32.mxu1 %vm1204_vm0, %v3186_v35  ;;  %6969 = vmatprep.mubr.msk.bf16.mxu0 %vm1204_vm0, %v7614_v27  ;;  %v3189_v49 = vld [vmem:[#allocation2 + $0xf8] sm:$0xff] }
 0x184   : > { %2937 = vst.msk [vmem:[#allocation2 + $0x118] sm:$0xff] %vm1204_vm0, %v2681_v34  ;;  %v3187_v37 = vld [vmem:[#allocation2 + $0xe8] sm:$0xff]  ;;  %v7621_v33 = vld [vmem:[%s7931_s29 + $0x278] sm:$0xff]  }
 0x185   : > { %2935 = vst.msk [vmem:[#allocation2 + $0x108] sm:$0xff] %vm1204_vm0, %v2679_v36  ;;  %v6863_v38 = vpop.f32.mrb[36].mxu0  ;;  %7140 = vmatmul.mubr.msk.f32.gmra.mrb[28].mxu1 %vm1204_vm0, %v3187_v37  ;;  %v7622_v36 = vld [vmem:[%s7931_s29 + $0x280] sm:$0xff]  }
 0x186   : > { %v1776_v40 = vadd.f32 %v6863_v38, %v8066_v7  ;;  %v1767_v41 = vpop.f32.mrb[37].mxu0  ;;  %7142 = vmatprep.mubr.msk.f32.mxu1 %vm1204_vm0, %v3188_v39 }
 0x187   : > { %v1768_v43 = vadd.f32 %v8066_v7, %v1767_v41  ;;  %v6864_v44 = vpop.f32.mrb[38].mxu0 }
 0x188   : > { %v2684_v46 = vmax.f32 %v1776_v40, 0.0  ;;  %v1779_v47 = vadd.f32 %v6864_v44, %v8066_v7  ;;  %v1770_v48 = vpop.f32.mrb[39].mxu0 }
 0x189   : > { %v2682_v50 = vmax.f32 %v1768_v43, 0.0  ;;  %v1771_v51 = vadd.f32 %v8066_v7, %v1770_v48  ;;  %7143 = vmatmul.mubr.msk.f32.gmra.mrb[30].mxu1 %vm1204_vm0, %v3189_v49  ;;  %v3192_v57 = vld [vmem:[#allocation2 + $0x110] sm:$0xff] }
 0x18a   : > { %2940 = vst.msk [vmem:[#allocation2 + $0x130] sm:$0xff] %vm1204_vm0, %v2684_v46  ;;  %v2685_v52 = vmax.f32 %v1779_v47, 0.0  ;;  %6970 = vmatmul.mubr.msk.bf16.gmra.mrb[144].mxu0 %vm1204_vm0, %v7615_v42  ;;  %v3190_v53 = vld [vmem:[#allocation2 + $0x100] sm:$0xff] }
 0x18b   : > { %2938 = vst.msk [vmem:[#allocation2 + $0x120] sm:$0xff] %vm1204_vm0, %v2682_v50  ;;  %v2683_v54 = vmax.f32 %v1771_v51, 0.0  ;;  %7145 = vmatprep.mubr.msk.f32.mxu1 %vm1204_vm0, %v3190_v53  ;;  %6973 = vmatprep.mubr.msk.bf16.mxu0 %vm1204_vm0, %v7616_v45  ;;  %v3193_v3 = vld [vmem:[#allocation2 + $0x118] sm:$0xff]  ;;  %v7623_v51 = vld [vmem:[%s7931_s29 + $0x288] sm:$0xff]  }
 0x18c   : > { %2941 = vst.msk [vmem:[#allocation2 + $0x138] sm:$0xff] %vm1204_vm0, %v2685_v52  ;;  %v3191_v55 = vld [vmem:[#allocation2 + $0x108] sm:$0xff] }
 0x18d   : > { %2939 = vst.msk [vmem:[#allocation2 + $0x128] sm:$0xff] %vm1204_vm0, %v2683_v54  ;;  %v6867_v56 = vpop.f32.mrb[40].mxu0  ;;  %7146 = vmatmul.mubr.msk.f32.gmra.mrb[32].mxu1 %vm1204_vm0, %v3191_v55  ;;  %v7624_v54 = vld [vmem:[%s7931_s29 + $0x290] sm:$0xff]  }
 0x18e   : > { %v1792_v58 = vadd.f32 %v6867_v56, %v8066_v7  ;;  %v1783_v59 = vpop.f32.mrb[41].mxu0  ;;  %7148 = vmatprep.mubr.msk.f32.mxu1 %vm1204_vm0, %v3192_v57 }
 0x18f   : > { %v1784_v61 = vadd.f32 %v8066_v7, %v1783_v59  ;;  %v6868_v62 = vpop.f32.mrb[42].mxu0 }
 0x190   : > { %v2688_v0 = vmax.f32 %v1792_v58, 0.0  ;;  %v1795_v1 = vadd.f32 %v6868_v62, %v8066_v7  ;;  %v1786_v2 = vpop.f32.mrb[43].mxu0 }
 0x191   : > { %v2686_v4 = vmax.f32 %v1784_v61, 0.0  ;;  %v1787_v5 = vadd.f32 %v8066_v7, %v1786_v2  ;;  %7149 = vmatmul.mubr.msk.f32.gmra.mrb[34].mxu1 %vm1204_vm0, %v3193_v3  ;;  %v3196_v12 = vld [vmem:[#allocation2 + $0x130] sm:$0xff] }
 0x192   : > { %2944 = vst.msk [vmem:[#allocation2 + $0x150] sm:$0xff] %vm1204_vm0, %v2688_v0  ;;  %v2689_v6 = vmax.f32 %v1795_v1, 0.0  ;;  %6974 = vmatmul.mubr.msk.bf16.gmra.mrb[148].mxu0 %vm1204_vm0, %v7617_v60  ;;  %v3194_v8 = vld [vmem:[#allocation2 + $0x120] sm:$0xff] }
 0x193   : > { %2942 = vst.msk [vmem:[#allocation2 + $0x140] sm:$0xff] %vm1204_vm0, %v2686_v4  ;;  %v2687_v9 = vmax.f32 %v1787_v5, 0.0  ;;  %7151 = vmatprep.mubr.msk.f32.mxu1 %vm1204_vm0, %v3194_v8  ;;  %6977 = vmatprep.mubr.msk.bf16.mxu0 %vm1204_vm0, %v7618_v63  ;;  %v3197_v22 = vld [vmem:[#allocation2 + $0x138] sm:$0xff] }
 0x194   : > { %2945 = vst.msk [vmem:[#allocation2 + $0x158] sm:$0xff] %vm1204_vm0, %v2689_v6  ;;  %v3195_v10 = vld [vmem:[#allocation2 + $0x128] sm:$0xff]  ;;  %v7625_v5 = vld [vmem:[%s7931_s29 + $0x298] sm:$0xff]  }
 0x195   : > { %2943 = vst.msk [vmem:[#allocation2 + $0x148] sm:$0xff] %vm1204_vm0, %v2687_v9  ;;  %v6871_v11 = vpop.f32.mrb[44].mxu0  ;;  %7152 = vmatmul.mubr.msk.f32.gmra.mrb[36].mxu1 %vm1204_vm0, %v3195_v10  ;;  %v7626_v9 = vld [vmem:[%s7931_s29 + $0x2a0] sm:$0xff]  }
 0x196   : > { %v1808_v13 = vadd.f32 %v6871_v11, %v8066_v7  ;;  %v1799_v14 = vpop.f32.mrb[45].mxu0  ;;  %7154 = vmatprep.mubr.msk.f32.mxu1 %vm1204_vm0, %v3196_v12 }
 0x197   : > { %v1800_v16 = vadd.f32 %v8066_v7, %v1799_v14  ;;  %v6872_v17 = vpop.f32.mrb[46].mxu0 }
 0x198   : > { %v2692_v19 = vmax.f32 %v1808_v13, 0.0  ;;  %v1811_v20 = vadd.f32 %v6872_v17, %v8066_v7  ;;  %v1802_v21 = vpop.f32.mrb[47].mxu0 }
 0x199   : > { %v2690_v23 = vmax.f32 %v1800_v16, 0.0  ;;  %v1803_v24 = vadd.f32 %v8066_v7, %v1802_v21  ;;  %7155 = vmatmul.mubr.msk.f32.gmra.mrb[38].mxu1 %vm1204_vm0, %v3197_v22  ;;  %v3200_v30 = vld [vmem:[#allocation2 + $0x150] sm:$0xff] }
 0x19a   : > { %2948 = vst.msk [vmem:[#allocation2 + $0x170] sm:$0xff] %vm1204_vm0, %v2692_v19  ;;  %v2693_v25 = vmax.f32 %v1811_v20, 0.0  ;;  %6978 = vmatmul.mubr.msk.bf16.gmra.mrb[152].mxu0 %vm1204_vm0, %v7619_v15  ;;  %v3198_v26 = vld [vmem:[#allocation2 + $0x140] sm:$0xff] }
 0x19b   : > { %2946 = vst.msk [vmem:[#allocation2 + $0x160] sm:$0xff] %vm1204_vm0, %v2690_v23  ;;  %v2691_v27 = vmax.f32 %v1803_v24, 0.0  ;;  %7157 = vmatprep.mubr.msk.f32.mxu1 %vm1204_vm0, %v3198_v26  ;;  %6981 = vmatprep.mubr.msk.bf16.mxu0 %vm1204_vm0, %v7620_v18  ;;  %v3201_v40 = vld [vmem:[#allocation2 + $0x158] sm:$0xff]  ;;  %v7627_v24 = vld [vmem:[%s7931_s29 + $0x2a8] sm:$0xff]  }
 0x19c   : > { %2949 = vst.msk [vmem:[#allocation2 + $0x178] sm:$0xff] %vm1204_vm0, %v2693_v25  ;;  %v3199_v28 = vld [vmem:[#allocation2 + $0x148] sm:$0xff] }
 0x19d   : > { %2947 = vst.msk [vmem:[#allocation2 + $0x168] sm:$0xff] %vm1204_vm0, %v2691_v27  ;;  %v6875_v29 = vpop.f32.mrb[48].mxu0  ;;  %7158 = vmatmul.mubr.msk.f32.gmra.mrb[40].mxu1 %vm1204_vm0, %v3199_v28  ;;  %v7628_v27 = vld [vmem:[%s7931_s29 + $0x2b0] sm:$0xff]  }
 0x19e   : > { %v1824_v31 = vadd.f32 %v6875_v29, %v8066_v7  ;;  %v1815_v32 = vpop.f32.mrb[49].mxu0  ;;  %7160 = vmatprep.mubr.msk.f32.mxu1 %vm1204_vm0, %v3200_v30 }
 0x19f   : > { %v1816_v34 = vadd.f32 %v8066_v7, %v1815_v32  ;;  %v6876_v35 = vpop.f32.mrb[50].mxu0 }
 0x1a0   : > { %v2696_v37 = vmax.f32 %v1824_v31, 0.0  ;;  %v1827_v38 = vadd.f32 %v6876_v35, %v8066_v7  ;;  %v1818_v39 = vpop.f32.mrb[51].mxu0 }
 0x1a1   : > { %v2694_v41 = vmax.f32 %v1816_v34, 0.0  ;;  %v1819_v42 = vadd.f32 %v8066_v7, %v1818_v39  ;;  %7161 = vmatmul.mubr.msk.f32.gmra.mrb[42].mxu1 %vm1204_vm0, %v3201_v40  ;;  %v3204_v48 = vld [vmem:[#allocation2 + $0x170] sm:$0xff] }
 0x1a2   : > { %2952 = vst.msk [vmem:[#allocation2 + $0x190] sm:$0xff] %vm1204_vm0, %v2696_v37  ;;  %v2697_v43 = vmax.f32 %v1827_v38, 0.0  ;;  %6982 = vmatmul.mubr.msk.bf16.gmra.mrb[156].mxu0 %vm1204_vm0, %v7621_v33  ;;  %v3202_v44 = vld [vmem:[#allocation2 + $0x160] sm:$0xff] }
 0x1a3   : > { %2950 = vst.msk [vmem:[#allocation2 + $0x180] sm:$0xff] %vm1204_vm0, %v2694_v41  ;;  %v2695_v45 = vmax.f32 %v1819_v42, 0.0  ;;  %7163 = vmatprep.mubr.msk.f32.mxu1 %vm1204_vm0, %v3202_v44  ;;  %6985 = vmatprep.mubr.msk.bf16.mxu0 %vm1204_vm0, %v7622_v36  ;;  %v3205_v58 = vld [vmem:[#allocation2 + $0x178] sm:$0xff] }
 0x1a4   : > { %2953 = vst.msk [vmem:[#allocation2 + $0x198] sm:$0xff] %vm1204_vm0, %v2697_v43  ;;  %v3203_v46 = vld [vmem:[#allocation2 + $0x168] sm:$0xff]  ;;  %v7629_v42 = vld [vmem:[%s7931_s29 + $0x2b8] sm:$0xff]  }
 0x1a5   : > { %2951 = vst.msk [vmem:[#allocation2 + $0x188] sm:$0xff] %vm1204_vm0, %v2695_v45  ;;  %v6879_v47 = vpop.f32.mrb[52].mxu0  ;;  %7164 = vmatmul.mubr.msk.f32.gmra.mrb[44].mxu1 %vm1204_vm0, %v3203_v46  ;;  %v7630_v45 = vld [vmem:[%s7931_s29 + $0x2c0] sm:$0xff]  }
 0x1a6   : > { %v1840_v49 = vadd.f32 %v6879_v47, %v8066_v7  ;;  %v1831_v50 = vpop.f32.mrb[53].mxu0  ;;  %7166 = vmatprep.mubr.msk.f32.mxu1 %vm1204_vm0, %v3204_v48 }
 0x1a7   : > { %v1832_v52 = vadd.f32 %v8066_v7, %v1831_v50  ;;  %v6880_v53 = vpop.f32.mrb[54].mxu0 }
 0x1a8   : > { %v2700_v55 = vmax.f32 %v1840_v49, 0.0  ;;  %v1843_v56 = vadd.f32 %v6880_v53, %v8066_v7  ;;  %v1834_v57 = vpop.f32.mrb[55].mxu0 }
 0x1a9   : > { %v2698_v59 = vmax.f32 %v1832_v52, 0.0  ;;  %v1835_v60 = vadd.f32 %v8066_v7, %v1834_v57  ;;  %7167 = vmatmul.mubr.msk.f32.gmra.mrb[46].mxu1 %vm1204_vm0, %v3205_v58  ;;  %v3208_v2 = vld [vmem:[#allocation2 + $0x190] sm:$0xff] }
 0x1aa   : > { %2956 = vst.msk [vmem:[#allocation2 + $0x1b0] sm:$0xff] %vm1204_vm0, %v2700_v55  ;;  %v2701_v61 = vmax.f32 %v1843_v56, 0.0  ;;  %6986 = vmatmul.mubr.msk.bf16.gmra.mrb[160].mxu0 %vm1204_vm0, %v7623_v51  ;;  %v3206_v62 = vld [vmem:[#allocation2 + $0x180] sm:$0xff] }
 0x1ab   : > { %2954 = vst.msk [vmem:[#allocation2 + $0x1a0] sm:$0xff] %vm1204_vm0, %v2698_v59  ;;  %v2699_v63 = vmax.f32 %v1835_v60, 0.0  ;;  %7169 = vmatprep.mubr.msk.f32.mxu1 %vm1204_vm0, %v3206_v62  ;;  %6989 = vmatprep.mubr.msk.bf16.mxu0 %vm1204_vm0, %v7624_v54  ;;  %v3209_v13 = vld [vmem:[#allocation2 + $0x198] sm:$0xff]  ;;  %v7631_v60 = vld [vmem:[%s7931_s29 + $0x2c8] sm:$0xff]  }
 0x1ac   : > { %2957 = vst.msk [vmem:[#allocation2 + $0x1b8] sm:$0xff] %vm1204_vm0, %v2701_v61  ;;  %v3207_v0 = vld [vmem:[#allocation2 + $0x188] sm:$0xff] }
 0x1ad   : > { %2955 = vst.msk [vmem:[#allocation2 + $0x1a8] sm:$0xff] %vm1204_vm0, %v2699_v63  ;;  %v6883_v1 = vpop.f32.mrb[56].mxu0  ;;  %7170 = vmatmul.mubr.msk.f32.gmra.mrb[48].mxu1 %vm1204_vm0, %v3207_v0  ;;  %v7632_v63 = vld [vmem:[%s7931_s29 + $0x2d0] sm:$0xff]  }
 0x1ae   : > { %v1856_v3 = vadd.f32 %v6883_v1, %v8066_v7  ;;  %v1847_v4 = vpop.f32.mrb[57].mxu0  ;;  %7172 = vmatprep.mubr.msk.f32.mxu1 %vm1204_vm0, %v3208_v2 }
 0x1af   : > { %v1848_v6 = vadd.f32 %v8066_v7, %v1847_v4  ;;  %v6884_v8 = vpop.f32.mrb[58].mxu0 }
 0x1b0   : > { %v2704_v10 = vmax.f32 %v1856_v3, 0.0  ;;  %v1859_v11 = vadd.f32 %v6884_v8, %v8066_v7  ;;  %v1850_v12 = vpop.f32.mrb[59].mxu0 }
 0x1b1   : > { %v2702_v14 = vmax.f32 %v1848_v6, 0.0  ;;  %v1851_v15 = vadd.f32 %v8066_v7, %v1850_v12  ;;  %7173 = vmatmul.mubr.msk.f32.gmra.mrb[50].mxu1 %vm1204_vm0, %v3209_v13  ;;  %v3212_v21 = vld [vmem:[#allocation2 + $0x1b0] sm:$0xff] }
 0x1b2   : > { %2960 = vst.msk [vmem:[#allocation2 + $0x1d0] sm:$0xff] %vm1204_vm0, %v2704_v10  ;;  %v2705_v16 = vmax.f32 %v1859_v11, 0.0  ;;  %6990 = vmatmul.mubr.msk.bf16.gmra.mrb[164].mxu0 %vm1204_vm0, %v7625_v5  ;;  %v3210_v17 = vld [vmem:[#allocation2 + $0x1a0] sm:$0xff] }
 0x1b3   : > { %2958 = vst.msk [vmem:[#allocation2 + $0x1c0] sm:$0xff] %vm1204_vm0, %v2702_v14  ;;  %v2703_v18 = vmax.f32 %v1851_v15, 0.0  ;;  %7175 = vmatprep.mubr.msk.f32.mxu1 %vm1204_vm0, %v3210_v17  ;;  %6993 = vmatprep.mubr.msk.bf16.mxu0 %vm1204_vm0, %v7626_v9  ;;  %v3213_v31 = vld [vmem:[#allocation2 + $0x1b8] sm:$0xff] }
 0x1b4   : > { %2961 = vst.msk [vmem:[#allocation2 + $0x1d8] sm:$0xff] %vm1204_vm0, %v2705_v16  ;;  %v3211_v19 = vld [vmem:[#allocation2 + $0x1a8] sm:$0xff]  ;;  %v7633_v15 = vld [vmem:[%s7931_s29 + $0x2d8] sm:$0xff]  }
 0x1b5   : > { %2959 = vst.msk [vmem:[#allocation2 + $0x1c8] sm:$0xff] %vm1204_vm0, %v2703_v18  ;;  %v6887_v20 = vpop.f32.mrb[60].mxu0  ;;  %7176 = vmatmul.mubr.msk.f32.gmra.mrb[52].mxu1 %vm1204_vm0, %v3211_v19  ;;  %v7634_v18 = vld [vmem:[%s7931_s29 + $0x2e0] sm:$0xff]  }
 0x1b6   : > { %v1872_v22 = vadd.f32 %v6887_v20, %v8066_v7  ;;  %v1863_v23 = vpop.f32.mrb[61].mxu0  ;;  %7178 = vmatprep.mubr.msk.f32.mxu1 %vm1204_vm0, %v3212_v21 }
 0x1b7   : > { %v1864_v25 = vadd.f32 %v8066_v7, %v1863_v23  ;;  %v6888_v26 = vpop.f32.mrb[62].mxu0 }
 0x1b8   : > { %v2708_v28 = vmax.f32 %v1872_v22, 0.0  ;;  %v1875_v29 = vadd.f32 %v6888_v26, %v8066_v7  ;;  %v1866_v30 = vpop.f32.mrb[63].mxu0 }
 0x1b9   : > { %v2706_v32 = vmax.f32 %v1864_v25, 0.0  ;;  %v1867_v33 = vadd.f32 %v8066_v7, %v1866_v30  ;;  %7179 = vmatmul.mubr.msk.f32.gmra.mrb[54].mxu1 %vm1204_vm0, %v3213_v31  ;;  %v3216_v39 = vld [vmem:[#allocation2 + $0x1d0] sm:$0xff]  ;;  %v8367_v30 = vld [vmem:[#allocation5] ss:$0 sm:$0xff] }
 0x1ba   : > { %2964 = vst.msk [vmem:[#allocation2 + $0x1f0] sm:$0xff] %vm1204_vm0, %v2708_v28  ;;  %v2709_v34 = vmax.f32 %v1875_v29, 0.0  ;;  %6994 = vmatmul.mubr.msk.bf16.gmra.mrb[168].mxu0 %vm1204_vm0, %v7627_v24  ;;  %v3214_v35 = vld [vmem:[#allocation2 + $0x1c0] sm:$0xff] }
 0x1bb   : > { %2962 = vst.msk [vmem:[#allocation2 + $0x1e0] sm:$0xff] %vm1204_vm0, %v2706_v32  ;;  %v2707_v36 = vmax.f32 %v1867_v33, 0.0  ;;  %7181 = vmatprep.mubr.msk.f32.mxu1 %vm1204_vm0, %v3214_v35  ;;  %6997 = vmatprep.mubr.msk.bf16.mxu0 %vm1204_vm0, %v7628_v27  ;;  %v3217_v49 = vld [vmem:[#allocation2 + $0x1d8] sm:$0xff]  ;;  %v7635_v33 = vld [vmem:[%s7931_s29 + $0x2e8] sm:$0xff]  }
 0x1bc   : > { %2965 = vst.msk [vmem:[#allocation2 + $0x1f8] sm:$0xff] %vm1204_vm0, %v2709_v34  ;;  %v3215_v37 = vld [vmem:[#allocation2 + $0x1c8] sm:$0xff] }
 0x1bd   : > { %2963 = vst.msk [vmem:[#allocation2 + $0x1e8] sm:$0xff] %vm1204_vm0, %v2707_v36  ;;  %v6891_v38 = vpop.f32.mrb[64].mxu0  ;;  %7182 = vmatmul.mubr.msk.f32.gmra.mrb[56].mxu1 %vm1204_vm0, %v3215_v37  ;;  %v7636_v36 = vld [vmem:[%s7931_s29 + $0x2f0] sm:$0xff]  }
 0x1be   : > { %v1888_v40 = vadd.f32 %v6891_v38, %v8066_v7  ;;  %v1879_v41 = vpop.f32.mrb[65].mxu0  ;;  %7184 = vmatprep.mubr.msk.f32.mxu1 %vm1204_vm0, %v3216_v39 }
 0x1bf   : > { %v1880_v43 = vadd.f32 %v8066_v7, %v1879_v41  ;;  %v6892_v44 = vpop.f32.mrb[66].mxu0 }
 0x1c0   : > { %v2712_v46 = vmax.f32 %v1888_v40, 0.0  ;;  %v1891_v47 = vadd.f32 %v6892_v44, %v8066_v7  ;;  %v1882_v48 = vpop.f32.mrb[67].mxu0 }
 0x1c1   : > { %v2710_v50 = vmax.f32 %v1880_v43, 0.0  ;;  %v1883_v51 = vadd.f32 %v8066_v7, %v1882_v48  ;;  %7185 = vmatmul.mubr.msk.f32.gmra.mrb[58].mxu1 %vm1204_vm0, %v3217_v49  ;;  %v3220_v57 = vld [vmem:[#allocation2 + $0x1f0] sm:$0xff] }
 0x1c2   : > { %2968 = vst.msk [vmem:[#allocation2 + $0x210] sm:$0xff] %vm1204_vm0, %v2712_v46  ;;  %v2713_v52 = vmax.f32 %v1891_v47, 0.0  ;;  %6998 = vmatmul.mubr.msk.bf16.gmra.mrb[172].mxu0 %vm1204_vm0, %v7629_v42  ;;  %v3218_v53 = vld [vmem:[#allocation2 + $0x1e0] sm:$0xff] }
 0x1c3   : > { %2966 = vst.msk [vmem:[#allocation2 + $0x200] sm:$0xff] %vm1204_vm0, %v2710_v50  ;;  %v2711_v54 = vmax.f32 %v1883_v51, 0.0  ;;  %7187 = vmatprep.mubr.msk.f32.mxu1 %vm1204_vm0, %v3218_v53  ;;  %7001 = vmatprep.mubr.msk.bf16.mxu0 %vm1204_vm0, %v7630_v45  ;;  %v3221_v3 = vld [vmem:[#allocation2 + $0x1f8] sm:$0xff] }
 0x1c4   : > { %2969 = vst.msk [vmem:[#allocation2 + $0x218] sm:$0xff] %vm1204_vm0, %v2713_v52  ;;  %v3219_v55 = vld [vmem:[#allocation2 + $0x1e8] sm:$0xff]  ;;  %v7637_v51 = vld [vmem:[%s7931_s29 + $0x2f8] sm:$0xff]  }
 0x1c5   : > { %2967 = vst.msk [vmem:[#allocation2 + $0x208] sm:$0xff] %vm1204_vm0, %v2711_v54  ;;  %v6895_v56 = vpop.f32.mrb[68].mxu0  ;;  %7188 = vmatmul.mubr.msk.f32.gmra.mrb[60].mxu1 %vm1204_vm0, %v3219_v55  ;;  %v7638_v54 = vld [vmem:[%s7931_s29 + $0x300] sm:$0xff]  }
 0x1c6   : > { %v1904_v58 = vadd.f32 %v6895_v56, %v8066_v7  ;;  %v1895_v59 = vpop.f32.mrb[69].mxu0  ;;  %7190 = vmatprep.mubr.msk.f32.mxu1 %vm1204_vm0, %v3220_v57 }
 0x1c7   : > { %v1896_v61 = vadd.f32 %v8066_v7, %v1895_v59  ;;  %v6896_v62 = vpop.f32.mrb[70].mxu0 }
 0x1c8   : > { %v2716_v0 = vmax.f32 %v1904_v58, 0.0  ;;  %v1907_v1 = vadd.f32 %v6896_v62, %v8066_v7  ;;  %v1898_v2 = vpop.f32.mrb[71].mxu0 }
 0x1c9   : > { %v2714_v4 = vmax.f32 %v1896_v61, 0.0  ;;  %v1899_v5 = vadd.f32 %v8066_v7, %v1898_v2  ;;  %7191 = vmatmul.mubr.msk.f32.gmra.mrb[62].mxu1 %vm1204_vm0, %v3221_v3  ;;  %v3224_v12 = vld [vmem:[#allocation2 + $0x210] sm:$0xff] }
 0x1ca   : > { %2972 = vst.msk [vmem:[#allocation2 + $0x230] sm:$0xff] %vm1204_vm0, %v2716_v0  ;;  %v2717_v6 = vmax.f32 %v1907_v1, 0.0  ;;  %7002 = vmatmul.mubr.msk.bf16.gmra.mrb[176].mxu0 %vm1204_vm0, %v7631_v60  ;;  %v3222_v8 = vld [vmem:[#allocation2 + $0x200] sm:$0xff] }
 0x1cb   : > { %2970 = vst.msk [vmem:[#allocation2 + $0x220] sm:$0xff] %vm1204_vm0, %v2714_v4  ;;  %v2715_v9 = vmax.f32 %v1899_v5, 0.0  ;;  %7193 = vmatprep.mubr.msk.f32.mxu1 %vm1204_vm0, %v3222_v8  ;;  %7005 = vmatprep.mubr.msk.bf16.mxu0 %vm1204_vm0, %v7632_v63  ;;  %v3225_v22 = vld [vmem:[#allocation2 + $0x218] sm:$0xff]  ;;  %v7639_v5 = vld [vmem:[%s7931_s29 + $0x308] sm:$0xff]  }
 0x1cc   : > { %2973 = vst.msk [vmem:[#allocation2 + $0x238] sm:$0xff] %vm1204_vm0, %v2717_v6  ;;  %v3223_v10 = vld [vmem:[#allocation2 + $0x208] sm:$0xff] }
 0x1cd   : > { %2971 = vst.msk [vmem:[#allocation2 + $0x228] sm:$0xff] %vm1204_vm0, %v2715_v9  ;;  %v6899_v11 = vpop.f32.mrb[72].mxu0  ;;  %7194 = vmatmul.mubr.msk.f32.gmra.mrb[64].mxu1 %vm1204_vm0, %v3223_v10  ;;  %v7640_v9 = vld [vmem:[%s7931_s29 + $0x310] sm:$0xff]  }
 0x1ce   : > { %v1920_v13 = vadd.f32 %v6899_v11, %v8066_v7  ;;  %v1911_v14 = vpop.f32.mrb[73].mxu0  ;;  %7196 = vmatprep.mubr.msk.f32.mxu1 %vm1204_vm0, %v3224_v12 }
 0x1cf   : > { %v1912_v16 = vadd.f32 %v8066_v7, %v1911_v14  ;;  %v6900_v17 = vpop.f32.mrb[74].mxu0 }
 0x1d0   : > { %v2720_v19 = vmax.f32 %v1920_v13, 0.0  ;;  %v1923_v20 = vadd.f32 %v6900_v17, %v8066_v7  ;;  %v1914_v21 = vpop.f32.mrb[75].mxu0 }
 0x1d1   : > { %v2718_v23 = vmax.f32 %v1912_v16, 0.0  ;;  %v1915_v24 = vadd.f32 %v8066_v7, %v1914_v21  ;;  %7197 = vmatmul.mubr.msk.f32.gmra.mrb[66].mxu1 %vm1204_vm0, %v3225_v22  ;;  %v3228_v29 = vld [vmem:[#allocation2 + $0x230] sm:$0xff] }
 0x1d2   : > { %2976 = vst.msk [vmem:[#allocation2 + $0x250] sm:$0xff] %vm1204_vm0, %v2720_v19  ;;  %v2721_v25 = vmax.f32 %v1923_v20, 0.0  ;;  %7006 = vmatmul.mubr.msk.bf16.gmra.mrb[180].mxu0 %vm1204_vm0, %v7633_v15  ;;  %v3226_v26 = vld [vmem:[#allocation2 + $0x220] sm:$0xff] }
 0x1d3   : > { %2974 = vst.msk [vmem:[#allocation2 + $0x240] sm:$0xff] %vm1204_vm0, %v2718_v23  ;;  %v2719_v27 = vmax.f32 %v1915_v24, 0.0  ;;  %7199 = vmatprep.mubr.msk.f32.mxu1 %vm1204_vm0, %v3226_v26  ;;  %7009 = vmatprep.mubr.msk.bf16.mxu0 %vm1204_vm0, %v7634_v18  ;;  %v3229_v40 = vld [vmem:[#allocation2 + $0x238] sm:$0xff] }
 0x1d4   : > { %2977 = vst.msk [vmem:[#allocation2 + $0x258] sm:$0xff] %vm1204_vm0, %v2721_v25  ;;  %v3227_v7 = vld [vmem:[#allocation2 + $0x228] sm:$0xff]  ;;  %v7641_v24 = vld [vmem:[%s7931_s29 + $0x318] sm:$0xff]  }
 0x1d5   : > { %2975 = vst.msk [vmem:[#allocation2 + $0x248] sm:$0xff] %vm1204_vm0, %v2719_v27  ;;  %v6903_v28 = vpop.f32.mrb[76].mxu0  ;;  %7200 = vmatmul.mubr.msk.f32.gmra.mrb[68].mxu1 %vm1204_vm0, %v3227_v7  ;;  %v7642_v27 = vld [vmem:[%s7931_s29 + $0x320] sm:$0xff]  }
 0x1d6   : > { %v1936_v31 = vadd.f32 %v8367_v30, %v6903_v28  ;;  %v1927_v32 = vpop.f32.mrb[77].mxu0  ;;  %7202 = vmatprep.mubr.msk.f32.mxu1 %vm1204_vm0, %v3228_v29 }
 0x1d7   : > { %v1928_v34 = vadd.f32 %v8367_v30, %v1927_v32  ;;  %v6904_v35 = vpop.f32.mrb[78].mxu0 }
 0x1d8   : > { %v2724_v37 = vmax.f32 %v1936_v31, 0.0  ;;  %v1939_v38 = vadd.f32 %v8367_v30, %v6904_v35  ;;  %v1930_v39 = vpop.f32.mrb[79].mxu0 }
 0x1d9   : > { %v2722_v41 = vmax.f32 %v1928_v34, 0.0  ;;  %v1931_v42 = vadd.f32 %v8367_v30, %v1930_v39  ;;  %7203 = vmatmul.mubr.msk.f32.gmra.mrb[70].mxu1 %vm1204_vm0, %v3229_v40  ;;  %v3232_v48 = vld [vmem:[#allocation2 + $0x250] sm:$0xff] }
 0x1da   : > { %2980 = vst.msk [vmem:[#allocation2 + $0x270] sm:$0xff] %vm1204_vm0, %v2724_v37  ;;  %v2725_v43 = vmax.f32 %v1939_v38, 0.0  ;;  %7010 = vmatmul.mubr.msk.bf16.gmra.mrb[184].mxu0 %vm1204_vm0, %v7635_v33  ;;  %v3230_v44 = vld [vmem:[#allocation2 + $0x240] sm:$0xff] }
 0x1db   : > { %2978 = vst.msk [vmem:[#allocation2 + $0x260] sm:$0xff] %vm1204_vm0, %v2722_v41  ;;  %v2723_v45 = vmax.f32 %v1931_v42, 0.0  ;;  %7205 = vmatprep.mubr.msk.f32.mxu1 %vm1204_vm0, %v3230_v44  ;;  %7013 = vmatprep.mubr.msk.bf16.mxu0 %vm1204_vm0, %v7636_v36  ;;  %v3233_v58 = vld [vmem:[#allocation2 + $0x258] sm:$0xff]  ;;  %v7643_v42 = vld [vmem:[%s7931_s29 + $0x328] sm:$0xff]  }
 0x1dc   : > { %2981 = vst.msk [vmem:[#allocation2 + $0x278] sm:$0xff] %vm1204_vm0, %v2725_v43  ;;  %v3231_v46 = vld [vmem:[#allocation2 + $0x248] sm:$0xff] }
 0x1dd   : > { %2979 = vst.msk [vmem:[#allocation2 + $0x268] sm:$0xff] %vm1204_vm0, %v2723_v45  ;;  %v6907_v47 = vpop.f32.mrb[80].mxu0  ;;  %7206 = vmatmul.mubr.msk.f32.gmra.mrb[72].mxu1 %vm1204_vm0, %v3231_v46  ;;  %v7644_v45 = vld [vmem:[%s7931_s29 + $0x330] sm:$0xff]  }
 0x1de   : > { %v1952_v49 = vadd.f32 %v8367_v30, %v6907_v47  ;;  %v1943_v50 = vpop.f32.mrb[81].mxu0  ;;  %7208 = vmatprep.mubr.msk.f32.mxu1 %vm1204_vm0, %v3232_v48 }
 0x1df   : > { %v1944_v52 = vadd.f32 %v8367_v30, %v1943_v50  ;;  %v6908_v53 = vpop.f32.mrb[82].mxu0 }
 0x1e0   : > { %v2728_v55 = vmax.f32 %v1952_v49, 0.0  ;;  %v1955_v56 = vadd.f32 %v8367_v30, %v6908_v53  ;;  %v1946_v57 = vpop.f32.mrb[83].mxu0 }
 0x1e1   : > { %v2726_v59 = vmax.f32 %v1944_v52, 0.0  ;;  %v1947_v60 = vadd.f32 %v8367_v30, %v1946_v57  ;;  %7209 = vmatmul.mubr.msk.f32.gmra.mrb[74].mxu1 %vm1204_vm0, %v3233_v58  ;;  %v3236_v2 = vld [vmem:[#allocation2 + $0x270] sm:$0xff] }
 0x1e2   : > { %2984 = vst.msk [vmem:[#allocation2 + $0x290] sm:$0xff] %vm1204_vm0, %v2728_v55  ;;  %v2729_v61 = vmax.f32 %v1955_v56, 0.0  ;;  %7014 = vmatmul.mubr.msk.bf16.gmra.mrb[188].mxu0 %vm1204_vm0, %v7637_v51  ;;  %v3234_v62 = vld [vmem:[#allocation2 + $0x260] sm:$0xff] }
 0x1e3   : > { %2982 = vst.msk [vmem:[#allocation2 + $0x280] sm:$0xff] %vm1204_vm0, %v2726_v59  ;;  %v2727_v63 = vmax.f32 %v1947_v60, 0.0  ;;  %7211 = vmatprep.mubr.msk.f32.mxu1 %vm1204_vm0, %v3234_v62  ;;  %7017 = vmatprep.mubr.msk.bf16.mxu0 %vm1204_vm0, %v7638_v54  ;;  %v3237_v13 = vld [vmem:[#allocation2 + $0x278] sm:$0xff] }
 0x1e4   : > { %2985 = vst.msk [vmem:[#allocation2 + $0x298] sm:$0xff] %vm1204_vm0, %v2729_v61  ;;  %v3235_v0 = vld [vmem:[#allocation2 + $0x268] sm:$0xff]  ;;  %v7645_v60 = vld [vmem:[%s7931_s29 + $0x338] sm:$0xff]  }
 0x1e5   : > { %2983 = vst.msk [vmem:[#allocation2 + $0x288] sm:$0xff] %vm1204_vm0, %v2727_v63  ;;  %v6911_v1 = vpop.f32.mrb[84].mxu0  ;;  %7212 = vmatmul.mubr.msk.f32.gmra.mrb[76].mxu1 %vm1204_vm0, %v3235_v0  ;;  %v7646_v63 = vld [vmem:[%s7931_s29 + $0x340] sm:$0xff]  }
 0x1e6   : > { %v1968_v3 = vadd.f32 %v8367_v30, %v6911_v1  ;;  %v1959_v4 = vpop.f32.mrb[85].mxu0  ;;  %7214 = vmatprep.mubr.msk.f32.mxu1 %vm1204_vm0, %v3236_v2 }
 0x1e7   : > { %v1960_v6 = vadd.f32 %v8367_v30, %v1959_v4  ;;  %v6912_v8 = vpop.f32.mrb[86].mxu0 }
 0x1e8   : > { %v2732_v10 = vmax.f32 %v1968_v3, 0.0  ;;  %v1971_v11 = vadd.f32 %v8367_v30, %v6912_v8  ;;  %v1962_v12 = vpop.f32.mrb[87].mxu0 }
 0x1e9   : > { %v2730_v14 = vmax.f32 %v1960_v6, 0.0  ;;  %v1963_v15 = vadd.f32 %v8367_v30, %v1962_v12  ;;  %7215 = vmatmul.mubr.msk.f32.gmra.mrb[78].mxu1 %vm1204_vm0, %v3237_v13  ;;  %v3240_v21 = vld [vmem:[#allocation2 + $0x290] sm:$0xff] }
 0x1ea   : > { %2988 = vst.msk [vmem:[#allocation2 + $0x2b0] sm:$0xff] %vm1204_vm0, %v2732_v10  ;;  %v2733_v16 = vmax.f32 %v1971_v11, 0.0  ;;  %7018 = vmatmul.mubr.msk.bf16.gmra.mrb[192].mxu0 %vm1204_vm0, %v7639_v5  ;;  %v3238_v17 = vld [vmem:[#allocation2 + $0x280] sm:$0xff] }
 0x1eb   : > { %2986 = vst.msk [vmem:[#allocation2 + $0x2a0] sm:$0xff] %vm1204_vm0, %v2730_v14  ;;  %v2731_v18 = vmax.f32 %v1963_v15, 0.0  ;;  %7217 = vmatprep.mubr.msk.f32.mxu1 %vm1204_vm0, %v3238_v17  ;;  %7021 = vmatprep.mubr.msk.bf16.mxu0 %vm1204_vm0, %v7640_v9  ;;  %v3241_v31 = vld [vmem:[#allocation2 + $0x298] sm:$0xff]  ;;  %v7647_v15 = vld [vmem:[%s7931_s29 + $0x348] sm:$0xff]  }
 0x1ec   : > { %2989 = vst.msk [vmem:[#allocation2 + $0x2b8] sm:$0xff] %vm1204_vm0, %v2733_v16  ;;  %v3239_v19 = vld [vmem:[#allocation2 + $0x288] sm:$0xff] }
 0x1ed   : > { %2987 = vst.msk [vmem:[#allocation2 + $0x2a8] sm:$0xff] %vm1204_vm0, %v2731_v18  ;;  %v6915_v20 = vpop.f32.mrb[88].mxu0  ;;  %7218 = vmatmul.mubr.msk.f32.gmra.mrb[80].mxu1 %vm1204_vm0, %v3239_v19  ;;  %v7648_v18 = vld [vmem:[%s7931_s29 + $0x350] sm:$0xff]  }
 0x1ee   : > { %v1984_v22 = vadd.f32 %v8367_v30, %v6915_v20  ;;  %v1975_v23 = vpop.f32.mrb[89].mxu0  ;;  %7220 = vmatprep.mubr.msk.f32.mxu1 %vm1204_vm0, %v3240_v21 }
 0x1ef   : > { %v1976_v25 = vadd.f32 %v8367_v30, %v1975_v23  ;;  %v6916_v26 = vpop.f32.mrb[90].mxu0 }
 0x1f0   : > { %v2736_v7 = vmax.f32 %v1984_v22, 0.0  ;;  %v1987_v28 = vadd.f32 %v8367_v30, %v6916_v26  ;;  %v1978_v29 = vpop.f32.mrb[91].mxu0 }
 0x1f1   : > { %v2734_v32 = vmax.f32 %v1976_v25, 0.0  ;;  %v1979_v33 = vadd.f32 %v8367_v30, %v1978_v29  ;;  %7221 = vmatmul.mubr.msk.f32.gmra.mrb[82].mxu1 %vm1204_vm0, %v3241_v31  ;;  %v3244_v39 = vld [vmem:[#allocation2 + $0x2b0] sm:$0xff] }
 0x1f2   : > { %2992 = vst.msk [vmem:[#allocation2 + $0x2d0] sm:$0xff] %vm1204_vm0, %v2736_v7  ;;  %v2737_v34 = vmax.f32 %v1987_v28, 0.0  ;;  %7022 = vmatmul.mubr.msk.bf16.gmra.mrb[196].mxu0 %vm1204_vm0, %v7641_v24  ;;  %v3242_v35 = vld [vmem:[#allocation2 + $0x2a0] sm:$0xff] }
 0x1f3   : > { %2990 = vst.msk [vmem:[#allocation2 + $0x2c0] sm:$0xff] %vm1204_vm0, %v2734_v32  ;;  %v2735_v36 = vmax.f32 %v1979_v33, 0.0  ;;  %7223 = vmatprep.mubr.msk.f32.mxu1 %vm1204_vm0, %v3242_v35  ;;  %7025 = vmatprep.mubr.msk.bf16.mxu0 %vm1204_vm0, %v7642_v27  ;;  %v3245_v49 = vld [vmem:[#allocation2 + $0x2b8] sm:$0xff] }
 0x1f4   : > { %2993 = vst.msk [vmem:[#allocation2 + $0x2d8] sm:$0xff] %vm1204_vm0, %v2737_v34  ;;  %v3243_v37 = vld [vmem:[#allocation2 + $0x2a8] sm:$0xff]  ;;  %v7649_v33 = vld [vmem:[%s7931_s29 + $0x358] sm:$0xff]  }
 0x1f5   : > { %2991 = vst.msk [vmem:[#allocation2 + $0x2c8] sm:$0xff] %vm1204_vm0, %v2735_v36  ;;  %v6919_v38 = vpop.f32.mrb[92].mxu0  ;;  %7224 = vmatmul.mubr.msk.f32.gmra.mrb[84].mxu1 %vm1204_vm0, %v3243_v37  ;;  %v7650_v36 = vld [vmem:[%s7931_s29 + $0x360] sm:$0xff]  }
 0x1f6   : > { %v2000_v40 = vadd.f32 %v8367_v30, %v6919_v38  ;;  %v1991_v41 = vpop.f32.mrb[93].mxu0  ;;  %7226 = vmatprep.mubr.msk.f32.mxu1 %vm1204_vm0, %v3244_v39 }
 0x1f7   : > { %v1992_v43 = vadd.f32 %v8367_v30, %v1991_v41  ;;  %v6920_v44 = vpop.f32.mrb[94].mxu0 }
 0x1f8   : > { %v2740_v46 = vmax.f32 %v2000_v40, 0.0  ;;  %v2003_v47 = vadd.f32 %v8367_v30, %v6920_v44  ;;  %v1994_v48 = vpop.f32.mrb[95].mxu0 }
 0x1f9   : > { %v2738_v50 = vmax.f32 %v1992_v43, 0.0  ;;  %v1995_v51 = vadd.f32 %v8367_v30, %v1994_v48  ;;  %7227 = vmatmul.mubr.msk.f32.gmra.mrb[86].mxu1 %vm1204_vm0, %v3245_v49  ;;  %v3248_v57 = vld [vmem:[#allocation2 + $0x2d0] sm:$0xff] }
 0x1fa   : > { %2996 = vst.msk [vmem:[#allocation2 + $0x2f0] sm:$0xff] %vm1204_vm0, %v2740_v46  ;;  %v2741_v52 = vmax.f32 %v2003_v47, 0.0  ;;  %7026 = vmatmul.mubr.msk.bf16.gmra.mrb[200].mxu0 %vm1204_vm0, %v7643_v42  ;;  %v3246_v53 = vld [vmem:[#allocation2 + $0x2c0] sm:$0xff] }
 0x1fb   : > { %2994 = vst.msk [vmem:[#allocation2 + $0x2e0] sm:$0xff] %vm1204_vm0, %v2738_v50  ;;  %v2739_v54 = vmax.f32 %v1995_v51, 0.0  ;;  %7229 = vmatprep.mubr.msk.f32.mxu1 %vm1204_vm0, %v3246_v53  ;;  %7029 = vmatprep.mubr.msk.bf16.mxu0 %vm1204_vm0, %v7644_v45  ;;  %v3249_v3 = vld [vmem:[#allocation2 + $0x2d8] sm:$0xff]  ;;  %v7651_v51 = vld [vmem:[%s7931_s29 + $0x368] sm:$0xff]  }
 0x1fc   : > { %2997 = vst.msk [vmem:[#allocation2 + $0x2f8] sm:$0xff] %vm1204_vm0, %v2741_v52  ;;  %v3247_v55 = vld [vmem:[#allocation2 + $0x2c8] sm:$0xff] }
 0x1fd   : > { %2995 = vst.msk [vmem:[#allocation2 + $0x2e8] sm:$0xff] %vm1204_vm0, %v2739_v54  ;;  %v6923_v56 = vpop.f32.mrb[96].mxu0  ;;  %7230 = vmatmul.mubr.msk.f32.gmra.mrb[88].mxu1 %vm1204_vm0, %v3247_v55  ;;  %v7652_v54 = vld [vmem:[%s7931_s29 + $0x370] sm:$0xff]  }
 0x1fe   : > { %v2016_v58 = vadd.f32 %v8367_v30, %v6923_v56  ;;  %v2007_v59 = vpop.f32.mrb[97].mxu0  ;;  %7232 = vmatprep.mubr.msk.f32.mxu1 %vm1204_vm0, %v3248_v57 }
 0x1ff   : > { %v2008_v61 = vadd.f32 %v8367_v30, %v2007_v59  ;;  %v6924_v62 = vpop.f32.mrb[98].mxu0 }
 0x200   : > { %v2744_v0 = vmax.f32 %v2016_v58, 0.0  ;;  %v2019_v1 = vadd.f32 %v8367_v30, %v6924_v62  ;;  %v2010_v2 = vpop.f32.mrb[99].mxu0 }
 0x201   : > { %v2742_v4 = vmax.f32 %v2008_v61, 0.0  ;;  %v2011_v5 = vadd.f32 %v8367_v30, %v2010_v2  ;;  %7233 = vmatmul.mubr.msk.f32.gmra.mrb[90].mxu1 %vm1204_vm0, %v3249_v3  ;;  %v3252_v12 = vld [vmem:[#allocation2 + $0x2f0] sm:$0xff] }
 0x202   : > { %3000 = vst.msk [vmem:[#allocation2 + $0x310] sm:$0xff] %vm1204_vm0, %v2744_v0  ;;  %v2745_v6 = vmax.f32 %v2019_v1, 0.0  ;;  %7030 = vmatmul.mubr.msk.bf16.gmra.mrb[204].mxu0 %vm1204_vm0, %v7645_v60  ;;  %v3250_v8 = vld [vmem:[#allocation2 + $0x2e0] sm:$0xff] }
 0x203   : > { %2998 = vst.msk [vmem:[#allocation2 + $0x300] sm:$0xff] %vm1204_vm0, %v2742_v4  ;;  %v2743_v9 = vmax.f32 %v2011_v5, 0.0  ;;  %7235 = vmatprep.mubr.msk.f32.mxu1 %vm1204_vm0, %v3250_v8  ;;  %7033 = vmatprep.mubr.msk.bf16.mxu0 %vm1204_vm0, %v7646_v63  ;;  %v3253_v22 = vld [vmem:[#allocation2 + $0x2f8] sm:$0xff]  ;;  %v8516_v5 = vld [vmem:[#allocation7] ss:$0 sm:$0xff] }
 0x204   : > { %3001 = vst.msk [vmem:[#allocation2 + $0x318] sm:$0xff] %vm1204_vm0, %v2745_v6  ;;  %v3251_v10 = vld [vmem:[#allocation2 + $0x2e8] sm:$0xff]  ;;  %v7653_v6 = vld [vmem:[%s7931_s29 + $0x378] sm:$0xff]  }
 0x205   : > { %2999 = vst.msk [vmem:[#allocation2 + $0x308] sm:$0xff] %vm1204_vm0, %v2743_v9  ;;  %v6927_v11 = vpop.f32.mrb[100].mxu0  ;;  %7236 = vmatmul.mubr.msk.f32.gmra.mrb[92].mxu1 %vm1204_vm0, %v3251_v10  ;;  %v7654_v10 = vld [vmem:[%s7931_s29 + $0x380] sm:$0xff]  }
 0x206   : > { %v2032_v13 = vadd.f32 %v8367_v30, %v6927_v11  ;;  %v2023_v14 = vpop.f32.mrb[101].mxu0  ;;  %7238 = vmatprep.mubr.msk.f32.mxu1 %vm1204_vm0, %v3252_v12 }
 0x207   : > { %v2024_v16 = vadd.f32 %v8367_v30, %v2023_v14  ;;  %v6928_v17 = vpop.f32.mrb[102].mxu0 }
 0x208   : > { %v2748_v19 = vmax.f32 %v2032_v13, 0.0  ;;  %v2035_v20 = vadd.f32 %v8367_v30, %v6928_v17  ;;  %v2026_v21 = vpop.f32.mrb[103].mxu0 }
 0x209   : > { %v2746_v23 = vmax.f32 %v2024_v16, 0.0  ;;  %v2027_v24 = vadd.f32 %v8367_v30, %v2026_v21  ;;  %7239 = vmatmul.mubr.msk.f32.gmra.mrb[94].mxu1 %vm1204_vm0, %v3253_v22  ;;  %v3256_v29 = vld [vmem:[#allocation2 + $0x310] sm:$0xff] }
 0x20a   : > { %3004 = vst.msk [vmem:[#allocation2 + $0x330] sm:$0xff] %vm1204_vm0, %v2748_v19  ;;  %v2749_v25 = vmax.f32 %v2035_v20, 0.0  ;;  %7034 = vmatmul.mubr.msk.bf16.gmra.mrb[208].mxu0 %vm1204_vm0, %v7647_v15  ;;  %v3254_v26 = vld [vmem:[#allocation2 + $0x300] sm:$0xff] }
 0x20b   : > { %3002 = vst.msk [vmem:[#allocation2 + $0x320] sm:$0xff] %vm1204_vm0, %v2746_v23  ;;  %v2747_v27 = vmax.f32 %v2027_v24, 0.0  ;;  %7241 = vmatprep.mubr.msk.f32.mxu1 %vm1204_vm0, %v3254_v26  ;;  %7037 = vmatprep.mubr.msk.bf16.mxu0 %vm1204_vm0, %v7648_v18  ;;  %v3257_v40 = vld [vmem:[#allocation2 + $0x318] sm:$0xff] }
 0x20c   : > { %3005 = vst.msk [vmem:[#allocation2 + $0x338] sm:$0xff] %vm1204_vm0, %v2749_v25  ;;  %v3255_v7 = vld [vmem:[#allocation2 + $0x308] sm:$0xff] }
 0x20d   : > { %3003 = vst.msk [vmem:[#allocation2 + $0x328] sm:$0xff] %vm1204_vm0, %v2747_v27  ;;  %v6931_v28 = vpop.f32.mrb[104].mxu0  ;;  %7242 = vmatmul.mubr.msk.f32.gmra.mrb[96].mxu1 %vm1204_vm0, %v3255_v7 }
 0x20e   : > { %v2048_v31 = vadd.f32 %v8367_v30, %v6931_v28  ;;  %v2039_v32 = vpop.f32.mrb[105].mxu0  ;;  %7244 = vmatprep.mubr.msk.f32.mxu1 %vm1204_vm0, %v3256_v29 }
 0x20f   : > { %v2040_v34 = vadd.f32 %v8367_v30, %v2039_v32  ;;  %v6932_v35 = vpop.f32.mrb[106].mxu0 }
 0x210   : > { %v2752_v37 = vmax.f32 %v2048_v31, 0.0  ;;  %v2051_v38 = vadd.f32 %v8367_v30, %v6932_v35  ;;  %v2042_v39 = vpop.f32.mrb[107].mxu0 }
 0x211   : > { %v2750_v41 = vmax.f32 %v2040_v34, 0.0  ;;  %v2043_v42 = vadd.f32 %v8367_v30, %v2042_v39  ;;  %7245 = vmatmul.mubr.msk.f32.gmra.mrb[98].mxu1 %vm1204_vm0, %v3257_v40  ;;  %v3260_v48 = vld [vmem:[#allocation2 + $0x330] sm:$0xff] }
 0x212   : > { %3008 = vst.msk [vmem:[#allocation2 + $0x350] sm:$0xff] %vm1204_vm0, %v2752_v37  ;;  %v2753_v43 = vmax.f32 %v2051_v38, 0.0  ;;  %7038 = vmatmul.mubr.msk.bf16.gmra.mrb[212].mxu0 %vm1204_vm0, %v7649_v33  ;;  %v3258_v44 = vld [vmem:[#allocation2 + $0x320] sm:$0xff]  ;;  %v7655_v33 = vld [vmem:[%s7931_s29 + $0x388] sm:$0xff]  }
 0x213   : > { %3006 = vst.msk [vmem:[#allocation2 + $0x340] sm:$0xff] %vm1204_vm0, %v2750_v41  ;;  %v2751_v45 = vmax.f32 %v2043_v42, 0.0  ;;  %7247 = vmatprep.mubr.msk.f32.mxu1 %vm1204_vm0, %v3258_v44  ;;  %7041 = vmatprep.mubr.msk.bf16.mxu0 %vm1204_vm0, %v7650_v36  ;;  %v3261_v58 = vld [vmem:[#allocation2 + $0x338] sm:$0xff]  ;;  %v7656_v36 = vld [vmem:[%s7931_s29 + $0x390] sm:$0xff]  }
 0x214   : > { %3009 = vst.msk [vmem:[#allocation2 + $0x358] sm:$0xff] %vm1204_vm0, %v2753_v43  ;;  %v3259_v46 = vld [vmem:[#allocation2 + $0x328] sm:$0xff] }
 0x215   : > { %3007 = vst.msk [vmem:[#allocation2 + $0x348] sm:$0xff] %vm1204_vm0, %v2751_v45  ;;  %v6935_v47 = vpop.f32.mrb[108].mxu0  ;;  %7248 = vmatmul.mubr.msk.f32.gmra.mrb[100].mxu1 %vm1204_vm0, %v3259_v46 }
 0x216   : > { %v2064_v49 = vadd.f32 %v8367_v30, %v6935_v47  ;;  %v2055_v50 = vpop.f32.mrb[109].mxu0  ;;  %7250 = vmatprep.mubr.msk.f32.mxu1 %vm1204_vm0, %v3260_v48 }
 0x217   : > { %v2056_v52 = vadd.f32 %v8367_v30, %v2055_v50  ;;  %v6936_v53 = vpop.f32.mrb[110].mxu0 }
 0x218   : > { %v2756_v55 = vmax.f32 %v2064_v49, 0.0  ;;  %v2067_v56 = vadd.f32 %v8367_v30, %v6936_v53  ;;  %v2058_v57 = vpop.f32.mrb[111].mxu0 }
 0x219   : > { %v2754_v59 = vmax.f32 %v2056_v52, 0.0  ;;  %v2059_v60 = vadd.f32 %v8367_v30, %v2058_v57  ;;  %7251 = vmatmul.mubr.msk.f32.gmra.mrb[102].mxu1 %vm1204_vm0, %v3261_v58  ;;  %v3264_v2 = vld [vmem:[#allocation2 + $0x350] sm:$0xff] }
 0x21a   : > { %3012 = vst.msk [vmem:[#allocation2 + $0x370] sm:$0xff] %vm1204_vm0, %v2756_v55  ;;  %v2757_v61 = vmax.f32 %v2067_v56, 0.0  ;;  %7042 = vmatmul.mubr.msk.bf16.gmra.mrb[216].mxu0 %vm1204_vm0, %v7651_v51  ;;  %v3262_v62 = vld [vmem:[#allocation2 + $0x340] sm:$0xff] }
 0x21b   : > { %3010 = vst.msk [vmem:[#allocation2 + $0x360] sm:$0xff] %vm1204_vm0, %v2754_v59  ;;  %v2755_v63 = vmax.f32 %v2059_v60, 0.0  ;;  %7253 = vmatprep.mubr.msk.f32.mxu1 %vm1204_vm0, %v3262_v62  ;;  %7045 = vmatprep.mubr.msk.bf16.mxu0 %vm1204_vm0, %v7652_v54  ;;  %v3265_v15 = vld [vmem:[#allocation2 + $0x358] sm:$0xff]  ;;  %v7658_v62 = vld [vmem:[%s7931_s29 + $0x3a0] sm:$0xff]  }
 0x21c   : > { %3013 = vst.msk [vmem:[#allocation2 + $0x378] sm:$0xff] %vm1204_vm0, %v2757_v61  ;;  %v3263_v0 = vld [vmem:[#allocation2 + $0x348] sm:$0xff]  ;;  %v7657_v59 = vld [vmem:[%s7931_s29 + $0x398] sm:$0xff]  }
 0x21d   : > { %3011 = vst.msk [vmem:[#allocation2 + $0x368] sm:$0xff] %vm1204_vm0, %v2755_v63  ;;  %v6939_v1 = vpop.f32.mrb[112].mxu0  ;;  %7254 = vmatmul.mubr.msk.f32.gmra.mrb[104].mxu1 %vm1204_vm0, %v3263_v0 }
 0x21e   : > { %v2080_v3 = vadd.f32 %v8367_v30, %v6939_v1  ;;  %v2071_v4 = vpop.f32.mrb[113].mxu0  ;;  %7256 = vmatprep.mubr.msk.f32.mxu1 %vm1204_vm0, %v3264_v2 }
 0x21f   : > { %v2072_v8 = vadd.f32 %v8367_v30, %v2071_v4  ;;  %v6940_v9 = vpop.f32.mrb[114].mxu0 }
 0x220   : > { %v2760_v11 = vmax.f32 %v2080_v3, 0.0  ;;  %v2083_v12 = vadd.f32 %v8367_v30, %v6940_v9  ;;  %v2074_v13 = vpop.f32.mrb[115].mxu0  ;;  %v7099_v14 = vpop.f32.mrb[0].mxu1 }
 0x221   : > { %v2758_v16 = vmax.f32 %v2072_v8, 0.0  ;;  %v2075_v17 = vadd.f32 %v8367_v30, %v2074_v13  ;;  %v4269_v18 = vadd.f32 %v7099_v14, %v8516_v5  ;;  %v4263_v19 = vpop.f32.mrb[1].mxu1  ;;  %7257 = vmatmul.mubr.msk.f32.gmra.mrb[106].mxu1 %vm1204_vm0, %v3265_v15  ;;  %v3268_v28 = vld [vmem:[#allocation2 + $0x370] sm:$0xff] }
 0x222   : > { %3016 = vst.msk [vmem:[#allocation2 + $0x390] sm:$0xff] %vm1204_vm0, %v2760_v11  ;;  %v2761_v20 = vmax.f32 %v2083_v12, 0.0  ;;  %v4264_v21 = vadd.f32 %v8516_v5, %v4263_v19  ;;  %7046 = vmatmul.mubr.msk.bf16.gmra.mrb[220].mxu0 %vm1204_vm0, %v7653_v6  ;;  %v3266_v22 = vld [vmem:[#allocation2 + $0x360] sm:$0xff] }
 0x223   : > { %3014 = vst.msk [vmem:[#allocation2 + $0x380] sm:$0xff] %vm1204_vm0, %v2758_v16  ;;  %v2759_v23 = vmax.f32 %v2075_v17, 0.0  ;;  %7259 = vmatprep.mubr.msk.f32.mxu1 %vm1204_vm0, %v3266_v22  ;;  %7049 = vmatprep.mubr.msk.bf16.mxu0 %vm1204_vm0, %v7654_v10  ;;  %v3269_v41 = vld [vmem:[#allocation2 + $0x378] sm:$0xff] }
 0x224   : > { %5544 = vst.msk [vmem:[%s8524_s26 + $0x8] sm:$0xff] %vm5542_vm1, %v4269_v18  ;;  %5543 = vst.msk [vmem:[%s8524_s26] sm:$0xff] %vm5542_vm1, %v4264_v21  ;;  %v7102_v24 = vpop.f32.mrb[2].mxu1  ;;  %v3267_v25 = vld [vmem:[#allocation2 + $0x368] sm:$0xff] }
 0x225   : > { %3017 = vst.msk [vmem:[#allocation2 + $0x398] sm:$0xff] %vm1204_vm0, %v2761_v20  ;;  %3015 = vst.msk [vmem:[#allocation2 + $0x388] sm:$0xff] %vm1204_vm0, %v2759_v23  ;;  %v4279_v26 = vadd.f32 %v7102_v24, %v8516_v5  ;;  %v6943_v27 = vpop.f32.mrb[116].mxu0  ;;  %v4273_v7 = vpop.f32.mrb[3].mxu1  ;;  %7260 = vmatmul.mubr.msk.f32.gmra.mrb[108].mxu1 %vm1204_vm0, %v3267_v25  ;;  %v7659_v23 = vld [vmem:[%s7931_s29 + $0x3a8] sm:$0xff]  }
 0x226   : > { %v2096_v29 = vadd.f32 %v8367_v30, %v6943_v27  ;;  %v4274_v31 = vadd.f32 %v8516_v5, %v4273_v7  ;;  %v2087_v32 = vpop.f32.mrb[117].mxu0  ;;  %7262 = vmatprep.mubr.msk.f32.mxu1 %vm1204_vm0, %v3268_v28 }
 0x227   : > { %5546 = vst.msk [vmem:[%s8524_s26 + $0x18] sm:$0xff] %vm5542_vm1, %v4279_v26  ;;  %v2088_v34 = vadd.f32 %v8367_v30, %v2087_v32  ;;  %v6944_v35 = vpop.f32.mrb[118].mxu0  ;;  %v7660_v26 = vld [vmem:[%s7931_s29 + $0x3b0] sm:$0xff]  }
 0x228   : > { %v2764_v37 = vmax.f32 %v2096_v29, 0.0  ;;  %5545 = vst.msk [vmem:[%s8524_s26 + $0x10] sm:$0xff] %vm5542_vm1, %v4274_v31  ;;  %v2099_v38 = vadd.f32 %v8367_v30, %v6944_v35  ;;  %v2090_v39 = vpop.f32.mrb[119].mxu0  ;;  %v7105_v40 = vpop.f32.mrb[4].mxu1 }
 0x229   : > { %v2762_v42 = vmax.f32 %v2088_v34, 0.0  ;;  %v2091_v43 = vadd.f32 %v8367_v30, %v2090_v39  ;;  %v4289_v44 = vadd.f32 %v7105_v40, %v8516_v5  ;;  %v4283_v45 = vpop.f32.mrb[5].mxu1  ;;  %7263 = vmatmul.mubr.msk.f32.gmra.mrb[110].mxu1 %vm1204_vm0, %v3269_v41  ;;  %v3272_v55 = vld [vmem:[#allocation2 + $0x390] sm:$0xff] }
 0x22a   : > { %3020 = vst.msk [vmem:[#allocation2 + $0x3b0] sm:$0xff] %vm1204_vm0, %v2764_v37  ;;  %v2765_v46 = vmax.f32 %v2099_v38, 0.0  ;;  %v4284_v47 = vadd.f32 %v8516_v5, %v4283_v45  ;;  %7050 = vmatmul.mubr.msk.bf16.gmra.mrb[224].mxu0 %vm1204_vm0, %v7655_v33  ;;  %v3270_v48 = vld [vmem:[#allocation2 + $0x380] sm:$0xff] }
 0x22b   : > { %3018 = vst.msk [vmem:[#allocation2 + $0x3a0] sm:$0xff] %vm1204_vm0, %v2762_v42  ;;  %v2763_v49 = vmax.f32 %v2091_v43, 0.0  ;;  %7265 = vmatprep.mubr.msk.f32.mxu1 %vm1204_vm0, %v3270_v48  ;;  %7053 = vmatprep.mubr.msk.bf16.mxu0 %vm1204_vm0, %v7656_v36 }
 0x22c   : > { %5548 = vst.msk [vmem:[%s8524_s26 + $0x28] sm:$0xff] %vm5542_vm1, %v4289_v44  ;;  %5547 = vst.msk [vmem:[%s8524_s26 + $0x20] sm:$0xff] %vm5542_vm1, %v4284_v47  ;;  %v7108_v50 = vpop.f32.mrb[6].mxu1  ;;  %v3271_v51 = vld [vmem:[#allocation2 + $0x388] sm:$0xff]  ;;  %v3273_v3 = vld [vmem:[#allocation2 + $0x398] sm:$0xff] }
 0x22d   : > { %3021 = vst.msk [vmem:[#allocation2 + $0x3b8] sm:$0xff] %vm1204_vm0, %v2765_v46  ;;  %3019 = vst.msk [vmem:[#allocation2 + $0x3a8] sm:$0xff] %vm1204_vm0, %v2763_v49  ;;  %v4299_v52 = vadd.f32 %v7108_v50, %v8516_v5  ;;  %v6947_v53 = vpop.f32.mrb[120].mxu0  ;;  %v4293_v54 = vpop.f32.mrb[7].mxu1  ;;  %7266 = vmatmul.mubr.msk.f32.gmra.mrb[112].mxu1 %vm1204_vm0, %v3271_v51  ;;  %v7661_v49 = vld [vmem:[%s7931_s29 + $0x3b8] sm:$0xff]  }
 0x22e   : > { %v2112_v56 = vadd.f32 %v8367_v30, %v6947_v53  ;;  %v4294_v57 = vadd.f32 %v8516_v5, %v4293_v54  ;;  %v2103_v58 = vpop.f32.mrb[121].mxu0  ;;  %7268 = vmatprep.mubr.msk.f32.mxu1 %vm1204_vm0, %v3272_v55 }
 0x22f   : > { %5550 = vst.msk [vmem:[%s8524_s26 + $0x38] sm:$0xff] %vm5542_vm1, %v4299_v52  ;;  %v2104_v60 = vadd.f32 %v8367_v30, %v2103_v58  ;;  %v6948_v61 = vpop.f32.mrb[122].mxu0  ;;  %v7662_v52 = vld [vmem:[%s7931_s29 + $0x3c0] sm:$0xff]  }
 0x230   : > { %v2768_v63 = vmax.f32 %v2112_v56, 0.0  ;;  %5549 = vst.msk [vmem:[%s8524_s26 + $0x30] sm:$0xff] %vm5542_vm1, %v4294_v57  ;;  %v2115_v0 = vadd.f32 %v8367_v30, %v6948_v61  ;;  %v2106_v1 = vpop.f32.mrb[123].mxu0  ;;  %v7111_v2 = vpop.f32.mrb[8].mxu1 }
 0x231   : > { %v2766_v4 = vmax.f32 %v2104_v60, 0.0  ;;  %v2107_v6 = vadd.f32 %v8367_v30, %v2106_v1  ;;  %v4309_v8 = vadd.f32 %v7111_v2, %v8516_v5  ;;  %v4303_v9 = vpop.f32.mrb[9].mxu1  ;;  %7269 = vmatmul.mubr.msk.f32.gmra.mrb[114].mxu1 %vm1204_vm0, %v3273_v3  ;;  %v3276_v19 = vld [vmem:[#allocation2 + $0x3b0] sm:$0xff] }
 0x232   : > { %3024 = vst.msk [vmem:[#allocation2 + $0x3d0] sm:$0xff] %vm1204_vm0, %v2768_v63  ;;  %v2769_v10 = vmax.f32 %v2115_v0, 0.0  ;;  %v4304_v11 = vadd.f32 %v8516_v5, %v4303_v9  ;;  %7054 = vmatmul.mubr.msk.bf16.gmra.mrb[228].mxu0 %vm1204_vm0, %v7657_v59  ;;  %v3274_v12 = vld [vmem:[#allocation2 + $0x3a0] sm:$0xff] }
 0x233   : > { %3022 = vst.msk [vmem:[#allocation2 + $0x3c0] sm:$0xff] %vm1204_vm0, %v2766_v4  ;;  %v2767_v13 = vmax.f32 %v2107_v6, 0.0  ;;  %7271 = vmatprep.mubr.msk.f32.mxu1 %vm1204_vm0, %v3274_v12  ;;  %7057 = vmatprep.mubr.msk.bf16.mxu0 %vm1204_vm0, %v7658_v62 }
 0x234   : > { %5552 = vst.msk [vmem:[%s8524_s26 + $0x48] sm:$0xff] %vm5542_vm1, %v4309_v8  ;;  %5551 = vst.msk [vmem:[%s8524_s26 + $0x40] sm:$0xff] %vm5542_vm1, %v4304_v11  ;;  %v7114_v14 = vpop.f32.mrb[10].mxu1  ;;  %v3275_v15 = vld [vmem:[#allocation2 + $0x3a8] sm:$0xff]  ;;  %v3277_v31 = vld [vmem:[#allocation2 + $0x3b8] sm:$0xff] }
 0x235   : > { %3025 = vst.msk [vmem:[#allocation2 + $0x3d8] sm:$0xff] %vm1204_vm0, %v2769_v10  ;;  %3023 = vst.msk [vmem:[#allocation2 + $0x3c8] sm:$0xff] %vm1204_vm0, %v2767_v13  ;;  %v4319_v16 = vadd.f32 %v7114_v14, %v8516_v5  ;;  %v6951_v17 = vpop.f32.mrb[124].mxu0  ;;  %v4313_v18 = vpop.f32.mrb[11].mxu1  ;;  %7272 = vmatmul.mubr.msk.f32.gmra.mrb[116].mxu1 %vm1204_vm0, %v3275_v15  ;;  %v7663_v13 = vld [vmem:[%s7931_s29 + $0x3c8] sm:$0xff]  }
 0x236   : > { %v2128_v20 = vadd.f32 %v8367_v30, %v6951_v17  ;;  %v4314_v21 = vadd.f32 %v8516_v5, %v4313_v18  ;;  %v2119_v22 = vpop.f32.mrb[125].mxu0  ;;  %7274 = vmatprep.mubr.msk.f32.mxu1 %vm1204_vm0, %v3276_v19 }
 0x237   : > { %5554 = vst.msk [vmem:[%s8524_s26 + $0x58] sm:$0xff] %vm5542_vm1, %v4319_v16  ;;  %v2120_v24 = vadd.f32 %v8367_v30, %v2119_v22  ;;  %v6952_v25 = vpop.f32.mrb[126].mxu0  ;;  %v7664_v16 = vld [vmem:[%s7931_s29 + $0x3d0] sm:$0xff]  }
 0x238   : > { %v2772_v27 = vmax.f32 %v2128_v20, 0.0  ;;  %5553 = vst.msk [vmem:[%s8524_s26 + $0x50] sm:$0xff] %vm5542_vm1, %v4314_v21  ;;  %v2131_v7 = vadd.f32 %v8367_v30, %v6952_v25  ;;  %v2122_v28 = vpop.f32.mrb[127].mxu0  ;;  %v7117_v29 = vpop.f32.mrb[12].mxu1 }
 0x239   : > { %v2770_v32 = vmax.f32 %v2120_v24, 0.0  ;;  %v2123_v33 = vadd.f32 %v8367_v30, %v2122_v28  ;;  %v4329_v34 = vadd.f32 %v7117_v29, %v8516_v5  ;;  %v4323_v35 = vpop.f32.mrb[13].mxu1  ;;  %7275 = vmatmul.mubr.msk.f32.gmra.mrb[118].mxu1 %vm1204_vm0, %v3277_v31  ;;  %v3280_v45 = vld [vmem:[#allocation2 + $0x3d0] sm:$0xff] }
 0x23a   : > { %3028 = vst.msk [vmem:[#allocation2 + $0x3f0] sm:$0xff] %vm1204_vm0, %v2772_v27  ;;  %v2773_v36 = vmax.f32 %v2131_v7, 0.0  ;;  %v4324_v37 = vadd.f32 %v8516_v5, %v4323_v35  ;;  %7058 = vmatmul.mubr.msk.bf16.gmra.mrb[232].mxu0 %vm1204_vm0, %v7659_v23  ;;  %v3278_v38 = vld [vmem:[#allocation2 + $0x3c0] sm:$0xff] }
 0x23b   : > { %3026 = vst.msk [vmem:[#allocation2 + $0x3e0] sm:$0xff] %vm1204_vm0, %v2770_v32  ;;  %v2771_v39 = vmax.f32 %v2123_v33, 0.0  ;;  %7277 = vmatprep.mubr.msk.f32.mxu1 %vm1204_vm0, %v3278_v38  ;;  %7061 = vmatprep.mubr.msk.bf16.mxu0 %vm1204_vm0, %v7660_v26 }
 0x23c   : > { %5556 = vst.msk [vmem:[%s8524_s26 + $0x68] sm:$0xff] %vm5542_vm1, %v4329_v34  ;;  %5555 = vst.msk [vmem:[%s8524_s26 + $0x60] sm:$0xff] %vm5542_vm1, %v4324_v37  ;;  %v7120_v40 = vpop.f32.mrb[14].mxu1  ;;  %v3279_v41 = vld [vmem:[#allocation2 + $0x3c8] sm:$0xff]  ;;  %v3281_v57 = vld [vmem:[#allocation2 + $0x3d8] sm:$0xff] }
 0x23d   : > { %3029 = vst.msk [vmem:[#allocation2 + $0x3f8] sm:$0xff] %vm1204_vm0, %v2773_v36  ;;  %3027 = vst.msk [vmem:[#allocation2 + $0x3e8] sm:$0xff] %vm1204_vm0, %v2771_v39  ;;  %v4339_v42 = vadd.f32 %v7120_v40, %v8516_v5  ;;  %v6955_v43 = vpop.f32.mrb[128].mxu0  ;;  %v4333_v44 = vpop.f32.mrb[15].mxu1  ;;  %7278 = vmatmul.mubr.msk.f32.gmra.mrb[120].mxu1 %vm1204_vm0, %v3279_v41  ;;  %v7665_v39 = vld [vmem:[%s7931_s29 + $0x3d8] sm:$0xff]  }
 0x23e   : > { %v2144_v46 = vadd.f32 %v8367_v30, %v6955_v43  ;;  %v4334_v47 = vadd.f32 %v8516_v5, %v4333_v44  ;;  %v2135_v48 = vpop.f32.mrb[129].mxu0  ;;  %7280 = vmatprep.mubr.msk.f32.mxu1 %vm1204_vm0, %v3280_v45 }
 0x23f   : > { %5558 = vst.msk [vmem:[%s8524_s26 + $0x78] sm:$0xff] %vm5542_vm1, %v4339_v42  ;;  %v2136_v50 = vadd.f32 %v8367_v30, %v2135_v48  ;;  %v6956_v51 = vpop.f32.mrb[130].mxu0  ;;  %v7666_v42 = vld [vmem:[%s7931_s29 + $0x3e0] sm:$0xff]  }
 0x240   : > { %v2776_v53 = vmax.f32 %v2144_v46, 0.0  ;;  %5557 = vst.msk [vmem:[%s8524_s26 + $0x70] sm:$0xff] %vm5542_vm1, %v4334_v47  ;;  %v2147_v54 = vadd.f32 %v8367_v30, %v6956_v51  ;;  %v2138_v55 = vpop.f32.mrb[131].mxu0  ;;  %v7123_v56 = vpop.f32.mrb[16].mxu1 }
 0x241   : > { %v2774_v58 = vmax.f32 %v2136_v50, 0.0  ;;  %v2139_v59 = vadd.f32 %v8367_v30, %v2138_v55  ;;  %v4349_v60 = vadd.f32 %v7123_v56, %v8516_v5  ;;  %v4343_v61 = vpop.f32.mrb[17].mxu1  ;;  %7281 = vmatmul.mubr.msk.f32.gmra.mrb[122].mxu1 %vm1204_vm0, %v3281_v57  ;;  %v3284_v9 = vld [vmem:[#allocation2 + $0x3f0] sm:$0xff] }
 0x242   : > { %3032 = vst.msk [vmem:[#allocation2 + $0x410] sm:$0xff] %vm1204_vm0, %v2776_v53  ;;  %v2777_v62 = vmax.f32 %v2147_v54, 0.0  ;;  %v4344_v63 = vadd.f32 %v8516_v5, %v4343_v61  ;;  %7062 = vmatmul.mubr.msk.bf16.gmra.mrb[236].mxu0 %vm1204_vm0, %v7661_v49  ;;  %v3282_v0 = vld [vmem:[#allocation2 + $0x3e0] sm:$0xff] }
 0x243   : > { %3030 = vst.msk [vmem:[#allocation2 + $0x400] sm:$0xff] %vm1204_vm0, %v2774_v58  ;;  %v2775_v1 = vmax.f32 %v2139_v59, 0.0  ;;  %7283 = vmatprep.mubr.msk.f32.mxu1 %vm1204_vm0, %v3282_v0  ;;  %7065 = vmatprep.mubr.msk.bf16.mxu0 %vm1204_vm0, %v7662_v52  ;;  %v8712_v61 = vld [vmem:[#allocation5] ss:$0 sm:$0xff] }
 0x244   : > { %5560 = vst.msk [vmem:[%s8524_s26 + $0x88] sm:$0xff] %vm5542_vm1, %v4349_v60  ;;  %5559 = vst.msk [vmem:[%s8524_s26 + $0x80] sm:$0xff] %vm5542_vm1, %v4344_v63  ;;  %v7126_v2 = vpop.f32.mrb[18].mxu1  ;;  %v3283_v3 = vld [vmem:[#allocation2 + $0x3e8] sm:$0xff]  ;;  %v3285_v21 = vld [vmem:[#allocation2 + $0x3f8] sm:$0xff] }
 0x245   : > { %3033 = vst.msk [vmem:[#allocation2 + $0x418] sm:$0xff] %vm1204_vm0, %v2777_v62  ;;  %3031 = vst.msk [vmem:[#allocation2 + $0x408] sm:$0xff] %vm1204_vm0, %v2775_v1  ;;  %v4359_v4 = vadd.f32 %v7126_v2, %v8516_v5  ;;  %v6959_v6 = vpop.f32.mrb[132].mxu0  ;;  %v4353_v8 = vpop.f32.mrb[19].mxu1  ;;  %7284 = vmatmul.mubr.msk.f32.gmra.mrb[124].mxu1 %vm1204_vm0, %v3283_v3  ;;  %v7667_v1 = vld [vmem:[%s7931_s29 + $0x3e8] sm:$0xff]  }
 0x246   : > { %v2160_v10 = vadd.f32 %v8367_v30, %v6959_v6  ;;  %v4354_v11 = vadd.f32 %v8516_v5, %v4353_v8  ;;  %v2151_v12 = vpop.f32.mrb[133].mxu0  ;;  %7286 = vmatprep.mubr.msk.f32.mxu1 %vm1204_vm0, %v3284_v9 }
 0x247   : > { %5562 = vst.msk [vmem:[%s8524_s26 + $0x98] sm:$0xff] %vm5542_vm1, %v4359_v4  ;;  %v2152_v14 = vadd.f32 %v8367_v30, %v2151_v12  ;;  %v6960_v15 = vpop.f32.mrb[134].mxu0  ;;  %v7668_v4 = vld [vmem:[%s7931_s29 + $0x3f0] sm:$0xff]  }
 0x248   : > { %v2780_v17 = vmax.f32 %v2160_v10, 0.0  ;;  %5561 = vst.msk [vmem:[%s8524_s26 + $0x90] sm:$0xff] %vm5542_vm1, %v4354_v11  ;;  %v2163_v18 = vadd.f32 %v8367_v30, %v6960_v15  ;;  %v2154_v19 = vpop.f32.mrb[135].mxu0  ;;  %v7129_v20 = vpop.f32.mrb[20].mxu1 }
 0x249   : > { %v2778_v22 = vmax.f32 %v2152_v14, 0.0  ;;  %v2155_v23 = vadd.f32 %v8367_v30, %v2154_v19  ;;  %v4369_v24 = vadd.f32 %v7129_v20, %v8516_v5  ;;  %v4363_v25 = vpop.f32.mrb[21].mxu1  ;;  %7287 = vmatmul.mubr.msk.f32.gmra.mrb[126].mxu1 %vm1204_vm0, %v3285_v21  ;;  %v3288_v35 = vld [vmem:[#allocation2 + $0x410] sm:$0xff] }
 0x24a   : > { %3036 = vst.msk [vmem:[#allocation2 + $0x430] sm:$0xff] %vm1204_vm0, %v2780_v17  ;;  %v2781_v26 = vmax.f32 %v2163_v18, 0.0  ;;  %v4364_v27 = vadd.f32 %v8516_v5, %v4363_v25  ;;  %7066 = vmatmul.mubr.msk.bf16.gmra.mrb[240].mxu0 %vm1204_vm0, %v7663_v13  ;;  %v3286_v7 = vld [vmem:[#allocation2 + $0x400] sm:$0xff] }
 0x24b   : > { %3034 = vst.msk [vmem:[#allocation2 + $0x420] sm:$0xff] %vm1204_vm0, %v2778_v22  ;;  %v2779_v28 = vmax.f32 %v2155_v23, 0.0  ;;  %7289 = vmatprep.mubr.msk.f32.mxu1 %vm1204_vm0, %v3286_v7  ;;  %7069 = vmatprep.mubr.msk.bf16.mxu0 %vm1204_vm0, %v7664_v16 }
 0x24c   : > { %5564 = vst.msk [vmem:[%s8524_s26 + $0xa8] sm:$0xff] %vm5542_vm1, %v4369_v24  ;;  %5563 = vst.msk [vmem:[%s8524_s26 + $0xa0] sm:$0xff] %vm5542_vm1, %v4364_v27  ;;  %v7132_v29 = vpop.f32.mrb[22].mxu1  ;;  %v3287_v31 = vld [vmem:[#allocation2 + $0x408] sm:$0xff]  ;;  %v3289_v47 = vld [vmem:[#allocation2 + $0x418] sm:$0xff] }
 0x24d   : > { %3037 = vst.msk [vmem:[#allocation2 + $0x438] sm:$0xff] %vm1204_vm0, %v2781_v26  ;;  %3035 = vst.msk [vmem:[#allocation2 + $0x428] sm:$0xff] %vm1204_vm0, %v2779_v28  ;;  %v4379_v32 = vadd.f32 %v7132_v29, %v8516_v5  ;;  %v6963_v33 = vpop.f32.mrb[136].mxu0  ;;  %v4373_v34 = vpop.f32.mrb[23].mxu1  ;;  %7290 = vmatmul.mubr.msk.f32.gmra.mrb[128].mxu1 %vm1204_vm0, %v3287_v31  ;;  %v7669_v28 = vld [vmem:[%s7931_s29 + $0x3f8] sm:$0xff]  }
 0x24e   : > { %v2176_v36 = vadd.f32 %v8367_v30, %v6963_v33  ;;  %v4374_v37 = vadd.f32 %v8516_v5, %v4373_v34  ;;  %v2167_v38 = vpop.f32.mrb[137].mxu0  ;;  %7292 = vmatprep.mubr.msk.f32.mxu1 %vm1204_vm0, %v3288_v35 }
 0x24f   : > { %5566 = vst.msk [vmem:[%s8524_s26 + $0xb8] sm:$0xff] %vm5542_vm1, %v4379_v32  ;;  %v2168_v40 = vadd.f32 %v8367_v30, %v2167_v38  ;;  %v6964_v41 = vpop.f32.mrb[138].mxu0 }
 0x250   : > { %v2784_v43 = vmax.f32 %v2176_v36, 0.0  ;;  %5565 = vst.msk [vmem:[%s8524_s26 + $0xb0] sm:$0xff] %vm5542_vm1, %v4374_v37  ;;  %v2179_v44 = vadd.f32 %v8367_v30, %v6964_v41  ;;  %v2170_v45 = vpop.f32.mrb[139].mxu0  ;;  %v7135_v46 = vpop.f32.mrb[24].mxu1 }
 0x251   : > { %v2782_v48 = vmax.f32 %v2168_v40, 0.0  ;;  %v2171_v49 = vadd.f32 %v8367_v30, %v2170_v45  ;;  %v4389_v50 = vadd.f32 %v7135_v46, %v8516_v5  ;;  %v4383_v51 = vpop.f32.mrb[25].mxu1  ;;  %7293 = vmatmul.mubr.msk.f32.gmra.mrb[130].mxu1 %vm1204_vm0, %v3289_v47  ;;  %v3292_v60 = vld [vmem:[#allocation2 + $0x430] sm:$0xff] }
 0x252   : > { %3040 = vst.msk [vmem:[#allocation2 + $0x450] sm:$0xff] %vm1204_vm0, %v2784_v43  ;;  %v2785_v52 = vmax.f32 %v2179_v44, 0.0  ;;  %v4384_v53 = vadd.f32 %v8516_v5, %v4383_v51  ;;  %7070 = vmatmul.mubr.msk.bf16.gmra.mrb[244].mxu0 %vm1204_vm0, %v7665_v39  ;;  %v3290_v54 = vld [vmem:[#allocation2 + $0x420] sm:$0xff] }
 0x253   : > { %3038 = vst.msk [vmem:[#allocation2 + $0x440] sm:$0xff] %vm1204_vm0, %v2782_v48  ;;  %v2783_v55 = vmax.f32 %v2171_v49, 0.0  ;;  %7295 = vmatprep.mubr.msk.f32.mxu1 %vm1204_vm0, %v3290_v54  ;;  %7073 = vmatprep.mubr.msk.bf16.mxu0 %vm1204_vm0, %v7666_v42 }
 0x254   : > { %5568 = vst.msk [vmem:[%s8524_s26 + $0xc8] sm:$0xff] %vm5542_vm1, %v4389_v50  ;;  %5567 = vst.msk [vmem:[%s8524_s26 + $0xc0] sm:$0xff] %vm5542_vm1, %v4384_v53  ;;  %v7138_v30 = vpop.f32.mrb[26].mxu1  ;;  %v3291_v56 = vld [vmem:[#allocation2 + $0x428] sm:$0xff]  ;;  %v3293_v11 = vld [vmem:[#allocation2 + $0x438] sm:$0xff] }
 0x255   : > { %3041 = vst.msk [vmem:[#allocation2 + $0x458] sm:$0xff] %vm1204_vm0, %v2785_v52  ;;  %3039 = vst.msk [vmem:[#allocation2 + $0x448] sm:$0xff] %vm1204_vm0, %v2783_v55  ;;  %v4399_v57 = vadd.f32 %v7138_v30, %v8516_v5  ;;  %v6967_v58 = vpop.f32.mrb[140].mxu0  ;;  %v4393_v59 = vpop.f32.mrb[27].mxu1  ;;  %7296 = vmatmul.mubr.msk.f32.gmra.mrb[132].mxu1 %vm1204_vm0, %v3291_v56 }
 0x256   : > { %v2192_v62 = vadd.f32 %v8712_v61, %v6967_v58  ;;  %v4394_v63 = vadd.f32 %v8516_v5, %v4393_v59  ;;  %v2183_v0 = vpop.f32.mrb[141].mxu0  ;;  %7298 = vmatprep.mubr.msk.f32.mxu1 %vm1204_vm0, %v3292_v60 }
 0x257   : > { %5570 = vst.msk [vmem:[%s8524_s26 + $0xd8] sm:$0xff] %vm5542_vm1, %v4399_v57  ;;  %v2184_v2 = vadd.f32 %v8712_v61, %v2183_v0  ;;  %v6968_v3 = vpop.f32.mrb[142].mxu0 }
 0x258   : > { %v2788_v6 = vmax.f32 %v2192_v62, 0.0  ;;  %5569 = vst.msk [vmem:[%s8524_s26 + $0xd0] sm:$0xff] %vm5542_vm1, %v4394_v63  ;;  %v2195_v8 = vadd.f32 %v8712_v61, %v6968_v3  ;;  %v2186_v9 = vpop.f32.mrb[143].mxu0  ;;  %v7141_v10 = vpop.f32.mrb[28].mxu1 }
 0x259   : > { %v2786_v12 = vmax.f32 %v2184_v2, 0.0  ;;  %v2187_v13 = vadd.f32 %v8712_v61, %v2186_v9  ;;  %v4409_v14 = vadd.f32 %v7141_v10, %v8516_v5  ;;  %v4403_v15 = vpop.f32.mrb[29].mxu1  ;;  %7299 = vmatmul.mubr.msk.f32.gmra.mrb[134].mxu1 %vm1204_vm0, %v3293_v11  ;;  %v3296_v25 = vld [vmem:[#allocation2 + $0x450] sm:$0xff] }
 0x25a   : > { %3044 = vst.msk [vmem:[#allocation2 + $0x470] sm:$0xff] %vm1204_vm0, %v2788_v6  ;;  %v2789_v16 = vmax.f32 %v2195_v8, 0.0  ;;  %v4404_v17 = vadd.f32 %v8516_v5, %v4403_v15  ;;  %7074 = vmatmul.mubr.msk.bf16.gmra.mrb[248].mxu0 %vm1204_vm0, %v7667_v1  ;;  %v3294_v18 = vld [vmem:[#allocation2 + $0x440] sm:$0xff] }
 0x25b   : > { %3042 = vst.msk [vmem:[#allocation2 + $0x460] sm:$0xff] %vm1204_vm0, %v2786_v12  ;;  %v2787_v19 = vmax.f32 %v2187_v13, 0.0  ;;  %7301 = vmatprep.mubr.msk.f32.mxu1 %vm1204_vm0, %v3294_v18  ;;  %7077 = vmatprep.mubr.msk.bf16.mxu0 %vm1204_vm0, %v7668_v4 }
 0x25c   : > { %5572 = vst.msk [vmem:[%s8524_s26 + $0xe8] sm:$0xff] %vm5542_vm1, %v4409_v14  ;;  %5571 = vst.msk [vmem:[%s8524_s26 + $0xe0] sm:$0xff] %vm5542_vm1, %v4404_v17  ;;  %v7144_v20 = vpop.f32.mrb[30].mxu1  ;;  %v3295_v21 = vld [vmem:[#allocation2 + $0x448] sm:$0xff]  ;;  %v3297_v36 = vld [vmem:[#allocation2 + $0x458] sm:$0xff] }
 0x25d   : > { %3045 = vst.msk [vmem:[#allocation2 + $0x478] sm:$0xff] %vm1204_vm0, %v2789_v16  ;;  %3043 = vst.msk [vmem:[#allocation2 + $0x468] sm:$0xff] %vm1204_vm0, %v2787_v19  ;;  %v4419_v22 = vadd.f32 %v7144_v20, %v8516_v5  ;;  %v6971_v23 = vpop.f32.mrb[144].mxu0  ;;  %v4413_v24 = vpop.f32.mrb[31].mxu1  ;;  %7302 = vmatmul.mubr.msk.f32.gmra.mrb[136].mxu1 %vm1204_vm0, %v3295_v21 }
 0x25e   : > { %v2208_v26 = vadd.f32 %v8712_v61, %v6971_v23  ;;  %v4414_v27 = vadd.f32 %v8516_v5, %v4413_v24  ;;  %v2199_v7 = vpop.f32.mrb[145].mxu0  ;;  %7304 = vmatprep.mubr.msk.f32.mxu1 %vm1204_vm0, %v3296_v25 }
 0x25f   : > { %5574 = vst.msk [vmem:[%s8524_s26 + $0xf8] sm:$0xff] %vm5542_vm1, %v4419_v22  ;;  %v2200_v29 = vadd.f32 %v8712_v61, %v2199_v7  ;;  %v6972_v31 = vpop.f32.mrb[146].mxu0 }
 0x260   : > { %v2792_v32 = vmax.f32 %v2208_v26, 0.0  ;;  %5573 = vst.msk [vmem:[%s8524_s26 + $0xf0] sm:$0xff] %vm5542_vm1, %v4414_v27  ;;  %v2211_v33 = vadd.f32 %v8712_v61, %v6972_v31  ;;  %v2202_v34 = vpop.f32.mrb[147].mxu0  ;;  %v7147_v35 = vpop.f32.mrb[32].mxu1 }
 0x261   : > { %v2790_v37 = vmax.f32 %v2200_v29, 0.0  ;;  %v2203_v38 = vadd.f32 %v8712_v61, %v2202_v34  ;;  %v4429_v39 = vadd.f32 %v7147_v35, %v8516_v5  ;;  %v4423_v40 = vpop.f32.mrb[33].mxu1  ;;  %7305 = vmatmul.mubr.msk.f32.gmra.mrb[138].mxu1 %vm1204_vm0, %v3297_v36  ;;  %v3300_v50 = vld [vmem:[#allocation2 + $0x470] sm:$0xff] }
 0x262   : > { %3048 = vst.msk [vmem:[#allocation2 + $0x490] sm:$0xff] %vm1204_vm0, %v2792_v32  ;;  %v2793_v41 = vmax.f32 %v2211_v33, 0.0  ;;  %v4424_v42 = vadd.f32 %v8516_v5, %v4423_v40  ;;  %7078 = vmatmul.mubr.msk.bf16.gmra.mrb[252].mxu0 %vm1204_vm0, %v7669_v28  ;;  %v3298_v43 = vld [vmem:[#allocation2 + $0x460] sm:$0xff] }
 0x263   : > { %3046 = vst.msk [vmem:[#allocation2 + $0x480] sm:$0xff] %vm1204_vm0, %v2790_v37  ;;  %v2791_v44 = vmax.f32 %v2203_v38, 0.0  ;;  %7307 = vmatprep.mubr.msk.f32.mxu1 %vm1204_vm0, %v3298_v43 }
 0x264   : > { %5576 = vst.msk [vmem:[%s8524_s26 + $0x108] sm:$0xff] %vm5542_vm1, %v4429_v39  ;;  %5575 = vst.msk [vmem:[%s8524_s26 + $0x100] sm:$0xff] %vm5542_vm1, %v4424_v42  ;;  %v7150_v45 = vpop.f32.mrb[34].mxu1  ;;  %v3299_v46 = vld [vmem:[#allocation2 + $0x468] sm:$0xff]  ;;  %v3301_v59 = vld [vmem:[#allocation2 + $0x478] sm:$0xff] }
 0x265   : > { %3049 = vst.msk [vmem:[#allocation2 + $0x498] sm:$0xff] %vm1204_vm0, %v2793_v41  ;;  %3047 = vst.msk [vmem:[#allocation2 + $0x488] sm:$0xff] %vm1204_vm0, %v2791_v44  ;;  %v4439_v47 = vadd.f32 %v7150_v45, %v8516_v5  ;;  %v6975_v48 = vpop.f32.mrb[148].mxu0  ;;  %v4433_v49 = vpop.f32.mrb[35].mxu1  ;;  %7308 = vmatmul.mubr.msk.f32.gmra.mrb[140].mxu1 %vm1204_vm0, %v3299_v46 }
 0x266   : > { %v2224_v51 = vadd.f32 %v8712_v61, %v6975_v48  ;;  %v4434_v52 = vadd.f32 %v8516_v5, %v4433_v49  ;;  %v2215_v53 = vpop.f32.mrb[149].mxu0  ;;  %7310 = vmatprep.mubr.msk.f32.mxu1 %vm1204_vm0, %v3300_v50 }
 0x267   : > { %5578 = vst.msk [vmem:[%s8524_s26 + $0x118] sm:$0xff] %vm5542_vm1, %v4439_v47  ;;  %v2216_v54 = vadd.f32 %v8712_v61, %v2215_v53  ;;  %v6976_v55 = vpop.f32.mrb[150].mxu0 }
 0x268   : > { %v2796_v30 = vmax.f32 %v2224_v51, 0.0  ;;  %5577 = vst.msk [vmem:[%s8524_s26 + $0x110] sm:$0xff] %vm5542_vm1, %v4434_v52  ;;  %v2227_v56 = vadd.f32 %v8712_v61, %v6976_v55  ;;  %v2218_v57 = vpop.f32.mrb[151].mxu0  ;;  %v7153_v58 = vpop.f32.mrb[36].mxu1 }
 0x269   : > { %v2794_v60 = vmax.f32 %v2216_v54, 0.0  ;;  %v2219_v62 = vadd.f32 %v8712_v61, %v2218_v57  ;;  %v4449_v63 = vadd.f32 %v7153_v58, %v8516_v5  ;;  %v4443_v0 = vpop.f32.mrb[37].mxu1  ;;  %7311 = vmatmul.mubr.msk.f32.gmra.mrb[142].mxu1 %vm1204_vm0, %v3301_v59  ;;  %v3304_v12 = vld [vmem:[#allocation2 + $0x490] sm:$0xff] }
 0x26a   : > { %3052 = vst.msk [vmem:[#allocation2 + $0x4b0] sm:$0xff] %vm1204_vm0, %v2796_v30  ;;  %v2797_v1 = vmax.f32 %v2227_v56, 0.0  ;;  %v4444_v2 = vadd.f32 %v8516_v5, %v4443_v0  ;;  %v3302_v3 = vld [vmem:[#allocation2 + $0x480] sm:$0xff] }
 0x26b   : > { %3050 = vst.msk [vmem:[#allocation2 + $0x4a0] sm:$0xff] %vm1204_vm0, %v2794_v60  ;;  %v2795_v4 = vmax.f32 %v2219_v62, 0.0  ;;  %7313 = vmatprep.mubr.msk.f32.mxu1 %vm1204_vm0, %v3302_v3 }
 0x26c   : > { %5580 = vst.msk [vmem:[%s8524_s26 + $0x128] sm:$0xff] %vm5542_vm1, %v4449_v63  ;;  %5579 = vst.msk [vmem:[%s8524_s26 + $0x120] sm:$0xff] %vm5542_vm1, %v4444_v2  ;;  %v7156_v6 = vpop.f32.mrb[38].mxu1  ;;  %v3303_v8 = vld [vmem:[#allocation2 + $0x488] sm:$0xff]  ;;  %v3305_v22 = vld [vmem:[#allocation2 + $0x498] sm:$0xff] }
 0x26d   : > { %3053 = vst.msk [vmem:[#allocation2 + $0x4b8] sm:$0xff] %vm1204_vm0, %v2797_v1  ;;  %3051 = vst.msk [vmem:[#allocation2 + $0x4a8] sm:$0xff] %vm1204_vm0, %v2795_v4  ;;  %v4459_v9 = vadd.f32 %v7156_v6, %v8516_v5  ;;  %v6979_v10 = vpop.f32.mrb[152].mxu0  ;;  %v4453_v11 = vpop.f32.mrb[39].mxu1  ;;  %7314 = vmatmul.mubr.msk.f32.gmra.mrb[144].mxu1 %vm1204_vm0, %v3303_v8 }
 0x26e   : > { %v2240_v13 = vadd.f32 %v8712_v61, %v6979_v10  ;;  %v4454_v14 = vadd.f32 %v8516_v5, %v4453_v11  ;;  %v2231_v15 = vpop.f32.mrb[153].mxu0  ;;  %7316 = vmatprep.mubr.msk.f32.mxu1 %vm1204_vm0, %v3304_v12 }
 0x26f   : > { %5582 = vst.msk [vmem:[%s8524_s26 + $0x138] sm:$0xff] %vm5542_vm1, %v4459_v9  ;;  %v2232_v16 = vadd.f32 %v8712_v61, %v2231_v15  ;;  %v6980_v17 = vpop.f32.mrb[154].mxu0 }
 0x270   : > { %v2800_v18 = vmax.f32 %v2240_v13, 0.0  ;;  %5581 = vst.msk [vmem:[%s8524_s26 + $0x130] sm:$0xff] %vm5542_vm1, %v4454_v14  ;;  %v2243_v19 = vadd.f32 %v8712_v61, %v6980_v17  ;;  %v2234_v20 = vpop.f32.mrb[155].mxu0  ;;  %v7159_v21 = vpop.f32.mrb[40].mxu1 }
 0x271   : > { %v2798_v23 = vmax.f32 %v2232_v16, 0.0  ;;  %v2235_v24 = vadd.f32 %v8712_v61, %v2234_v20  ;;  %v4469_v25 = vadd.f32 %v7159_v21, %v8516_v5  ;;  %v4463_v26 = vpop.f32.mrb[41].mxu1  ;;  %7317 = vmatmul.mubr.msk.f32.gmra.mrb[146].mxu1 %vm1204_vm0, %v3305_v22  ;;  %v3308_v36 = vld [vmem:[#allocation2 + $0x4b0] sm:$0xff] }
 0x272   : > { %3056 = vst.msk [vmem:[#allocation2 + $0x4d0] sm:$0xff] %vm1204_vm0, %v2800_v18  ;;  %v2801_v27 = vmax.f32 %v2243_v19, 0.0  ;;  %v4464_v7 = vadd.f32 %v8516_v5, %v4463_v26  ;;  %v3306_v28 = vld [vmem:[#allocation2 + $0x4a0] sm:$0xff] }
 0x273   : > { %3054 = vst.msk [vmem:[#allocation2 + $0x4c0] sm:$0xff] %vm1204_vm0, %v2798_v23  ;;  %v2799_v29 = vmax.f32 %v2235_v24, 0.0  ;;  %7319 = vmatprep.mubr.msk.f32.mxu1 %vm1204_vm0, %v3306_v28 }
 0x274   : > { %5584 = vst.msk [vmem:[%s8524_s26 + $0x148] sm:$0xff] %vm5542_vm1, %v4469_v25  ;;  %5583 = vst.msk [vmem:[%s8524_s26 + $0x140] sm:$0xff] %vm5542_vm1, %v4464_v7  ;;  %v7162_v31 = vpop.f32.mrb[42].mxu1  ;;  %v3307_v32 = vld [vmem:[#allocation2 + $0x4a8] sm:$0xff]  ;;  %v3309_v46 = vld [vmem:[#allocation2 + $0x4b8] sm:$0xff] }
 0x275   : > { %3057 = vst.msk [vmem:[#allocation2 + $0x4d8] sm:$0xff] %vm1204_vm0, %v2801_v27  ;;  %3055 = vst.msk [vmem:[#allocation2 + $0x4c8] sm:$0xff] %vm1204_vm0, %v2799_v29  ;;  %v4479_v33 = vadd.f32 %v7162_v31, %v8516_v5  ;;  %v6983_v34 = vpop.f32.mrb[156].mxu0  ;;  %v4473_v35 = vpop.f32.mrb[43].mxu1  ;;  %7320 = vmatmul.mubr.msk.f32.gmra.mrb[148].mxu1 %vm1204_vm0, %v3307_v32 }
 0x276   : > { %v2256_v37 = vadd.f32 %v8712_v61, %v6983_v34  ;;  %v4474_v38 = vadd.f32 %v8516_v5, %v4473_v35  ;;  %v2247_v39 = vpop.f32.mrb[157].mxu0  ;;  %7322 = vmatprep.mubr.msk.f32.mxu1 %vm1204_vm0, %v3308_v36  ;;  %v8874_v34 = vld [vmem:[#allocation7] ss:$0 sm:$0xff] }
 0x277   : > { %5586 = vst.msk [vmem:[%s8524_s26 + $0x158] sm:$0xff] %vm5542_vm1, %v4479_v33  ;;  %v2248_v40 = vadd.f32 %v8712_v61, %v2247_v39  ;;  %v6984_v41 = vpop.f32.mrb[158].mxu0 }
 0x278   : > { %v2804_v42 = vmax.f32 %v2256_v37, 0.0  ;;  %5585 = vst.msk [vmem:[%s8524_s26 + $0x150] sm:$0xff] %vm5542_vm1, %v4474_v38  ;;  %v2259_v43 = vadd.f32 %v8712_v61, %v6984_v41  ;;  %v2250_v44 = vpop.f32.mrb[159].mxu0  ;;  %v7165_v45 = vpop.f32.mrb[44].mxu1 }
 0x279   : > { %v2802_v47 = vmax.f32 %v2248_v40, 0.0  ;;  %v2251_v48 = vadd.f32 %v8712_v61, %v2250_v44  ;;  %v4489_v49 = vadd.f32 %v7165_v45, %v8516_v5  ;;  %v4483_v50 = vpop.f32.mrb[45].mxu1  ;;  %7323 = vmatmul.mubr.msk.f32.gmra.mrb[150].mxu1 %vm1204_vm0, %v3309_v46  ;;  %v3312_v59 = vld [vmem:[#allocation2 + $0x4d0] sm:$0xff] }
 0x27a   : > { %3060 = vst.msk [vmem:[#allocation2 + $0x4f0] sm:$0xff] %vm1204_vm0, %v2804_v42  ;;  %v2805_v51 = vmax.f32 %v2259_v43, 0.0  ;;  %v4484_v52 = vadd.f32 %v8516_v5, %v4483_v50  ;;  %v3310_v53 = vld [vmem:[#allocation2 + $0x4c0] sm:$0xff] }
 0x27b   : > { %3058 = vst.msk [vmem:[#allocation2 + $0x4e0] sm:$0xff] %vm1204_vm0, %v2802_v47  ;;  %v2803_v54 = vmax.f32 %v2251_v48, 0.0  ;;  %7325 = vmatprep.mubr.msk.f32.mxu1 %vm1204_vm0, %v3310_v53 }
 0x27c   : > { %5588 = vst.msk [vmem:[%s8524_s26 + $0x168] sm:$0xff] %vm5542_vm1, %v4489_v49  ;;  %5587 = vst.msk [vmem:[%s8524_s26 + $0x160] sm:$0xff] %vm5542_vm1, %v4484_v52  ;;  %v7168_v55 = vpop.f32.mrb[46].mxu1  ;;  %v3311_v30 = vld [vmem:[#allocation2 + $0x4c8] sm:$0xff]  ;;  %v3313_v8 = vld [vmem:[#allocation2 + $0x4d8] sm:$0xff] }
 0x27d   : > { %3061 = vst.msk [vmem:[#allocation2 + $0x4f8] sm:$0xff] %vm1204_vm0, %v2805_v51  ;;  %3059 = vst.msk [vmem:[#allocation2 + $0x4e8] sm:$0xff] %vm1204_vm0, %v2803_v54  ;;  %v4499_v56 = vadd.f32 %v7168_v55, %v8516_v5  ;;  %v6987_v57 = vpop.f32.mrb[160].mxu0  ;;  %v4493_v58 = vpop.f32.mrb[47].mxu1  ;;  %7326 = vmatmul.mubr.msk.f32.gmra.mrb[152].mxu1 %vm1204_vm0, %v3311_v30 }
 0x27e   : > { %v2272_v60 = vadd.f32 %v8712_v61, %v6987_v57  ;;  %v4494_v62 = vadd.f32 %v8516_v5, %v4493_v58  ;;  %v2263_v63 = vpop.f32.mrb[161].mxu0  ;;  %7328 = vmatprep.mubr.msk.f32.mxu1 %vm1204_vm0, %v3312_v59 }
 0x27f   : > { %5590 = vst.msk [vmem:[%s8524_s26 + $0x178] sm:$0xff] %vm5542_vm1, %v4499_v56  ;;  %v2264_v0 = vadd.f32 %v8712_v61, %v2263_v63  ;;  %v6988_v1 = vpop.f32.mrb[162].mxu0 }
 0x280   : > { %v2808_v2 = vmax.f32 %v2272_v60, 0.0  ;;  %5589 = vst.msk [vmem:[%s8524_s26 + $0x170] sm:$0xff] %vm5542_vm1, %v4494_v62  ;;  %v2275_v3 = vadd.f32 %v8712_v61, %v6988_v1  ;;  %v2266_v4 = vpop.f32.mrb[163].mxu0  ;;  %v7171_v6 = vpop.f32.mrb[48].mxu1 }
 0x281   : > { %v2806_v9 = vmax.f32 %v2264_v0, 0.0  ;;  %v2267_v10 = vadd.f32 %v8712_v61, %v2266_v4  ;;  %v4509_v11 = vadd.f32 %v7171_v6, %v8516_v5  ;;  %v4503_v12 = vpop.f32.mrb[49].mxu1  ;;  %7329 = vmatmul.mubr.msk.f32.gmra.mrb[154].mxu1 %vm1204_vm0, %v3313_v8  ;;  %v3316_v22 = vld [vmem:[#allocation2 + $0x4f0] sm:$0xff] }
 0x282   : > { %3064 = vst.msk [vmem:[#allocation2 + $0x510] sm:$0xff] %vm1204_vm0, %v2808_v2  ;;  %v2809_v13 = vmax.f32 %v2275_v3, 0.0  ;;  %v4504_v14 = vadd.f32 %v8516_v5, %v4503_v12  ;;  %v3314_v15 = vld [vmem:[#allocation2 + $0x4e0] sm:$0xff] }
 0x283   : > { %3062 = vst.msk [vmem:[#allocation2 + $0x500] sm:$0xff] %vm1204_vm0, %v2806_v9  ;;  %v2807_v16 = vmax.f32 %v2267_v10, 0.0  ;;  %7331 = vmatprep.mubr.msk.f32.mxu1 %vm1204_vm0, %v3314_v15 }
 0x284   : > { %5592 = vst.msk [vmem:[%s8524_s26 + $0x188] sm:$0xff] %vm5542_vm1, %v4509_v11  ;;  %5591 = vst.msk [vmem:[%s8524_s26 + $0x180] sm:$0xff] %vm5542_vm1, %v4504_v14  ;;  %v7174_v17 = vpop.f32.mrb[50].mxu1  ;;  %v3315_v18 = vld [vmem:[#allocation2 + $0x4e8] sm:$0xff]  ;;  %v3317_v32 = vld [vmem:[#allocation2 + $0x4f8] sm:$0xff] }
 0x285   : > { %3065 = vst.msk [vmem:[#allocation2 + $0x518] sm:$0xff] %vm1204_vm0, %v2809_v13  ;;  %3063 = vst.msk [vmem:[#allocation2 + $0x508] sm:$0xff] %vm1204_vm0, %v2807_v16  ;;  %v4519_v19 = vadd.f32 %v7174_v17, %v8516_v5  ;;  %v6991_v20 = vpop.f32.mrb[164].mxu0  ;;  %v4513_v21 = vpop.f32.mrb[51].mxu1  ;;  %7332 = vmatmul.mubr.msk.f32.gmra.mrb[156].mxu1 %vm1204_vm0, %v3315_v18 }
 0x286   : > { %v2288_v23 = vadd.f32 %v8712_v61, %v6991_v20  ;;  %v4514_v24 = vadd.f32 %v8516_v5, %v4513_v21  ;;  %v2279_v25 = vpop.f32.mrb[165].mxu0  ;;  %7334 = vmatprep.mubr.msk.f32.mxu1 %vm1204_vm0, %v3316_v22 }
 0x287   : > { %5594 = vst.msk [vmem:[%s8524_s26 + $0x198] sm:$0xff] %vm5542_vm1, %v4519_v19  ;;  %v2280_v26 = vadd.f32 %v8712_v61, %v2279_v25  ;;  %v6992_v27 = vpop.f32.mrb[166].mxu0 }
 0x288   : > { %v2812_v7 = vmax.f32 %v2288_v23, 0.0  ;;  %5593 = vst.msk [vmem:[%s8524_s26 + $0x190] sm:$0xff] %vm5542_vm1, %v4514_v24  ;;  %v2291_v28 = vadd.f32 %v8712_v61, %v6992_v27  ;;  %v2282_v29 = vpop.f32.mrb[167].mxu0  ;;  %v7177_v31 = vpop.f32.mrb[52].mxu1 }
 0x289   : > { %v2810_v33 = vmax.f32 %v2280_v26, 0.0  ;;  %v2283_v5 = vadd.f32 %v8712_v61, %v2282_v29  ;;  %v4529_v35 = vadd.f32 %v8874_v34, %v7177_v31  ;;  %v4523_v36 = vpop.f32.mrb[53].mxu1  ;;  %7335 = vmatmul.mubr.msk.f32.gmra.mrb[158].mxu1 %vm1204_vm0, %v3317_v32  ;;  %v3320_v46 = vld [vmem:[#allocation2 + $0x510] sm:$0xff] }
 0x28a   : > { %3068 = vst.msk [vmem:[#allocation2 + $0x530] sm:$0xff] %vm1204_vm0, %v2812_v7  ;;  %v2813_v37 = vmax.f32 %v2291_v28, 0.0  ;;  %v4524_v38 = vadd.f32 %v8874_v34, %v4523_v36  ;;  %v3318_v39 = vld [vmem:[#allocation2 + $0x500] sm:$0xff] }
 0x28b   : > { %3066 = vst.msk [vmem:[#allocation2 + $0x520] sm:$0xff] %vm1204_vm0, %v2810_v33  ;;  %v2811_v40 = vmax.f32 %v2283_v5, 0.0  ;;  %7337 = vmatprep.mubr.msk.f32.mxu1 %vm1204_vm0, %v3318_v39 }
 0x28c   : > { %5596 = vst.msk [vmem:[%s8524_s26 + $0x1a8] sm:$0xff] %vm5542_vm1, %v4529_v35  ;;  %5595 = vst.msk [vmem:[%s8524_s26 + $0x1a0] sm:$0xff] %vm5542_vm1, %v4524_v38  ;;  %v7180_v41 = vpop.f32.mrb[54].mxu1  ;;  %v3319_v42 = vld [vmem:[#allocation2 + $0x508] sm:$0xff]  ;;  %v3321_v30 = vld [vmem:[#allocation2 + $0x518] sm:$0xff] }
 0x28d   : > { %3069 = vst.msk [vmem:[#allocation2 + $0x538] sm:$0xff] %vm1204_vm0, %v2813_v37  ;;  %3067 = vst.msk [vmem:[#allocation2 + $0x528] sm:$0xff] %vm1204_vm0, %v2811_v40  ;;  %v4539_v43 = vadd.f32 %v8874_v34, %v7180_v41  ;;  %v6995_v44 = vpop.f32.mrb[168].mxu0  ;;  %v4533_v45 = vpop.f32.mrb[55].mxu1  ;;  %7338 = vmatmul.mubr.msk.f32.gmra.mrb[160].mxu1 %vm1204_vm0, %v3319_v42 }
 0x28e   : > { %v2304_v47 = vadd.f32 %v8712_v61, %v6995_v44  ;;  %v4534_v48 = vadd.f32 %v8874_v34, %v4533_v45  ;;  %v2295_v49 = vpop.f32.mrb[169].mxu0  ;;  %7340 = vmatprep.mubr.msk.f32.mxu1 %vm1204_vm0, %v3320_v46 }
 0x28f   : > { %5598 = vst.msk [vmem:[%s8524_s26 + $0x1b8] sm:$0xff] %vm5542_vm1, %v4539_v43  ;;  %v2296_v50 = vadd.f32 %v8712_v61, %v2295_v49  ;;  %v6996_v51 = vpop.f32.mrb[170].mxu0 }
 0x290   : > { %v2816_v52 = vmax.f32 %v2304_v47, 0.0  ;;  %5597 = vst.msk [vmem:[%s8524_s26 + $0x1b0] sm:$0xff] %vm5542_vm1, %v4534_v48  ;;  %v2307_v53 = vadd.f32 %v8712_v61, %v6996_v51  ;;  %v2298_v54 = vpop.f32.mrb[171].mxu0  ;;  %v7183_v55 = vpop.f32.mrb[56].mxu1 }
 0x291   : > { %v2814_v56 = vmax.f32 %v2296_v50, 0.0  ;;  %v2299_v57 = vadd.f32 %v8712_v61, %v2298_v54  ;;  %v4549_v58 = vadd.f32 %v8874_v34, %v7183_v55  ;;  %v4543_v59 = vpop.f32.mrb[57].mxu1  ;;  %7341 = vmatmul.mubr.msk.f32.gmra.mrb[162].mxu1 %vm1204_vm0, %v3321_v30  ;;  %v3324_v8 = vld [vmem:[#allocation2 + $0x530] sm:$0xff] }
 0x292   : > { %3072 = vst.msk [vmem:[#allocation2 + $0x550] sm:$0xff] %vm1204_vm0, %v2816_v52  ;;  %v2817_v60 = vmax.f32 %v2307_v53, 0.0  ;;  %v4544_v62 = vadd.f32 %v8874_v34, %v4543_v59  ;;  %v3322_v63 = vld [vmem:[#allocation2 + $0x520] sm:$0xff] }
 0x293   : > { %3070 = vst.msk [vmem:[#allocation2 + $0x540] sm:$0xff] %vm1204_vm0, %v2814_v56  ;;  %v2815_v0 = vmax.f32 %v2299_v57, 0.0  ;;  %7343 = vmatprep.mubr.msk.f32.mxu1 %vm1204_vm0, %v3322_v63 }
 0x294   : > { %5600 = vst.msk [vmem:[%s8524_s26 + $0x1c8] sm:$0xff] %vm5542_vm1, %v4549_v58  ;;  %5599 = vst.msk [vmem:[%s8524_s26 + $0x1c0] sm:$0xff] %vm5542_vm1, %v4544_v62  ;;  %v7186_v1 = vpop.f32.mrb[58].mxu1  ;;  %v3323_v2 = vld [vmem:[#allocation2 + $0x528] sm:$0xff]  ;;  %v3325_v18 = vld [vmem:[#allocation2 + $0x538] sm:$0xff] }
 0x295   : > { %3073 = vst.msk [vmem:[#allocation2 + $0x558] sm:$0xff] %vm1204_vm0, %v2817_v60  ;;  %3071 = vst.msk [vmem:[#allocation2 + $0x548] sm:$0xff] %vm1204_vm0, %v2815_v0  ;;  %v4559_v3 = vadd.f32 %v8874_v34, %v7186_v1  ;;  %v6999_v4 = vpop.f32.mrb[172].mxu0  ;;  %v4553_v6 = vpop.f32.mrb[59].mxu1  ;;  %7344 = vmatmul.mubr.msk.f32.gmra.mrb[164].mxu1 %vm1204_vm0, %v3323_v2 }
 0x296   : > { %v2320_v9 = vadd.f32 %v8712_v61, %v6999_v4  ;;  %v4554_v10 = vadd.f32 %v8874_v34, %v4553_v6  ;;  %v2311_v11 = vpop.f32.mrb[173].mxu0  ;;  %7346 = vmatprep.mubr.msk.f32.mxu1 %vm1204_vm0, %v3324_v8 }
 0x297   : > { %5602 = vst.msk [vmem:[%s8524_s26 + $0x1d8] sm:$0xff] %vm5542_vm1, %v4559_v3  ;;  %v2312_v12 = vadd.f32 %v8712_v61, %v2311_v11  ;;  %v7000_v13 = vpop.f32.mrb[174].mxu0 }
 0x298   : > { %v2820_v14 = vmax.f32 %v2320_v9, 0.0  ;;  %5601 = vst.msk [vmem:[%s8524_s26 + $0x1d0] sm:$0xff] %vm5542_vm1, %v4554_v10  ;;  %v2323_v15 = vadd.f32 %v8712_v61, %v7000_v13  ;;  %v2314_v16 = vpop.f32.mrb[175].mxu0  ;;  %v7189_v17 = vpop.f32.mrb[60].mxu1 }
 0x299   : > { %v2818_v19 = vmax.f32 %v2312_v12, 0.0  ;;  %v2315_v20 = vadd.f32 %v8712_v61, %v2314_v16  ;;  %v4569_v21 = vadd.f32 %v8874_v34, %v7189_v17  ;;  %v4563_v22 = vpop.f32.mrb[61].mxu1  ;;  %7347 = vmatmul.mubr.msk.f32.gmra.mrb[166].mxu1 %vm1204_vm0, %v3325_v18  ;;  %v3328_v32 = vld [vmem:[#allocation2 + $0x550] sm:$0xff] }
 0x29a   : > { %3076 = vst.msk [vmem:[#allocation2 + $0x570] sm:$0xff] %vm1204_vm0, %v2820_v14  ;;  %v2821_v23 = vmax.f32 %v2323_v15, 0.0  ;;  %v4564_v24 = vadd.f32 %v8874_v34, %v4563_v22  ;;  %v3326_v25 = vld [vmem:[#allocation2 + $0x540] sm:$0xff] }
 0x29b   : > { %3074 = vst.msk [vmem:[#allocation2 + $0x560] sm:$0xff] %vm1204_vm0, %v2818_v19  ;;  %v2819_v26 = vmax.f32 %v2315_v20, 0.0  ;;  %7349 = vmatprep.mubr.msk.f32.mxu1 %vm1204_vm0, %v3326_v25 }
 0x29c   : > { %5604 = vst.msk [vmem:[%s8524_s26 + $0x1e8] sm:$0xff] %vm5542_vm1, %v4569_v21  ;;  %5603 = vst.msk [vmem:[%s8524_s26 + $0x1e0] sm:$0xff] %vm5542_vm1, %v4564_v24  ;;  %v7192_v27 = vpop.f32.mrb[62].mxu1  ;;  %v3327_v7 = vld [vmem:[#allocation2 + $0x548] sm:$0xff]  ;;  %v3329_v42 = vld [vmem:[#allocation2 + $0x558] sm:$0xff] }
 0x29d   : > { %3077 = vst.msk [vmem:[#allocation2 + $0x578] sm:$0xff] %vm1204_vm0, %v2821_v23  ;;  %3075 = vst.msk [vmem:[#allocation2 + $0x568] sm:$0xff] %vm1204_vm0, %v2819_v26  ;;  %v4579_v28 = vadd.f32 %v8874_v34, %v7192_v27  ;;  %v7003_v29 = vpop.f32.mrb[176].mxu0  ;;  %v4573_v31 = vpop.f32.mrb[63].mxu1  ;;  %7350 = vmatmul.mubr.msk.f32.gmra.mrb[168].mxu1 %vm1204_vm0, %v3327_v7 }
 0x29e   : > { %v2336_v33 = vadd.f32 %v8712_v61, %v7003_v29  ;;  %v4574_v5 = vadd.f32 %v8874_v34, %v4573_v31  ;;  %v2327_v35 = vpop.f32.mrb[177].mxu0  ;;  %7352 = vmatprep.mubr.msk.f32.mxu1 %vm1204_vm0, %v3328_v32 }
 0x29f   : > { %5606 = vst.msk [vmem:[%s8524_s26 + $0x1f8] sm:$0xff] %vm5542_vm1, %v4579_v28  ;;  %v2328_v36 = vadd.f32 %v8712_v61, %v2327_v35  ;;  %v7004_v37 = vpop.f32.mrb[178].mxu0 }
 0x2a0   : > { %v2824_v38 = vmax.f32 %v2336_v33, 0.0  ;;  %5605 = vst.msk [vmem:[%s8524_s26 + $0x1f0] sm:$0xff] %vm5542_vm1, %v4574_v5  ;;  %v2339_v39 = vadd.f32 %v8712_v61, %v7004_v37  ;;  %v2330_v40 = vpop.f32.mrb[179].mxu0  ;;  %v7195_v41 = vpop.f32.mrb[64].mxu1 }
 0x2a1   : > { %v2822_v43 = vmax.f32 %v2328_v36, 0.0  ;;  %v2331_v44 = vadd.f32 %v8712_v61, %v2330_v40  ;;  %v4589_v45 = vadd.f32 %v8874_v34, %v7195_v41  ;;  %v4583_v46 = vpop.f32.mrb[65].mxu1  ;;  %7353 = vmatmul.mubr.msk.f32.gmra.mrb[170].mxu1 %vm1204_vm0, %v3329_v42  ;;  %v3332_v30 = vld [vmem:[#allocation2 + $0x570] sm:$0xff] }
 0x2a2   : > { %3080 = vst.msk [vmem:[#allocation2 + $0x590] sm:$0xff] %vm1204_vm0, %v2824_v38  ;;  %v2825_v47 = vmax.f32 %v2339_v39, 0.0  ;;  %v4584_v48 = vadd.f32 %v8874_v34, %v4583_v46  ;;  %v3330_v49 = vld [vmem:[#allocation2 + $0x560] sm:$0xff] }
 0x2a3   : > { %3078 = vst.msk [vmem:[#allocation2 + $0x580] sm:$0xff] %vm1204_vm0, %v2822_v43  ;;  %v2823_v50 = vmax.f32 %v2331_v44, 0.0  ;;  %7355 = vmatprep.mubr.msk.f32.mxu1 %vm1204_vm0, %v3330_v49 }
 0x2a4   : > { %5608 = vst.msk [vmem:[%s8524_s26 + $0x208] sm:$0xff] %vm5542_vm1, %v4589_v45  ;;  %5607 = vst.msk [vmem:[%s8524_s26 + $0x200] sm:$0xff] %vm5542_vm1, %v4584_v48  ;;  %v7198_v51 = vpop.f32.mrb[66].mxu1  ;;  %v3331_v52 = vld [vmem:[#allocation2 + $0x568] sm:$0xff]  ;;  %v3333_v2 = vld [vmem:[#allocation2 + $0x578] sm:$0xff] }
 0x2a5   : > { %3081 = vst.msk [vmem:[#allocation2 + $0x598] sm:$0xff] %vm1204_vm0, %v2825_v47  ;;  %3079 = vst.msk [vmem:[#allocation2 + $0x588] sm:$0xff] %vm1204_vm0, %v2823_v50  ;;  %v4599_v53 = vadd.f32 %v8874_v34, %v7198_v51  ;;  %v7007_v54 = vpop.f32.mrb[180].mxu0  ;;  %v4593_v55 = vpop.f32.mrb[67].mxu1  ;;  %7356 = vmatmul.mubr.msk.f32.gmra.mrb[172].mxu1 %vm1204_vm0, %v3331_v52 }
 0x2a6   : > { %v2352_v56 = vadd.f32 %v8712_v61, %v7007_v54  ;;  %v4594_v57 = vadd.f32 %v8874_v34, %v4593_v55  ;;  %v2343_v58 = vpop.f32.mrb[181].mxu0  ;;  %7358 = vmatprep.mubr.msk.f32.mxu1 %vm1204_vm0, %v3332_v30 }
 0x2a7   : > { %5610 = vst.msk [vmem:[%s8524_s26 + $0x218] sm:$0xff] %vm5542_vm1, %v4599_v53  ;;  %v2344_v59 = vadd.f32 %v8712_v61, %v2343_v58  ;;  %v7008_v60 = vpop.f32.mrb[182].mxu0 }
 0x2a8   : > { %v2828_v62 = vmax.f32 %v2352_v56, 0.0  ;;  %5609 = vst.msk [vmem:[%s8524_s26 + $0x210] sm:$0xff] %vm5542_vm1, %v4594_v57  ;;  %v2355_v63 = vadd.f32 %v8712_v61, %v7008_v60  ;;  %v2346_v0 = vpop.f32.mrb[183].mxu0  ;;  %v7201_v1 = vpop.f32.mrb[68].mxu1 }
 0x2a9   : > { %v2826_v3 = vmax.f32 %v2344_v59, 0.0  ;;  %v2347_v4 = vadd.f32 %v8712_v61, %v2346_v0  ;;  %v4609_v6 = vadd.f32 %v8874_v34, %v7201_v1  ;;  %v4603_v8 = vpop.f32.mrb[69].mxu1  ;;  %7359 = vmatmul.mubr.msk.f32.gmra.mrb[174].mxu1 %vm1204_vm0, %v3333_v2  ;;  %v3336_v18 = vld [vmem:[#allocation2 + $0x590] sm:$0xff] }
 0x2aa   : > { %3084 = vst.msk [vmem:[#allocation2 + $0x5b0] sm:$0xff] %vm1204_vm0, %v2828_v62  ;;  %v2829_v9 = vmax.f32 %v2355_v63, 0.0  ;;  %v4604_v10 = vadd.f32 %v8874_v34, %v4603_v8  ;;  %v3334_v11 = vld [vmem:[#allocation2 + $0x580] sm:$0xff] }
 0x2ab   : > { %3082 = vst.msk [vmem:[#allocation2 + $0x5a0] sm:$0xff] %vm1204_vm0, %v2826_v3  ;;  %v2827_v12 = vmax.f32 %v2347_v4, 0.0  ;;  %7361 = vmatprep.mubr.msk.f32.mxu1 %vm1204_vm0, %v3334_v11 }
 0x2ac   : > { %5612 = vst.msk [vmem:[%s8524_s26 + $0x228] sm:$0xff] %vm5542_vm1, %v4609_v6  ;;  %5611 = vst.msk [vmem:[%s8524_s26 + $0x220] sm:$0xff] %vm5542_vm1, %v4604_v10  ;;  %v7204_v13 = vpop.f32.mrb[70].mxu1  ;;  %v3335_v14 = vld [vmem:[#allocation2 + $0x588] sm:$0xff]  ;;  %v3337_v7 = vld [vmem:[#allocation2 + $0x598] sm:$0xff] }
 0x2ad   : > { %3085 = vst.msk [vmem:[#allocation2 + $0x5b8] sm:$0xff] %vm1204_vm0, %v2829_v9  ;;  %3083 = vst.msk [vmem:[#allocation2 + $0x5a8] sm:$0xff] %vm1204_vm0, %v2827_v12  ;;  %v4619_v15 = vadd.f32 %v8874_v34, %v7204_v13  ;;  %v7011_v16 = vpop.f32.mrb[184].mxu0  ;;  %v4613_v17 = vpop.f32.mrb[71].mxu1  ;;  %7362 = vmatmul.mubr.msk.f32.gmra.mrb[176].mxu1 %vm1204_vm0, %v3335_v14 }
 0x2ae   : > { %v2368_v19 = vadd.f32 %v8712_v61, %v7011_v16  ;;  %v4614_v20 = vadd.f32 %v8874_v34, %v4613_v17  ;;  %v2359_v21 = vpop.f32.mrb[185].mxu0  ;;  %7364 = vmatprep.mubr.msk.f32.mxu1 %vm1204_vm0, %v3336_v18 }
 0x2af   : > { %5614 = vst.msk [vmem:[%s8524_s26 + $0x238] sm:$0xff] %vm5542_vm1, %v4619_v15  ;;  %v2360_v22 = vadd.f32 %v8712_v61, %v2359_v21  ;;  %v7012_v23 = vpop.f32.mrb[186].mxu0 }
 0x2b0   : > { %v2832_v24 = vmax.f32 %v2368_v19, 0.0  ;;  %5613 = vst.msk [vmem:[%s8524_s26 + $0x230] sm:$0xff] %vm5542_vm1, %v4614_v20  ;;  %v2371_v25 = vadd.f32 %v8712_v61, %v7012_v23  ;;  %v2362_v26 = vpop.f32.mrb[187].mxu0  ;;  %v7207_v27 = vpop.f32.mrb[72].mxu1 }
 0x2b1   : > { %v2830_v28 = vmax.f32 %v2360_v22, 0.0  ;;  %v2363_v29 = vadd.f32 %v8712_v61, %v2362_v26  ;;  %v4629_v31 = vadd.f32 %v8874_v34, %v7207_v27  ;;  %v4623_v32 = vpop.f32.mrb[73].mxu1  ;;  %7365 = vmatmul.mubr.msk.f32.gmra.mrb[178].mxu1 %vm1204_vm0, %v3337_v7  ;;  %v3340_v42 = vld [vmem:[#allocation2 + $0x5b0] sm:$0xff] }
 0x2b2   : > { %3088 = vst.msk [vmem:[#allocation2 + $0x5d0] sm:$0xff] %vm1204_vm0, %v2832_v24  ;;  %v2833_v33 = vmax.f32 %v2371_v25, 0.0  ;;  %v4624_v5 = vadd.f32 %v8874_v34, %v4623_v32  ;;  %v3338_v35 = vld [vmem:[#allocation2 + $0x5a0] sm:$0xff] }
 0x2b3   : > { %3086 = vst.msk [vmem:[#allocation2 + $0x5c0] sm:$0xff] %vm1204_vm0, %v2830_v28  ;;  %v2831_v36 = vmax.f32 %v2363_v29, 0.0  ;;  %7367 = vmatprep.mubr.msk.f32.mxu1 %vm1204_vm0, %v3338_v35  ;;  %v9063_v32 = vld [vmem:[#allocation5] ss:$0 sm:$0xff] }
 0x2b4   : > { %5616 = vst.msk [vmem:[%s8524_s26 + $0x248] sm:$0xff] %vm5542_vm1, %v4629_v31  ;;  %5615 = vst.msk [vmem:[%s8524_s26 + $0x240] sm:$0xff] %vm5542_vm1, %v4624_v5  ;;  %v7210_v37 = vpop.f32.mrb[74].mxu1  ;;  %v3339_v38 = vld [vmem:[#allocation2 + $0x5a8] sm:$0xff]  ;;  %v3341_v52 = vld [vmem:[#allocation2 + $0x5b8] sm:$0xff] }
 0x2b5   : > { %3089 = vst.msk [vmem:[#allocation2 + $0x5d8] sm:$0xff] %vm1204_vm0, %v2833_v33  ;;  %3087 = vst.msk [vmem:[#allocation2 + $0x5c8] sm:$0xff] %vm1204_vm0, %v2831_v36  ;;  %v4639_v39 = vadd.f32 %v8874_v34, %v7210_v37  ;;  %v7015_v40 = vpop.f32.mrb[188].mxu0  ;;  %v4633_v41 = vpop.f32.mrb[75].mxu1  ;;  %7368 = vmatmul.mubr.msk.f32.gmra.mrb[180].mxu1 %vm1204_vm0, %v3339_v38 }
 0x2b6   : > { %v2384_v43 = vadd.f32 %v8712_v61, %v7015_v40  ;;  %v4634_v44 = vadd.f32 %v8874_v34, %v4633_v41  ;;  %v2375_v45 = vpop.f32.mrb[189].mxu0  ;;  %7370 = vmatprep.mubr.msk.f32.mxu1 %vm1204_vm0, %v3340_v42 }
 0x2b7   : > { %5618 = vst.msk [vmem:[%s8524_s26 + $0x258] sm:$0xff] %vm5542_vm1, %v4639_v39  ;;  %v2376_v46 = vadd.f32 %v8712_v61, %v2375_v45  ;;  %v7016_v47 = vpop.f32.mrb[190].mxu0 }
 0x2b8   : > { %v2836_v48 = vmax.f32 %v2384_v43, 0.0  ;;  %5617 = vst.msk [vmem:[%s8524_s26 + $0x250] sm:$0xff] %vm5542_vm1, %v4634_v44  ;;  %v2387_v49 = vadd.f32 %v8712_v61, %v7016_v47  ;;  %v2378_v50 = vpop.f32.mrb[191].mxu0  ;;  %v7213_v51 = vpop.f32.mrb[76].mxu1 }
 0x2b9   : > { %v2834_v53 = vmax.f32 %v2376_v46, 0.0  ;;  %v2379_v54 = vadd.f32 %v8712_v61, %v2378_v50  ;;  %v4649_v55 = vadd.f32 %v8874_v34, %v7213_v51  ;;  %v4643_v30 = vpop.f32.mrb[77].mxu1  ;;  %7371 = vmatmul.mubr.msk.f32.gmra.mrb[182].mxu1 %vm1204_vm0, %v3341_v52  ;;  %v3344_v2 = vld [vmem:[#allocation2 + $0x5d0] sm:$0xff] }
 0x2ba   : > { %3092 = vst.msk [vmem:[#allocation2 + $0x5f0] sm:$0xff] %vm1204_vm0, %v2836_v48  ;;  %v2837_v56 = vmax.f32 %v2387_v49, 0.0  ;;  %v4644_v57 = vadd.f32 %v8874_v34, %v4643_v30  ;;  %v3342_v58 = vld [vmem:[#allocation2 + $0x5c0] sm:$0xff] }
 0x2bb   : > { %3090 = vst.msk [vmem:[#allocation2 + $0x5e0] sm:$0xff] %vm1204_vm0, %v2834_v53  ;;  %v2835_v59 = vmax.f32 %v2379_v54, 0.0  ;;  %7373 = vmatprep.mubr.msk.f32.mxu1 %vm1204_vm0, %v3342_v58 }
 0x2bc   : > { %5620 = vst.msk [vmem:[%s8524_s26 + $0x268] sm:$0xff] %vm5542_vm1, %v4649_v55  ;;  %5619 = vst.msk [vmem:[%s8524_s26 + $0x260] sm:$0xff] %vm5542_vm1, %v4644_v57  ;;  %v7216_v60 = vpop.f32.mrb[78].mxu1  ;;  %v3343_v62 = vld [vmem:[#allocation2 + $0x5c8] sm:$0xff]  ;;  %v3345_v14 = vld [vmem:[#allocation2 + $0x5d8] sm:$0xff] }
 0x2bd   : > { %3093 = vst.msk [vmem:[#allocation2 + $0x5f8] sm:$0xff] %vm1204_vm0, %v2837_v56  ;;  %3091 = vst.msk [vmem:[#allocation2 + $0x5e8] sm:$0xff] %vm1204_vm0, %v2835_v59  ;;  %v4659_v63 = vadd.f32 %v8874_v34, %v7216_v60  ;;  %v7019_v0 = vpop.f32.mrb[192].mxu0  ;;  %v4653_v1 = vpop.f32.mrb[79].mxu1  ;;  %7374 = vmatmul.mubr.msk.f32.gmra.mrb[184].mxu1 %vm1204_vm0, %v3343_v62 }
 0x2be   : > { %v2400_v3 = vadd.f32 %v8712_v61, %v7019_v0  ;;  %v4654_v4 = vadd.f32 %v8874_v34, %v4653_v1  ;;  %v2391_v6 = vpop.f32.mrb[193].mxu0  ;;  %7376 = vmatprep.mubr.msk.f32.mxu1 %vm1204_vm0, %v3344_v2 }
 0x2bf   : > { %5622 = vst.msk [vmem:[%s8524_s26 + $0x278] sm:$0xff] %vm5542_vm1, %v4659_v63  ;;  %v2392_v8 = vadd.f32 %v8712_v61, %v2391_v6  ;;  %v7020_v9 = vpop.f32.mrb[194].mxu0 }
 0x2c0   : > { %v2840_v10 = vmax.f32 %v2400_v3, 0.0  ;;  %5621 = vst.msk [vmem:[%s8524_s26 + $0x270] sm:$0xff] %vm5542_vm1, %v4654_v4  ;;  %v2403_v11 = vadd.f32 %v8712_v61, %v7020_v9  ;;  %v2394_v12 = vpop.f32.mrb[195].mxu0  ;;  %v7219_v13 = vpop.f32.mrb[80].mxu1 }
 0x2c1   : > { %v2838_v15 = vmax.f32 %v2392_v8, 0.0  ;;  %v2395_v16 = vadd.f32 %v8712_v61, %v2394_v12  ;;  %v4669_v17 = vadd.f32 %v8874_v34, %v7219_v13  ;;  %v4663_v18 = vpop.f32.mrb[81].mxu1  ;;  %7377 = vmatmul.mubr.msk.f32.gmra.mrb[186].mxu1 %vm1204_vm0, %v3345_v14  ;;  %v3348_v7 = vld [vmem:[#allocation2 + $0x5f0] sm:$0xff] }
 0x2c2   : > { %3096 = vst.msk [vmem:[#allocation2 + $0x610] sm:$0xff] %vm1204_vm0, %v2840_v10  ;;  %v2841_v19 = vmax.f32 %v2403_v11, 0.0  ;;  %v4664_v20 = vadd.f32 %v8874_v34, %v4663_v18  ;;  %v3346_v21 = vld [vmem:[#allocation2 + $0x5e0] sm:$0xff] }
 0x2c3   : > { %3094 = vst.msk [vmem:[#allocation2 + $0x600] sm:$0xff] %vm1204_vm0, %v2838_v15  ;;  %v2839_v22 = vmax.f32 %v2395_v16, 0.0  ;;  %7379 = vmatprep.mubr.msk.f32.mxu1 %vm1204_vm0, %v3346_v21 }
 0x2c4   : > { %5624 = vst.msk [vmem:[%s8524_s26 + $0x288] sm:$0xff] %vm5542_vm1, %v4669_v17  ;;  %5623 = vst.msk [vmem:[%s8524_s26 + $0x280] sm:$0xff] %vm5542_vm1, %v4664_v20  ;;  %v7222_v23 = vpop.f32.mrb[82].mxu1  ;;  %v3347_v24 = vld [vmem:[#allocation2 + $0x5e8] sm:$0xff]  ;;  %v3349_v38 = vld [vmem:[#allocation2 + $0x5f8] sm:$0xff] }
 0x2c5   : > { %3097 = vst.msk [vmem:[#allocation2 + $0x618] sm:$0xff] %vm1204_vm0, %v2841_v19  ;;  %3095 = vst.msk [vmem:[#allocation2 + $0x608] sm:$0xff] %vm1204_vm0, %v2839_v22  ;;  %v4679_v25 = vadd.f32 %v8874_v34, %v7222_v23  ;;  %v7023_v26 = vpop.f32.mrb[196].mxu0  ;;  %v4673_v27 = vpop.f32.mrb[83].mxu1  ;;  %7380 = vmatmul.mubr.msk.f32.gmra.mrb[188].mxu1 %vm1204_vm0, %v3347_v24 }
 0x2c6   : > { %v2416_v28 = vadd.f32 %v8712_v61, %v7023_v26  ;;  %v4674_v29 = vadd.f32 %v8874_v34, %v4673_v27  ;;  %v2407_v31 = vpop.f32.mrb[197].mxu0  ;;  %7382 = vmatprep.mubr.msk.f32.mxu1 %vm1204_vm0, %v3348_v7 }
 0x2c7   : > { %5626 = vst.msk [vmem:[%s8524_s26 + $0x298] sm:$0xff] %vm5542_vm1, %v4679_v25  ;;  %v2408_v33 = vadd.f32 %v9063_v32, %v2407_v31  ;;  %v7024_v5 = vpop.f32.mrb[198].mxu0 }
 0x2c8   : > { %v2844_v35 = vmax.f32 %v2416_v28, 0.0  ;;  %5625 = vst.msk [vmem:[%s8524_s26 + $0x290] sm:$0xff] %vm5542_vm1, %v4674_v29  ;;  %v2419_v36 = vadd.f32 %v9063_v32, %v7024_v5  ;;  %v2410_v37 = vpop.f32.mrb[199].mxu0  ;;  %v7225_v61 = vpop.f32.mrb[84].mxu1 }
 0x2c9   : > { %v2842_v39 = vmax.f32 %v2408_v33, 0.0  ;;  %v2411_v40 = vadd.f32 %v9063_v32, %v2410_v37  ;;  %v4689_v41 = vadd.f32 %v8874_v34, %v7225_v61  ;;  %v4683_v42 = vpop.f32.mrb[85].mxu1  ;;  %7383 = vmatmul.mubr.msk.f32.gmra.mrb[190].mxu1 %vm1204_vm0, %v3349_v38  ;;  %v3352_v52 = vld [vmem:[#allocation2 + $0x610] sm:$0xff] }
 0x2ca   : > { %3100 = vst.msk [vmem:[#allocation2 + $0x630] sm:$0xff] %vm1204_vm0, %v2844_v35  ;;  %v2845_v43 = vmax.f32 %v2419_v36, 0.0  ;;  %v4684_v44 = vadd.f32 %v8874_v34, %v4683_v42  ;;  %v3350_v45 = vld [vmem:[#allocation2 + $0x600] sm:$0xff] }
 0x2cb   : > { %3098 = vst.msk [vmem:[#allocation2 + $0x620] sm:$0xff] %vm1204_vm0, %v2842_v39  ;;  %v2843_v46 = vmax.f32 %v2411_v40, 0.0  ;;  %7385 = vmatprep.mubr.msk.f32.mxu1 %vm1204_vm0, %v3350_v45 }
 0x2cc   : > { %5628 = vst.msk [vmem:[%s8524_s26 + $0x2a8] sm:$0xff] %vm5542_vm1, %v4689_v41  ;;  %5627 = vst.msk [vmem:[%s8524_s26 + $0x2a0] sm:$0xff] %vm5542_vm1, %v4684_v44  ;;  %v7228_v47 = vpop.f32.mrb[86].mxu1  ;;  %v3351_v48 = vld [vmem:[#allocation2 + $0x608] sm:$0xff]  ;;  %v3353_v62 = vld [vmem:[#allocation2 + $0x618] sm:$0xff] }
 0x2cd   : > { %3101 = vst.msk [vmem:[#allocation2 + $0x638] sm:$0xff] %vm1204_vm0, %v2845_v43  ;;  %3099 = vst.msk [vmem:[#allocation2 + $0x628] sm:$0xff] %vm1204_vm0, %v2843_v46  ;;  %v4699_v49 = vadd.f32 %v8874_v34, %v7228_v47  ;;  %v7027_v50 = vpop.f32.mrb[200].mxu0  ;;  %v4693_v51 = vpop.f32.mrb[87].mxu1  ;;  %7386 = vmatmul.mubr.msk.f32.gmra.mrb[192].mxu1 %vm1204_vm0, %v3351_v48 }
 0x2ce   : > { %v2432_v53 = vadd.f32 %v9063_v32, %v7027_v50  ;;  %v4694_v54 = vadd.f32 %v8874_v34, %v4693_v51  ;;  %v2423_v55 = vpop.f32.mrb[201].mxu0  ;;  %7388 = vmatprep.mubr.msk.f32.mxu1 %vm1204_vm0, %v3352_v52 }
 0x2cf   : > { %5630 = vst.msk [vmem:[%s8524_s26 + $0x2b8] sm:$0xff] %vm5542_vm1, %v4699_v49  ;;  %v2424_v30 = vadd.f32 %v9063_v32, %v2423_v55  ;;  %v7028_v56 = vpop.f32.mrb[202].mxu0 }
 0x2d0   : > { %v2848_v57 = vmax.f32 %v2432_v53, 0.0  ;;  %5629 = vst.msk [vmem:[%s8524_s26 + $0x2b0] sm:$0xff] %vm5542_vm1, %v4694_v54  ;;  %v2435_v58 = vadd.f32 %v9063_v32, %v7028_v56  ;;  %v2426_v59 = vpop.f32.mrb[203].mxu0  ;;  %v7231_v60 = vpop.f32.mrb[88].mxu1 }
 0x2d1   : > { %v2846_v63 = vmax.f32 %v2424_v30, 0.0  ;;  %v2427_v0 = vadd.f32 %v9063_v32, %v2426_v59  ;;  %v4709_v1 = vadd.f32 %v8874_v34, %v7231_v60  ;;  %v4703_v2 = vpop.f32.mrb[89].mxu1  ;;  %7389 = vmatmul.mubr.msk.f32.gmra.mrb[194].mxu1 %vm1204_vm0, %v3353_v62  ;;  %v3356_v14 = vld [vmem:[#allocation2 + $0x630] sm:$0xff] }
 0x2d2   : > { %3104 = vst.msk [vmem:[#allocation2 + $0x650] sm:$0xff] %vm1204_vm0, %v2848_v57  ;;  %v2849_v3 = vmax.f32 %v2435_v58, 0.0  ;;  %v4704_v4 = vadd.f32 %v8874_v34, %v4703_v2  ;;  %v3354_v6 = vld [vmem:[#allocation2 + $0x620] sm:$0xff] }
 0x2d3   : > { %3102 = vst.msk [vmem:[#allocation2 + $0x640] sm:$0xff] %vm1204_vm0, %v2846_v63  ;;  %v2847_v8 = vmax.f32 %v2427_v0, 0.0  ;;  %7391 = vmatprep.mubr.msk.f32.mxu1 %vm1204_vm0, %v3354_v6 }
 0x2d4   : > { %5632 = vst.msk [vmem:[%s8524_s26 + $0x2c8] sm:$0xff] %vm5542_vm1, %v4709_v1  ;;  %5631 = vst.msk [vmem:[%s8524_s26 + $0x2c0] sm:$0xff] %vm5542_vm1, %v4704_v4  ;;  %v7234_v9 = vpop.f32.mrb[90].mxu1  ;;  %v3355_v10 = vld [vmem:[#allocation2 + $0x628] sm:$0xff]  ;;  %v3357_v24 = vld [vmem:[#allocation2 + $0x638] sm:$0xff] }
 0x2d5   : > { %3105 = vst.msk [vmem:[#allocation2 + $0x658] sm:$0xff] %vm1204_vm0, %v2849_v3  ;;  %3103 = vst.msk [vmem:[#allocation2 + $0x648] sm:$0xff] %vm1204_vm0, %v2847_v8  ;;  %v4719_v11 = vadd.f32 %v8874_v34, %v7234_v9  ;;  %v7031_v12 = vpop.f32.mrb[204].mxu0  ;;  %v4713_v13 = vpop.f32.mrb[91].mxu1  ;;  %7392 = vmatmul.mubr.msk.f32.gmra.mrb[196].mxu1 %vm1204_vm0, %v3355_v10 }
 0x2d6   : > { %v2448_v15 = vadd.f32 %v9063_v32, %v7031_v12  ;;  %v4714_v16 = vadd.f32 %v8874_v34, %v4713_v13  ;;  %v2439_v17 = vpop.f32.mrb[205].mxu0  ;;  %7394 = vmatprep.mubr.msk.f32.mxu1 %vm1204_vm0, %v3356_v14 }
 0x2d7   : > { %5634 = vst.msk [vmem:[%s8524_s26 + $0x2d8] sm:$0xff] %vm5542_vm1, %v4719_v11  ;;  %v2440_v18 = vadd.f32 %v9063_v32, %v2439_v17  ;;  %v7032_v19 = vpop.f32.mrb[206].mxu0 }
 0x2d8   : > { %v2852_v20 = vmax.f32 %v2448_v15, 0.0  ;;  %5633 = vst.msk [vmem:[%s8524_s26 + $0x2d0] sm:$0xff] %vm5542_vm1, %v4714_v16  ;;  %v2451_v21 = vadd.f32 %v9063_v32, %v7032_v19  ;;  %v2442_v22 = vpop.f32.mrb[207].mxu0  ;;  %v7237_v23 = vpop.f32.mrb[92].mxu1 }
 0x2d9   : > { %v2850_v25 = vmax.f32 %v2440_v18, 0.0  ;;  %v2443_v26 = vadd.f32 %v9063_v32, %v2442_v22  ;;  %v4729_v27 = vadd.f32 %v8874_v34, %v7237_v23  ;;  %v4723_v7 = vpop.f32.mrb[93].mxu1  ;;  %7395 = vmatmul.mubr.msk.f32.gmra.mrb[198].mxu1 %vm1204_vm0, %v3357_v24  ;;  %v3360_v38 = vld [vmem:[#allocation2 + $0x650] sm:$0xff] }
 0x2da   : > { %3108 = vst.msk [vmem:[#allocation2 + $0x670] sm:$0xff] %vm1204_vm0, %v2852_v20  ;;  %v2853_v28 = vmax.f32 %v2451_v21, 0.0  ;;  %v4724_v29 = vadd.f32 %v8874_v34, %v4723_v7  ;;  %v3358_v31 = vld [vmem:[#allocation2 + $0x640] sm:$0xff] }
 0x2db   : > { %3106 = vst.msk [vmem:[#allocation2 + $0x660] sm:$0xff] %vm1204_vm0, %v2850_v25  ;;  %v2851_v33 = vmax.f32 %v2443_v26, 0.0  ;;  %7397 = vmatprep.mubr.msk.f32.mxu1 %vm1204_vm0, %v3358_v31 }
 0x2dc   : > { %5636 = vst.msk [vmem:[%s8524_s26 + $0x2e8] sm:$0xff] %vm5542_vm1, %v4729_v27  ;;  %5635 = vst.msk [vmem:[%s8524_s26 + $0x2e0] sm:$0xff] %vm5542_vm1, %v4724_v29  ;;  %v7240_v5 = vpop.f32.mrb[94].mxu1  ;;  %v3359_v35 = vld [vmem:[#allocation2 + $0x648] sm:$0xff]  ;;  %v3361_v48 = vld [vmem:[#allocation2 + $0x658] sm:$0xff] }
 0x2dd   : > { %3109 = vst.msk [vmem:[#allocation2 + $0x678] sm:$0xff] %vm1204_vm0, %v2853_v28  ;;  %3107 = vst.msk [vmem:[#allocation2 + $0x668] sm:$0xff] %vm1204_vm0, %v2851_v33  ;;  %v4739_v36 = vadd.f32 %v8874_v34, %v7240_v5  ;;  %v7035_v37 = vpop.f32.mrb[208].mxu0  ;;  %v4733_v61 = vpop.f32.mrb[95].mxu1  ;;  %7398 = vmatmul.mubr.msk.f32.gmra.mrb[200].mxu1 %vm1204_vm0, %v3359_v35 }
 0x2de   : > { %v2464_v39 = vadd.f32 %v9063_v32, %v7035_v37  ;;  %v4734_v40 = vadd.f32 %v8874_v34, %v4733_v61  ;;  %v2455_v41 = vpop.f32.mrb[209].mxu0  ;;  %7400 = vmatprep.mubr.msk.f32.mxu1 %vm1204_vm0, %v3360_v38 }
 0x2df   : > { %5638 = vst.msk [vmem:[%s8524_s26 + $0x2f8] sm:$0xff] %vm5542_vm1, %v4739_v36  ;;  %v2456_v42 = vadd.f32 %v9063_v32, %v2455_v41  ;;  %v7036_v43 = vpop.f32.mrb[210].mxu0 }
 0x2e0   : > { %v2856_v44 = vmax.f32 %v2464_v39, 0.0  ;;  %5637 = vst.msk [vmem:[%s8524_s26 + $0x2f0] sm:$0xff] %vm5542_vm1, %v4734_v40  ;;  %v2467_v45 = vadd.f32 %v9063_v32, %v7036_v43  ;;  %v2458_v46 = vpop.f32.mrb[211].mxu0  ;;  %v7243_v47 = vpop.f32.mrb[96].mxu1 }
 0x2e1   : > { %v2854_v49 = vmax.f32 %v2456_v42, 0.0  ;;  %v2459_v50 = vadd.f32 %v9063_v32, %v2458_v46  ;;  %v4749_v51 = vadd.f32 %v8874_v34, %v7243_v47  ;;  %v4743_v52 = vpop.f32.mrb[97].mxu1  ;;  %7401 = vmatmul.mubr.msk.f32.gmra.mrb[202].mxu1 %vm1204_vm0, %v3361_v48  ;;  %v3364_v62 = vld [vmem:[#allocation2 + $0x670] sm:$0xff] }
 0x2e2   : > { %3112 = vst.msk [vmem:[#allocation2 + $0x690] sm:$0xff] %vm1204_vm0, %v2856_v44  ;;  %v2857_v53 = vmax.f32 %v2467_v45, 0.0  ;;  %v4744_v54 = vadd.f32 %v8874_v34, %v4743_v52  ;;  %v3362_v55 = vld [vmem:[#allocation2 + $0x660] sm:$0xff] }
 0x2e3   : > { %3110 = vst.msk [vmem:[#allocation2 + $0x680] sm:$0xff] %vm1204_vm0, %v2854_v49  ;;  %v2855_v30 = vmax.f32 %v2459_v50, 0.0  ;;  %7403 = vmatprep.mubr.msk.f32.mxu1 %vm1204_vm0, %v3362_v55 }
 0x2e4   : > { %5640 = vst.msk [vmem:[%s8524_s26 + $0x308] sm:$0xff] %vm5542_vm1, %v4749_v51  ;;  %5639 = vst.msk [vmem:[%s8524_s26 + $0x300] sm:$0xff] %vm5542_vm1, %v4744_v54  ;;  %v7246_v56 = vpop.f32.mrb[98].mxu1  ;;  %v3363_v57 = vld [vmem:[#allocation2 + $0x668] sm:$0xff]  ;;  %v3365_v10 = vld [vmem:[#allocation2 + $0x678] sm:$0xff] }
 0x2e5   : > { %3113 = vst.msk [vmem:[#allocation2 + $0x698] sm:$0xff] %vm1204_vm0, %v2857_v53  ;;  %3111 = vst.msk [vmem:[#allocation2 + $0x688] sm:$0xff] %vm1204_vm0, %v2855_v30  ;;  %v4759_v58 = vadd.f32 %v8874_v34, %v7246_v56  ;;  %v7039_v59 = vpop.f32.mrb[212].mxu0  ;;  %v4753_v60 = vpop.f32.mrb[99].mxu1  ;;  %7404 = vmatmul.mubr.msk.f32.gmra.mrb[204].mxu1 %vm1204_vm0, %v3363_v57 }
 0x2e6   : > { %v2480_v63 = vadd.f32 %v9063_v32, %v7039_v59  ;;  %v4754_v0 = vadd.f32 %v8874_v34, %v4753_v60  ;;  %v2471_v1 = vpop.f32.mrb[213].mxu0  ;;  %7406 = vmatprep.mubr.msk.f32.mxu1 %vm1204_vm0, %v3364_v62 }
 0x2e7   : > { %5642 = vst.msk [vmem:[%s8524_s26 + $0x318] sm:$0xff] %vm5542_vm1, %v4759_v58  ;;  %v2472_v2 = vadd.f32 %v9063_v32, %v2471_v1  ;;  %v7040_v3 = vpop.f32.mrb[214].mxu0 }
 0x2e8   : > { %v2860_v4 = vmax.f32 %v2480_v63, 0.0  ;;  %5641 = vst.msk [vmem:[%s8524_s26 + $0x310] sm:$0xff] %vm5542_vm1, %v4754_v0  ;;  %v2483_v6 = vadd.f32 %v9063_v32, %v7040_v3  ;;  %v2474_v8 = vpop.f32.mrb[215].mxu0  ;;  %v7249_v9 = vpop.f32.mrb[100].mxu1 }
 0x2e9   : > { %v2858_v11 = vmax.f32 %v2472_v2, 0.0  ;;  %v2475_v12 = vadd.f32 %v9063_v32, %v2474_v8  ;;  %v4769_v13 = vadd.f32 %v8874_v34, %v7249_v9  ;;  %v4763_v14 = vpop.f32.mrb[101].mxu1  ;;  %7407 = vmatmul.mubr.msk.f32.gmra.mrb[206].mxu1 %vm1204_vm0, %v3365_v10  ;;  %v3368_v24 = vld [vmem:[#allocation2 + $0x690] sm:$0xff] }
 0x2ea   : > { %3116 = vst.msk [vmem:[#allocation2 + $0x6b0] sm:$0xff] %vm1204_vm0, %v2860_v4  ;;  %v2861_v15 = vmax.f32 %v2483_v6, 0.0  ;;  %v4764_v16 = vadd.f32 %v8874_v34, %v4763_v14  ;;  %v3366_v17 = vld [vmem:[#allocation2 + $0x680] sm:$0xff] }
 0x2eb   : > { %3114 = vst.msk [vmem:[#allocation2 + $0x6a0] sm:$0xff] %vm1204_vm0, %v2858_v11  ;;  %v2859_v18 = vmax.f32 %v2475_v12, 0.0  ;;  %7409 = vmatprep.mubr.msk.f32.mxu1 %vm1204_vm0, %v3366_v17  ;;  %v9226_v6 = vld [vmem:[#allocation7] ss:$0 sm:$0xff] }
 0x2ec   : > { %5644 = vst.msk [vmem:[%s8524_s26 + $0x328] sm:$0xff] %vm5542_vm1, %v4769_v13  ;;  %5643 = vst.msk [vmem:[%s8524_s26 + $0x320] sm:$0xff] %vm5542_vm1, %v4764_v16  ;;  %v7252_v19 = vpop.f32.mrb[102].mxu1  ;;  %v3367_v20 = vld [vmem:[#allocation2 + $0x688] sm:$0xff]  ;;  %v3369_v35 = vld [vmem:[#allocation2 + $0x698] sm:$0xff] }
 0x2ed   : > { %3117 = vst.msk [vmem:[#allocation2 + $0x6b8] sm:$0xff] %vm1204_vm0, %v2861_v15  ;;  %3115 = vst.msk [vmem:[#allocation2 + $0x6a8] sm:$0xff] %vm1204_vm0, %v2859_v18  ;;  %v4779_v21 = vadd.f32 %v8874_v34, %v7252_v19  ;;  %v7043_v22 = vpop.f32.mrb[216].mxu0  ;;  %v4773_v23 = vpop.f32.mrb[103].mxu1  ;;  %7410 = vmatmul.mubr.msk.f32.gmra.mrb[208].mxu1 %vm1204_vm0, %v3367_v20 }
 0x2ee   : > { %v2496_v25 = vadd.f32 %v9063_v32, %v7043_v22  ;;  %v4774_v26 = vadd.f32 %v8874_v34, %v4773_v23  ;;  %v2487_v27 = vpop.f32.mrb[217].mxu0  ;;  %7412 = vmatprep.mubr.msk.f32.mxu1 %vm1204_vm0, %v3368_v24 }
 0x2ef   : > { %5646 = vst.msk [vmem:[%s8524_s26 + $0x338] sm:$0xff] %vm5542_vm1, %v4779_v21  ;;  %v2488_v7 = vadd.f32 %v9063_v32, %v2487_v27  ;;  %v7044_v28 = vpop.f32.mrb[218].mxu0 }
 0x2f0   : > { %v2864_v29 = vmax.f32 %v2496_v25, 0.0  ;;  %5645 = vst.msk [vmem:[%s8524_s26 + $0x330] sm:$0xff] %vm5542_vm1, %v4774_v26  ;;  %v2499_v31 = vadd.f32 %v9063_v32, %v7044_v28  ;;  %v2490_v33 = vpop.f32.mrb[219].mxu0  ;;  %v7255_v5 = vpop.f32.mrb[104].mxu1 }
 0x2f1   : > { %v2862_v36 = vmax.f32 %v2488_v7, 0.0  ;;  %v2491_v37 = vadd.f32 %v9063_v32, %v2490_v33  ;;  %v4789_v61 = vadd.f32 %v8874_v34, %v7255_v5  ;;  %v4783_v38 = vpop.f32.mrb[105].mxu1  ;;  %7413 = vmatmul.mubr.msk.f32.gmra.mrb[210].mxu1 %vm1204_vm0, %v3369_v35  ;;  %v3372_v48 = vld [vmem:[#allocation2 + $0x6b0] sm:$0xff] }
 0x2f2   : > { %3120 = vst.msk [vmem:[#allocation2 + $0x6d0] sm:$0xff] %vm1204_vm0, %v2864_v29  ;;  %v2865_v39 = vmax.f32 %v2499_v31, 0.0  ;;  %v4784_v40 = vadd.f32 %v8874_v34, %v4783_v38  ;;  %v3370_v41 = vld [vmem:[#allocation2 + $0x6a0] sm:$0xff] }
 0x2f3   : > { %3118 = vst.msk [vmem:[#allocation2 + $0x6c0] sm:$0xff] %vm1204_vm0, %v2862_v36  ;;  %v2863_v42 = vmax.f32 %v2491_v37, 0.0  ;;  %7415 = vmatprep.mubr.msk.f32.mxu1 %vm1204_vm0, %v3370_v41 }
 0x2f4   : > { %5648 = vst.msk [vmem:[%s8524_s26 + $0x348] sm:$0xff] %vm5542_vm1, %v4789_v61  ;;  %5647 = vst.msk [vmem:[%s8524_s26 + $0x340] sm:$0xff] %vm5542_vm1, %v4784_v40  ;;  %v7258_v43 = vpop.f32.mrb[106].mxu1  ;;  %v3371_v44 = vld [vmem:[#allocation2 + $0x6a8] sm:$0xff]  ;;  %v3373_v57 = vld [vmem:[#allocation2 + $0x6b8] sm:$0xff] }
 0x2f5   : > { %3121 = vst.msk [vmem:[#allocation2 + $0x6d8] sm:$0xff] %vm1204_vm0, %v2865_v39  ;;  %3119 = vst.msk [vmem:[#allocation2 + $0x6c8] sm:$0xff] %vm1204_vm0, %v2863_v42  ;;  %v4799_v45 = vadd.f32 %v8874_v34, %v7258_v43  ;;  %v7047_v46 = vpop.f32.mrb[220].mxu0  ;;  %v4793_v47 = vpop.f32.mrb[107].mxu1  ;;  %7416 = vmatmul.mubr.msk.f32.gmra.mrb[212].mxu1 %vm1204_vm0, %v3371_v44 }
 0x2f6   : > { %v2512_v49 = vadd.f32 %v9063_v32, %v7047_v46  ;;  %v4794_v50 = vadd.f32 %v8874_v34, %v4793_v47  ;;  %v2503_v51 = vpop.f32.mrb[221].mxu0  ;;  %7418 = vmatprep.mubr.msk.f32.mxu1 %vm1204_vm0, %v3372_v48 }
 0x2f7   : > { %5650 = vst.msk [vmem:[%s8524_s26 + $0x358] sm:$0xff] %vm5542_vm1, %v4799_v45  ;;  %v2504_v52 = vadd.f32 %v9063_v32, %v2503_v51  ;;  %v7048_v53 = vpop.f32.mrb[222].mxu0 }
 0x2f8   : > { %v2868_v54 = vmax.f32 %v2512_v49, 0.0  ;;  %5649 = vst.msk [vmem:[%s8524_s26 + $0x350] sm:$0xff] %vm5542_vm1, %v4794_v50  ;;  %v2515_v55 = vadd.f32 %v9063_v32, %v7048_v53  ;;  %v2506_v30 = vpop.f32.mrb[223].mxu0  ;;  %v7261_v56 = vpop.f32.mrb[108].mxu1 }
 0x2f9   : > { %v2866_v58 = vmax.f32 %v2504_v52, 0.0  ;;  %v2507_v59 = vadd.f32 %v9063_v32, %v2506_v30  ;;  %v4809_v60 = vadd.f32 %v8874_v34, %v7261_v56  ;;  %v4803_v62 = vpop.f32.mrb[109].mxu1  ;;  %7419 = vmatmul.mubr.msk.f32.gmra.mrb[214].mxu1 %vm1204_vm0, %v3373_v57  ;;  %v3376_v10 = vld [vmem:[#allocation2 + $0x6d0] sm:$0xff] }
 0x2fa   : > { %3124 = vst.msk [vmem:[#allocation2 + $0x6f0] sm:$0xff] %vm1204_vm0, %v2868_v54  ;;  %v2869_v63 = vmax.f32 %v2515_v55, 0.0  ;;  %v4804_v0 = vadd.f32 %v8874_v34, %v4803_v62  ;;  %v3374_v1 = vld [vmem:[#allocation2 + $0x6c0] sm:$0xff] }
 0x2fb   : > { %3122 = vst.msk [vmem:[#allocation2 + $0x6e0] sm:$0xff] %vm1204_vm0, %v2866_v58  ;;  %v2867_v2 = vmax.f32 %v2507_v59, 0.0  ;;  %7421 = vmatprep.mubr.msk.f32.mxu1 %vm1204_vm0, %v3374_v1 }
 0x2fc   : > { %5652 = vst.msk [vmem:[%s8524_s26 + $0x368] sm:$0xff] %vm5542_vm1, %v4809_v60  ;;  %5651 = vst.msk [vmem:[%s8524_s26 + $0x360] sm:$0xff] %vm5542_vm1, %v4804_v0  ;;  %v7264_v3 = vpop.f32.mrb[110].mxu1  ;;  %v3375_v4 = vld [vmem:[#allocation2 + $0x6c8] sm:$0xff]  ;;  %v3377_v20 = vld [vmem:[#allocation2 + $0x6d8] sm:$0xff] }
 0x2fd   : > { %3125 = vst.msk [vmem:[#allocation2 + $0x6f8] sm:$0xff] %vm1204_vm0, %v2869_v63  ;;  %3123 = vst.msk [vmem:[#allocation2 + $0x6e8] sm:$0xff] %vm1204_vm0, %v2867_v2  ;;  %v4819_v34 = vadd.f32 %v9226_v6, %v7264_v3  ;;  %v7051_v8 = vpop.f32.mrb[224].mxu0  ;;  %v4813_v9 = vpop.f32.mrb[111].mxu1  ;;  %7422 = vmatmul.mubr.msk.f32.gmra.mrb[216].mxu1 %vm1204_vm0, %v3375_v4 }
 0x2fe   : > { %v2528_v11 = vadd.f32 %v9063_v32, %v7051_v8  ;;  %v4814_v12 = vadd.f32 %v9226_v6, %v4813_v9  ;;  %v2519_v13 = vpop.f32.mrb[225].mxu0  ;;  %7424 = vmatprep.mubr.msk.f32.mxu1 %vm1204_vm0, %v3376_v10 }
 0x2ff   : > { %5654 = vst.msk [vmem:[%s8524_s26 + $0x378] sm:$0xff] %vm5542_vm1, %v4819_v34  ;;  %v2520_v14 = vadd.f32 %v9063_v32, %v2519_v13  ;;  %v7052_v15 = vpop.f32.mrb[226].mxu0 }
 0x300   : > { %v2872_v16 = vmax.f32 %v2528_v11, 0.0  ;;  %5653 = vst.msk [vmem:[%s8524_s26 + $0x370] sm:$0xff] %vm5542_vm1, %v4814_v12  ;;  %v2531_v17 = vadd.f32 %v9063_v32, %v7052_v15  ;;  %v2522_v18 = vpop.f32.mrb[227].mxu0  ;;  %v7267_v19 = vpop.f32.mrb[112].mxu1 }
 0x301   : > { %v2870_v21 = vmax.f32 %v2520_v14, 0.0  ;;  %v2523_v22 = vadd.f32 %v9063_v32, %v2522_v18  ;;  %v4829_v23 = vadd.f32 %v9226_v6, %v7267_v19  ;;  %v4823_v24 = vpop.f32.mrb[113].mxu1  ;;  %7425 = vmatmul.mubr.msk.f32.gmra.mrb[218].mxu1 %vm1204_vm0, %v3377_v20  ;;  %v3380_v35 = vld [vmem:[#allocation2 + $0x6f0] sm:$0xff] }
 0x302   : > { %3128 = vst.msk [vmem:[#allocation2 + $0x710] sm:$0xff] %vm1204_vm0, %v2872_v16  ;;  %v2873_v25 = vmax.f32 %v2531_v17, 0.0  ;;  %v4824_v26 = vadd.f32 %v9226_v6, %v4823_v24  ;;  %v3378_v27 = vld [vmem:[#allocation2 + $0x6e0] sm:$0xff] }
 0x303   : > { %3126 = vst.msk [vmem:[#allocation2 + $0x700] sm:$0xff] %vm1204_vm0, %v2870_v21  ;;  %v2871_v7 = vmax.f32 %v2523_v22, 0.0  ;;  %7427 = vmatprep.mubr.msk.f32.mxu1 %vm1204_vm0, %v3378_v27 }
 0x304   : > { %5656 = vst.msk [vmem:[%s8524_s26 + $0x388] sm:$0xff] %vm5542_vm1, %v4829_v23  ;;  %5655 = vst.msk [vmem:[%s8524_s26 + $0x380] sm:$0xff] %vm5542_vm1, %v4824_v26  ;;  %v7270_v28 = vpop.f32.mrb[114].mxu1  ;;  %v3379_v29 = vld [vmem:[#allocation2 + $0x6e8] sm:$0xff]  ;;  %v3381_v44 = vld [vmem:[#allocation2 + $0x6f8] sm:$0xff] }
 0x305   : > { %3129 = vst.msk [vmem:[#allocation2 + $0x718] sm:$0xff] %vm1204_vm0, %v2873_v25  ;;  %3127 = vst.msk [vmem:[#allocation2 + $0x708] sm:$0xff] %vm1204_vm0, %v2871_v7  ;;  %v4839_v31 = vadd.f32 %v9226_v6, %v7270_v28  ;;  %v7055_v33 = vpop.f32.mrb[228].mxu0  ;;  %v4833_v5 = vpop.f32.mrb[115].mxu1  ;;  %7428 = vmatmul.mubr.msk.f32.gmra.mrb[220].mxu1 %vm1204_vm0, %v3379_v29 }
 0x306   : > { %v2544_v36 = vadd.f32 %v9063_v32, %v7055_v33  ;;  %v4834_v37 = vadd.f32 %v9226_v6, %v4833_v5  ;;  %v2535_v61 = vpop.f32.mrb[229].mxu0  ;;  %7430 = vmatprep.mubr.msk.f32.mxu1 %vm1204_vm0, %v3380_v35 }
 0x307   : > { %5658 = vst.msk [vmem:[%s8524_s26 + $0x398] sm:$0xff] %vm5542_vm1, %v4839_v31  ;;  %v2536_v38 = vadd.f32 %v9063_v32, %v2535_v61  ;;  %v7056_v39 = vpop.f32.mrb[230].mxu0 }
 0x308   : > { %v2876_v40 = vmax.f32 %v2544_v36, 0.0  ;;  %5657 = vst.msk [vmem:[%s8524_s26 + $0x390] sm:$0xff] %vm5542_vm1, %v4834_v37  ;;  %v2547_v41 = vadd.f32 %v9063_v32, %v7056_v39  ;;  %v2538_v42 = vpop.f32.mrb[231].mxu0  ;;  %v7273_v43 = vpop.f32.mrb[116].mxu1 }
 0x309   : > { %v2874_v45 = vmax.f32 %v2536_v38, 0.0  ;;  %v2539_v46 = vadd.f32 %v9063_v32, %v2538_v42  ;;  %v4849_v47 = vadd.f32 %v9226_v6, %v7273_v43  ;;  %v4843_v48 = vpop.f32.mrb[117].mxu1  ;;  %7431 = vmatmul.mubr.msk.f32.gmra.mrb[222].mxu1 %vm1204_vm0, %v3381_v44  ;;  %v3384_v57 = vld [vmem:[#allocation2 + $0x710] sm:$0xff] }
 0x30a   : > { %3132 = vst.msk [vmem:[#allocation2 + $0x730] sm:$0xff] %vm1204_vm0, %v2876_v40  ;;  %v2877_v49 = vmax.f32 %v2547_v41, 0.0  ;;  %v4844_v50 = vadd.f32 %v9226_v6, %v4843_v48  ;;  %v3382_v51 = vld [vmem:[#allocation2 + $0x700] sm:$0xff] }
 0x30b   : > { %3130 = vst.msk [vmem:[#allocation2 + $0x720] sm:$0xff] %vm1204_vm0, %v2874_v45  ;;  %v2875_v52 = vmax.f32 %v2539_v46, 0.0  ;;  %7433 = vmatprep.mubr.msk.f32.mxu1 %vm1204_vm0, %v3382_v51 }
 0x30c   : > { %5660 = vst.msk [vmem:[%s8524_s26 + $0x3a8] sm:$0xff] %vm5542_vm1, %v4849_v47  ;;  %5659 = vst.msk [vmem:[%s8524_s26 + $0x3a0] sm:$0xff] %vm5542_vm1, %v4844_v50  ;;  %v7276_v53 = vpop.f32.mrb[118].mxu1  ;;  %v3383_v54 = vld [vmem:[#allocation2 + $0x708] sm:$0xff]  ;;  %v3385_v4 = vld [vmem:[#allocation2 + $0x718] sm:$0xff] }
 0x30d   : > { %3133 = vst.msk [vmem:[#allocation2 + $0x738] sm:$0xff] %vm1204_vm0, %v2877_v49  ;;  %3131 = vst.msk [vmem:[#allocation2 + $0x728] sm:$0xff] %vm1204_vm0, %v2875_v52  ;;  %v4859_v55 = vadd.f32 %v9226_v6, %v7276_v53  ;;  %v7059_v30 = vpop.f32.mrb[232].mxu0  ;;  %v4853_v56 = vpop.f32.mrb[119].mxu1  ;;  %7434 = vmatmul.mubr.msk.f32.gmra.mrb[224].mxu1 %vm1204_vm0, %v3383_v54 }
 0x30e   : > { %v2560_v58 = vadd.f32 %v9063_v32, %v7059_v30  ;;  %v4854_v59 = vadd.f32 %v9226_v6, %v4853_v56  ;;  %v2551_v60 = vpop.f32.mrb[233].mxu0  ;;  %7436 = vmatprep.mubr.msk.f32.mxu1 %vm1204_vm0, %v3384_v57 }
 0x30f   : > { %5662 = vst.msk [vmem:[%s8524_s26 + $0x3b8] sm:$0xff] %vm5542_vm1, %v4859_v55  ;;  %v2552_v62 = vadd.f32 %v9063_v32, %v2551_v60  ;;  %v7060_v63 = vpop.f32.mrb[234].mxu0 }
 0x310   : > { %v2880_v0 = vmax.f32 %v2560_v58, 0.0  ;;  %5661 = vst.msk [vmem:[%s8524_s26 + $0x3b0] sm:$0xff] %vm5542_vm1, %v4854_v59  ;;  %v2563_v1 = vadd.f32 %v9063_v32, %v7060_v63  ;;  %v2554_v2 = vpop.f32.mrb[235].mxu0  ;;  %v7279_v3 = vpop.f32.mrb[120].mxu1 }
 0x311   : > { %v2878_v34 = vmax.f32 %v2552_v62, 0.0  ;;  %v2555_v8 = vadd.f32 %v9063_v32, %v2554_v2  ;;  %v4869_v9 = vadd.f32 %v9226_v6, %v7279_v3  ;;  %v4863_v10 = vpop.f32.mrb[121].mxu1  ;;  %7437 = vmatmul.mubr.msk.f32.gmra.mrb[226].mxu1 %vm1204_vm0, %v3385_v4  ;;  %v3388_v20 = vld [vmem:[#allocation2 + $0x730] sm:$0xff] }
 0x312   : > { %3136 = vst.msk [vmem:[#allocation2 + $0x750] sm:$0xff] %vm1204_vm0, %v2880_v0  ;;  %v2881_v11 = vmax.f32 %v2563_v1, 0.0  ;;  %v4864_v12 = vadd.f32 %v9226_v6, %v4863_v10  ;;  %v3386_v13 = vld [vmem:[#allocation2 + $0x720] sm:$0xff] }
 0x313   : > { %3134 = vst.msk [vmem:[#allocation2 + $0x740] sm:$0xff] %vm1204_vm0, %v2878_v34  ;;  %v2879_v14 = vmax.f32 %v2555_v8, 0.0  ;;  %7439 = vmatprep.mubr.msk.f32.mxu1 %vm1204_vm0, %v3386_v13 }
 0x314   : > { %5664 = vst.msk [vmem:[%s8524_s26 + $0x3c8] sm:$0xff] %vm5542_vm1, %v4869_v9  ;;  %5663 = vst.msk [vmem:[%s8524_s26 + $0x3c0] sm:$0xff] %vm5542_vm1, %v4864_v12  ;;  %v7282_v15 = vpop.f32.mrb[122].mxu1  ;;  %v3387_v16 = vld [vmem:[#allocation2 + $0x728] sm:$0xff]  ;;  %v3389_v29 = vld [vmem:[#allocation2 + $0x738] sm:$0xff] }
 0x315   : > { %3137 = vst.msk [vmem:[#allocation2 + $0x758] sm:$0xff] %vm1204_vm0, %v2881_v11  ;;  %3135 = vst.msk [vmem:[#allocation2 + $0x748] sm:$0xff] %vm1204_vm0, %v2879_v14  ;;  %v4879_v17 = vadd.f32 %v9226_v6, %v7282_v15  ;;  %v7063_v18 = vpop.f32.mrb[236].mxu0  ;;  %v4873_v19 = vpop.f32.mrb[123].mxu1  ;;  %7440 = vmatmul.mubr.msk.f32.gmra.mrb[228].mxu1 %vm1204_vm0, %v3387_v16 }
 0x316   : > { %v2576_v21 = vadd.f32 %v9063_v32, %v7063_v18  ;;  %v4874_v22 = vadd.f32 %v9226_v6, %v4873_v19  ;;  %v2567_v23 = vpop.f32.mrb[237].mxu0  ;;  %7442 = vmatprep.mubr.msk.f32.mxu1 %vm1204_vm0, %v3388_v20 }
 0x317   : > { %5666 = vst.msk [vmem:[%s8524_s26 + $0x3d8] sm:$0xff] %vm5542_vm1, %v4879_v17  ;;  %v2568_v24 = vadd.f32 %v9063_v32, %v2567_v23  ;;  %v7064_v25 = vpop.f32.mrb[238].mxu0 }
 0x318   : > { %v2884_v26 = vmax.f32 %v2576_v21, 0.0  ;;  %5665 = vst.msk [vmem:[%s8524_s26 + $0x3d0] sm:$0xff] %vm5542_vm1, %v4874_v22  ;;  %v2579_v27 = vadd.f32 %v9063_v32, %v7064_v25  ;;  %v2570_v7 = vpop.f32.mrb[239].mxu0  ;;  %v7285_v28 = vpop.f32.mrb[124].mxu1 }
 0x319   : > { %v2882_v31 = vmax.f32 %v2568_v24, 0.0  ;;  %v2571_v33 = vadd.f32 %v9063_v32, %v2570_v7  ;;  %v4889_v5 = vadd.f32 %v9226_v6, %v7285_v28  ;;  %v4883_v35 = vpop.f32.mrb[125].mxu1  ;;  %7443 = vmatmul.mubr.msk.f32.gmra.mrb[230].mxu1 %vm1204_vm0, %v3389_v29  ;;  %v3392_v44 = vld [vmem:[#allocation2 + $0x750] sm:$0xff] }
 0x31a   : > { %3140 = vst.msk [vmem:[#allocation2 + $0x770] sm:$0xff] %vm1204_vm0, %v2884_v26  ;;  %v2885_v36 = vmax.f32 %v2579_v27, 0.0  ;;  %v4884_v37 = vadd.f32 %v9226_v6, %v4883_v35  ;;  %v3390_v61 = vld [vmem:[#allocation2 + $0x740] sm:$0xff] }
 0x31b   : > { %3138 = vst.msk [vmem:[#allocation2 + $0x760] sm:$0xff] %vm1204_vm0, %v2882_v31  ;;  %v2883_v38 = vmax.f32 %v2571_v33, 0.0  ;;  %7445 = vmatprep.mubr.msk.f32.mxu1 %vm1204_vm0, %v3390_v61 }
 0x31c   : > { %5668 = vst.msk [vmem:[%s8524_s26 + $0x3e8] sm:$0xff] %vm5542_vm1, %v4889_v5  ;;  %5667 = vst.msk [vmem:[%s8524_s26 + $0x3e0] sm:$0xff] %vm5542_vm1, %v4884_v37  ;;  %v7288_v39 = vpop.f32.mrb[126].mxu1  ;;  %v3391_v40 = vld [vmem:[#allocation2 + $0x748] sm:$0xff]  ;;  %v3393_v54 = vld [vmem:[#allocation2 + $0x758] sm:$0xff] }
 0x31d   : > { %3141 = vst.msk [vmem:[#allocation2 + $0x778] sm:$0xff] %vm1204_vm0, %v2885_v36  ;;  %3139 = vst.msk [vmem:[#allocation2 + $0x768] sm:$0xff] %vm1204_vm0, %v2883_v38  ;;  %v4899_v41 = vadd.f32 %v9226_v6, %v7288_v39  ;;  %v7067_v42 = vpop.f32.mrb[240].mxu0  ;;  %v4893_v43 = vpop.f32.mrb[127].mxu1  ;;  %7446 = vmatmul.mubr.msk.f32.gmra.mrb[232].mxu1 %vm1204_vm0, %v3391_v40 }
 0x31e   : > { %v2592_v45 = vadd.f32 %v9063_v32, %v7067_v42  ;;  %v4894_v46 = vadd.f32 %v9226_v6, %v4893_v43  ;;  %v2583_v47 = vpop.f32.mrb[241].mxu0  ;;  %7448 = vmatprep.mubr.msk.f32.mxu1 %vm1204_vm0, %v3392_v44 }
 0x31f   : > { %5670 = vst.msk [vmem:[%s8524_s26 + $0x3f8] sm:$0xff] %vm5542_vm1, %v4899_v41  ;;  %v2584_v48 = vadd.f32 %v9063_v32, %v2583_v47  ;;  %v7068_v49 = vpop.f32.mrb[242].mxu0 }
 0x320   : > { %v2888_v50 = vmax.f32 %v2592_v45, 0.0  ;;  %5669 = vst.msk [vmem:[%s8524_s26 + $0x3f0] sm:$0xff] %vm5542_vm1, %v4894_v46  ;;  %v2595_v51 = vadd.f32 %v9063_v32, %v7068_v49  ;;  %v2586_v52 = vpop.f32.mrb[243].mxu0  ;;  %v7291_v53 = vpop.f32.mrb[128].mxu1 }
 0x321   : > { %v2886_v55 = vmax.f32 %v2584_v48, 0.0  ;;  %v2587_v30 = vadd.f32 %v9063_v32, %v2586_v52  ;;  %v4909_v56 = vadd.f32 %v9226_v6, %v7291_v53  ;;  %v4903_v57 = vpop.f32.mrb[129].mxu1  ;;  %7449 = vmatmul.mubr.msk.f32.gmra.mrb[234].mxu1 %vm1204_vm0, %v3393_v54  ;;  %v3396_v4 = vld [vmem:[#allocation2 + $0x770] sm:$0xff] }
 0x322   : > { %3144 = vst.msk [vmem:[#allocation2 + $0x790] sm:$0xff] %vm1204_vm0, %v2888_v50  ;;  %v2889_v58 = vmax.f32 %v2595_v51, 0.0  ;;  %v4904_v59 = vadd.f32 %v9226_v6, %v4903_v57  ;;  %v3394_v60 = vld [vmem:[#allocation2 + $0x760] sm:$0xff] }
 0x323   : > { %3142 = vst.msk [vmem:[#allocation2 + $0x780] sm:$0xff] %vm1204_vm0, %v2886_v55  ;;  %v2887_v62 = vmax.f32 %v2587_v30, 0.0  ;;  %7451 = vmatprep.mubr.msk.f32.mxu1 %vm1204_vm0, %v3394_v60 }
 0x324   : > { %5672 = vst.msk [vmem:[%s8524_s26 + $0x408] sm:$0xff] %vm5542_vm1, %v4909_v56  ;;  %5671 = vst.msk [vmem:[%s8524_s26 + $0x400] sm:$0xff] %vm5542_vm1, %v4904_v59  ;;  %v7294_v63 = vpop.f32.mrb[130].mxu1  ;;  %v3395_v0 = vld [vmem:[#allocation2 + $0x768] sm:$0xff]  ;;  %v3397_v16 = vld [vmem:[#allocation2 + $0x778] sm:$0xff] }
 0x325   : > { %3145 = vst.msk [vmem:[#allocation2 + $0x798] sm:$0xff] %vm1204_vm0, %v2889_v58  ;;  %3143 = vst.msk [vmem:[#allocation2 + $0x788] sm:$0xff] %vm1204_vm0, %v2887_v62  ;;  %v4919_v1 = vadd.f32 %v9226_v6, %v7294_v63  ;;  %v7071_v2 = vpop.f32.mrb[244].mxu0  ;;  %v4913_v3 = vpop.f32.mrb[131].mxu1  ;;  %7452 = vmatmul.mubr.msk.f32.gmra.mrb[236].mxu1 %vm1204_vm0, %v3395_v0 }
 0x326   : > { %v2608_v34 = vadd.f32 %v9063_v32, %v7071_v2  ;;  %v4914_v8 = vadd.f32 %v9226_v6, %v4913_v3  ;;  %v2599_v9 = vpop.f32.mrb[245].mxu0  ;;  %7454 = vmatprep.mubr.msk.f32.mxu1 %vm1204_vm0, %v3396_v4  ;;  %v7675_v2 = vld [vmem:[#allocation5] ss:$0 sm:$0xff] }
 0x327   : > { %5674 = vst.msk [vmem:[%s8524_s26 + $0x418] sm:$0xff] %vm5542_vm1, %v4919_v1  ;;  %v2600_v10 = vadd.f32 %v9063_v32, %v2599_v9  ;;  %v7072_v11 = vpop.f32.mrb[246].mxu0 }
 0x328   : > { %v2892_v12 = vmax.f32 %v2608_v34, 0.0  ;;  %5673 = vst.msk [vmem:[%s8524_s26 + $0x410] sm:$0xff] %vm5542_vm1, %v4914_v8  ;;  %v2611_v13 = vadd.f32 %v9063_v32, %v7072_v11  ;;  %v2602_v14 = vpop.f32.mrb[247].mxu0  ;;  %v7297_v15 = vpop.f32.mrb[132].mxu1 }
 0x329   : > { %v2890_v17 = vmax.f32 %v2600_v10, 0.0  ;;  %v2603_v18 = vadd.f32 %v9063_v32, %v2602_v14  ;;  %v4929_v19 = vadd.f32 %v9226_v6, %v7297_v15  ;;  %v4923_v20 = vpop.f32.mrb[133].mxu1  ;;  %7455 = vmatmul.mubr.msk.f32.gmra.mrb[238].mxu1 %vm1204_vm0, %v3397_v16  ;;  %v3400_v29 = vld [vmem:[#allocation2 + $0x790] sm:$0xff] }
 0x32a   : > { %3148 = vst.msk [vmem:[#allocation2 + $0x7b0] sm:$0xff] %vm1204_vm0, %v2892_v12  ;;  %v2893_v21 = vmax.f32 %v2611_v13, 0.0  ;;  %v4924_v22 = vadd.f32 %v9226_v6, %v4923_v20  ;;  %v3398_v23 = vld [vmem:[#allocation2 + $0x780] sm:$0xff] }
 0x32b   : > { %3146 = vst.msk [vmem:[#allocation2 + $0x7a0] sm:$0xff] %vm1204_vm0, %v2890_v17  ;;  %v2891_v24 = vmax.f32 %v2603_v18, 0.0  ;;  %7457 = vmatprep.mubr.msk.f32.mxu1 %vm1204_vm0, %v3398_v23 }
 0x32c   : > { %5676 = vst.msk [vmem:[%s8524_s26 + $0x428] sm:$0xff] %vm5542_vm1, %v4929_v19  ;;  %5675 = vst.msk [vmem:[%s8524_s26 + $0x420] sm:$0xff] %vm5542_vm1, %v4924_v22  ;;  %v7300_v25 = vpop.f32.mrb[134].mxu1  ;;  %v3399_v26 = vld [vmem:[#allocation2 + $0x788] sm:$0xff]  ;;  %v3401_v40 = vld [vmem:[#allocation2 + $0x798] sm:$0xff] }
 0x32d   : > { %3149 = vst.msk [vmem:[#allocation2 + $0x7b8] sm:$0xff] %vm1204_vm0, %v2893_v21  ;;  %3147 = vst.msk [vmem:[#allocation2 + $0x7a8] sm:$0xff] %vm1204_vm0, %v2891_v24  ;;  %v4939_v27 = vadd.f32 %v9226_v6, %v7300_v25  ;;  %v7075_v7 = vpop.f32.mrb[248].mxu0  ;;  %v4933_v28 = vpop.f32.mrb[135].mxu1  ;;  %7458 = vmatmul.mubr.msk.f32.gmra.mrb[240].mxu1 %vm1204_vm0, %v3399_v26 }
 0x32e   : > { %v2624_v31 = vadd.f32 %v9063_v32, %v7075_v7  ;;  %v4934_v33 = vadd.f32 %v9226_v6, %v4933_v28  ;;  %v2615_v5 = vpop.f32.mrb[249].mxu0  ;;  %7460 = vmatprep.mubr.msk.f32.mxu1 %vm1204_vm0, %v3400_v29 }
 0x32f   : > { %5678 = vst.msk [vmem:[%s8524_s26 + $0x438] sm:$0xff] %vm5542_vm1, %v4939_v27  ;;  %v2616_v35 = vadd.f32 %v9063_v32, %v2615_v5  ;;  %v7076_v36 = vpop.f32.mrb[250].mxu0 }
 0x330   : > { %v2896_v37 = vmax.f32 %v2624_v31, 0.0  ;;  %5677 = vst.msk [vmem:[%s8524_s26 + $0x430] sm:$0xff] %vm5542_vm1, %v4934_v33  ;;  %v2627_v61 = vadd.f32 %v9063_v32, %v7076_v36  ;;  %v2618_v38 = vpop.f32.mrb[251].mxu0  ;;  %v7303_v39 = vpop.f32.mrb[136].mxu1 }
 0x331   : > { %v2894_v41 = vmax.f32 %v2616_v35, 0.0  ;;  %v2619_v42 = vadd.f32 %v9063_v32, %v2618_v38  ;;  %v4949_v43 = vadd.f32 %v9226_v6, %v7303_v39  ;;  %v4943_v44 = vpop.f32.mrb[137].mxu1  ;;  %7461 = vmatmul.mubr.msk.f32.gmra.mrb[242].mxu1 %vm1204_vm0, %v3401_v40  ;;  %v3404_v54 = vld [vmem:[#allocation2 + $0x7b0] sm:$0xff] }
 0x332   : > { %3152 = vst.msk [vmem:[#allocation2 + $0x7d0] sm:$0xff] %vm1204_vm0, %v2896_v37  ;;  %v2897_v45 = vmax.f32 %v2627_v61, 0.0  ;;  %v4944_v46 = vadd.f32 %v9226_v6, %v4943_v44  ;;  %v3402_v47 = vld [vmem:[#allocation2 + $0x7a0] sm:$0xff] }
 0x333   : > { %3150 = vst.msk [vmem:[#allocation2 + $0x7c0] sm:$0xff] %vm1204_vm0, %v2894_v41  ;;  %v2895_v48 = vmax.f32 %v2619_v42, 0.0  ;;  %7463 = vmatprep.mubr.msk.f32.mxu1 %vm1204_vm0, %v3402_v47 }
 0x334   : > { %5680 = vst.msk [vmem:[%s8524_s26 + $0x448] sm:$0xff] %vm5542_vm1, %v4949_v43  ;;  %5679 = vst.msk [vmem:[%s8524_s26 + $0x440] sm:$0xff] %vm5542_vm1, %v4944_v46  ;;  %v7306_v49 = vpop.f32.mrb[138].mxu1  ;;  %v3403_v50 = vld [vmem:[#allocation2 + $0x7a8] sm:$0xff]  ;;  %v3405_v0 = vld [vmem:[#allocation2 + $0x7b8] sm:$0xff] }
 0x335   : > { %3153 = vst.msk [vmem:[#allocation2 + $0x7d8] sm:$0xff] %vm1204_vm0, %v2897_v45  ;;  %3151 = vst.msk [vmem:[#allocation2 + $0x7c8] sm:$0xff] %vm1204_vm0, %v2895_v48  ;;  %v4959_v51 = vadd.f32 %v9226_v6, %v7306_v49  ;;  %v7079_v52 = vpop.f32.mrb[252].mxu0  ;;  %v4953_v53 = vpop.f32.mrb[139].mxu1  ;;  %7464 = vmatmul.mubr.msk.f32.gmra.mrb[244].mxu1 %vm1204_vm0, %v3403_v50 }
 0x336   : > { %v2640_v55 = vadd.f32 %v9063_v32, %v7079_v52  ;;  %v4954_v30 = vadd.f32 %v9226_v6, %v4953_v53  ;;  %v2631_v56 = vpop.f32.mrb[253].mxu0  ;;  %7466 = vmatprep.mubr.msk.f32.mxu1 %vm1204_vm0, %v3404_v54 }
 0x337   : > { %5682 = vst.msk [vmem:[%s8524_s26 + $0x458] sm:$0xff] %vm5542_vm1, %v4959_v51  ;;  %v2632_v57 = vadd.f32 %v9063_v32, %v2631_v56  ;;  %v7080_v58 = vpop.f32.mrb[254].mxu0 }
 0x338   : > { %v2900_v59 = vmax.f32 %v2640_v55, 0.0  ;;  %5681 = vst.msk [vmem:[%s8524_s26 + $0x450] sm:$0xff] %vm5542_vm1, %v4954_v30  ;;  %v2643_v60 = vadd.f32 %v9063_v32, %v7080_v58  ;;  %v2634_v62 = vpop.f32.mrb[255].mxu0  ;;  %v7309_v63 = vpop.f32.mrb[140].mxu1 }
 0x339   : > { %v2898_v1 = vmax.f32 %v2632_v57, 0.0  ;;  %v2635_v3 = vadd.f32 %v7675_v2, %v2634_v62  ;;  %v4969_v4 = vadd.f32 %v9226_v6, %v7309_v63  ;;  %v4963_v34 = vpop.f32.mrb[141].mxu1  ;;  %7467 = vmatmul.mubr.msk.f32.gmra.mrb[246].mxu1 %vm1204_vm0, %v3405_v0  ;;  %v3408_v15 = vld [vmem:[#allocation2 + $0x7d0] sm:$0xff] }
 0x33a   : > { %3156 = vst.msk [vmem:[#allocation2 + $0x7f0] sm:$0xff] %vm1204_vm0, %v2900_v59  ;;  %v2901_v8 = vmax.f32 %v2643_v60, 0.0  ;;  %v4964_v9 = vadd.f32 %v9226_v6, %v4963_v34  ;;  %v3406_v10 = vld [vmem:[#allocation2 + $0x7c0] sm:$0xff] }
 0x33b   : > { %3154 = vst.msk [vmem:[#allocation2 + $0x7e0] sm:$0xff] %vm1204_vm0, %v2898_v1  ;;  %v2899_v32 = vmax.f32 %v2635_v3, 0.0  ;;  %7469 = vmatprep.mubr.msk.f32.mxu1 %vm1204_vm0, %v3406_v10 }
 0x33c   : > { %5684 = vst.msk [vmem:[%s8524_s26 + $0x468] sm:$0xff] %vm5542_vm1, %v4969_v4  ;;  %5683 = vst.msk [vmem:[%s8524_s26 + $0x460] sm:$0xff] %vm5542_vm1, %v4964_v9  ;;  %v7312_v11 = vpop.f32.mrb[142].mxu1  ;;  %v3407_v12 = vld [vmem:[#allocation2 + $0x7c8] sm:$0xff]  ;;  %v3409_v18 = vld [vmem:[#allocation2 + $0x7d8] sm:$0xff] }
 0x33d   : > { %3157 = vst.msk [vmem:[#allocation2 + $0x7f8] sm:$0xff] %vm1204_vm0, %v2901_v8  ;;  %3155 = vst.msk [vmem:[#allocation2 + $0x7e8] sm:$0xff] %vm1204_vm0, %v2899_v32  ;;  %v4979_v13 = vadd.f32 %v9226_v6, %v7312_v11  ;;  %v4973_v14 = vpop.f32.mrb[143].mxu1  ;;  %7470 = vmatmul.mubr.msk.f32.gmra.mrb[248].mxu1 %vm1204_vm0, %v3407_v12 }
 0x33e   : > { %v4974_v16 = vadd.f32 %v9226_v6, %v4973_v14  ;;  %7472 = vmatprep.mubr.msk.f32.mxu1 %vm1204_vm0, %v3408_v15 }
 0x33f   : > { %5686 = vst.msk [vmem:[%s8524_s26 + $0x478] sm:$0xff] %vm5542_vm1, %v4979_v13 }
 0x340   : > { %5685 = vst.msk [vmem:[%s8524_s26 + $0x470] sm:$0xff] %vm5542_vm1, %v4974_v16  ;;  %v7315_v17 = vpop.f32.mrb[144].mxu1 }
 0x341   : > { %v4989_v19 = vadd.f32 %v9226_v6, %v7315_v17  ;;  %v4983_v20 = vpop.f32.mrb[145].mxu1  ;;  %7473 = vmatmul.mubr.msk.f32.gmra.mrb[250].mxu1 %vm1204_vm0, %v3409_v18  ;;  %v3412_v27 = vld [vmem:[#allocation2 + $0x7f0] sm:$0xff] }
 0x342   : > { %v4984_v21 = vadd.f32 %v9226_v6, %v4983_v20  ;;  %v3410_v22 = vld [vmem:[#allocation2 + $0x7e0] sm:$0xff] }
 0x343   : > { %5688 = vst.msk [vmem:[%s8524_s26 + $0x488] sm:$0xff] %vm5542_vm1, %v4989_v19  ;;  %7475 = vmatprep.mubr.msk.f32.mxu1 %vm1204_vm0, %v3410_v22 }
 0x344   : > { %5687 = vst.msk [vmem:[%s8524_s26 + $0x480] sm:$0xff] %vm5542_vm1, %v4984_v21  ;;  %v7318_v23 = vpop.f32.mrb[146].mxu1  ;;  %v3411_v24 = vld [vmem:[#allocation2 + $0x7e8] sm:$0xff]  ;;  %v3413_v29 = vld [vmem:[#allocation2 + $0x7f8] sm:$0xff] }
 0x345   : > { %v4999_v25 = vadd.f32 %v9226_v6, %v7318_v23  ;;  %v4993_v26 = vpop.f32.mrb[147].mxu1  ;;  %7476 = vmatmul.mubr.msk.f32.gmra.mrb[252].mxu1 %vm1204_vm0, %v3411_v24 }
 0x346   : > { %v4994_v7 = vadd.f32 %v9226_v6, %v4993_v26  ;;  %7478 = vmatprep.mubr.msk.f32.mxu1 %vm1204_vm0, %v3412_v27 }
 0x347   : > { %5690 = vst.msk [vmem:[%s8524_s26 + $0x498] sm:$0xff] %vm5542_vm1, %v4999_v25 }
 0x348   : > { %5689 = vst.msk [vmem:[%s8524_s26 + $0x490] sm:$0xff] %vm5542_vm1, %v4994_v7  ;;  %v7321_v28 = vpop.f32.mrb[148].mxu1 }
 0x349   : > { %v5009_v31 = vadd.f32 %v9226_v6, %v7321_v28  ;;  %v5003_v33 = vpop.f32.mrb[149].mxu1  ;;  %7479 = vmatmul.mubr.msk.f32.gmra.mrb[254].mxu1 %vm1204_vm0, %v3413_v29 }
 0x34a   : > { %v5004_v5 = vadd.f32 %v9226_v6, %v5003_v33 }
 0x34b   : > { %5692 = vst.msk [vmem:[%s8524_s26 + $0x4a8] sm:$0xff] %vm5542_vm1, %v5009_v31 }
 0x34c   : > { %5691 = vst.msk [vmem:[%s8524_s26 + $0x4a0] sm:$0xff] %vm5542_vm1, %v5004_v5  ;;  %v7324_v35 = vpop.f32.mrb[150].mxu1 }
 0x34d   : > { %v5019_v36 = vadd.f32 %v9226_v6, %v7324_v35  ;;  %v5013_v37 = vpop.f32.mrb[151].mxu1 }
 0x34e   : > { %v5014_v61 = vadd.f32 %v9226_v6, %v5013_v37 }
 0x34f   : > { %5694 = vst.msk [vmem:[%s8524_s26 + $0x4b8] sm:$0xff] %vm5542_vm1, %v5019_v36 }
 0x350   : > { %5693 = vst.msk [vmem:[%s8524_s26 + $0x4b0] sm:$0xff] %vm5542_vm1, %v5014_v61  ;;  %v7327_v38 = vpop.f32.mrb[152].mxu1 }
 0x351   : > { %v5029_v39 = vadd.f32 %v9226_v6, %v7327_v38  ;;  %v5023_v40 = vpop.f32.mrb[153].mxu1 }
 0x352   : > { %v5024_v41 = vadd.f32 %v9226_v6, %v5023_v40 }
 0x353   : > { %5696 = vst.msk [vmem:[%s8524_s26 + $0x4c8] sm:$0xff] %vm5542_vm1, %v5029_v39 }
 0x354   : > { %5695 = vst.msk [vmem:[%s8524_s26 + $0x4c0] sm:$0xff] %vm5542_vm1, %v5024_v41  ;;  %v7330_v42 = vpop.f32.mrb[154].mxu1 }
 0x355   : > { %v5039_v43 = vadd.f32 %v9226_v6, %v7330_v42  ;;  %v5033_v44 = vpop.f32.mrb[155].mxu1 }
 0x356   : > { %v5034_v45 = vadd.f32 %v9226_v6, %v5033_v44 }
 0x357   : > { %5698 = vst.msk [vmem:[%s8524_s26 + $0x4d8] sm:$0xff] %vm5542_vm1, %v5039_v43 }
 0x358   : > { %5697 = vst.msk [vmem:[%s8524_s26 + $0x4d0] sm:$0xff] %vm5542_vm1, %v5034_v45  ;;  %v7333_v46 = vpop.f32.mrb[156].mxu1 }
 0x359   : > { %v5049_v47 = vadd.f32 %v9226_v6, %v7333_v46  ;;  %v5043_v48 = vpop.f32.mrb[157].mxu1 }
 0x35a   : > { %v5044_v49 = vadd.f32 %v9226_v6, %v5043_v48 }
 0x35b   : > { %5700 = vst.msk [vmem:[%s8524_s26 + $0x4e8] sm:$0xff] %vm5542_vm1, %v5049_v47 }
 0x35c   : > { %5699 = vst.msk [vmem:[%s8524_s26 + $0x4e0] sm:$0xff] %vm5542_vm1, %v5044_v49  ;;  %v7336_v50 = vpop.f32.mrb[158].mxu1 }
 0x35d   : > { %v5059_v51 = vadd.f32 %v9226_v6, %v7336_v50  ;;  %v5053_v52 = vpop.f32.mrb[159].mxu1 }
 0x35e   : > { %v5054_v53 = vadd.f32 %v9226_v6, %v5053_v52 }
 0x35f   : > { %5702 = vst.msk [vmem:[%s8524_s26 + $0x4f8] sm:$0xff] %vm5542_vm1, %v5059_v51 }
 0x360   : > { %5701 = vst.msk [vmem:[%s8524_s26 + $0x4f0] sm:$0xff] %vm5542_vm1, %v5054_v53  ;;  %v7339_v54 = vpop.f32.mrb[160].mxu1 }
 0x361   : > { %v5069_v55 = vadd.f32 %v9226_v6, %v7339_v54  ;;  %v5063_v30 = vpop.f32.mrb[161].mxu1 }
 0x362   : > { %v5064_v56 = vadd.f32 %v9226_v6, %v5063_v30 }
 0x363   : > { %5704 = vst.msk [vmem:[%s8524_s26 + $0x508] sm:$0xff] %vm5542_vm1, %v5069_v55 }
 0x364   : > { %5703 = vst.msk [vmem:[%s8524_s26 + $0x500] sm:$0xff] %vm5542_vm1, %v5064_v56  ;;  %v7342_v57 = vpop.f32.mrb[162].mxu1 }
 0x365   : > { %v5079_v58 = vadd.f32 %v9226_v6, %v7342_v57  ;;  %v5073_v59 = vpop.f32.mrb[163].mxu1 }
 0x366   : > { %v5074_v60 = vadd.f32 %v9226_v6, %v5073_v59 }
 0x367   : > { %5706 = vst.msk [vmem:[%s8524_s26 + $0x518] sm:$0xff] %vm5542_vm1, %v5079_v58 }
 0x368   : > { %5705 = vst.msk [vmem:[%s8524_s26 + $0x510] sm:$0xff] %vm5542_vm1, %v5074_v60  ;;  %v7345_v62 = vpop.f32.mrb[164].mxu1 }
 0x369   : > { %v5089_v63 = vadd.f32 %v9226_v6, %v7345_v62  ;;  %v5083_v0 = vpop.f32.mrb[165].mxu1 }
 0x36a   : > { %v5084_v1 = vadd.f32 %v9226_v6, %v5083_v0 }
 0x36b   : > { %5708 = vst.msk [vmem:[%s8524_s26 + $0x528] sm:$0xff] %vm5542_vm1, %v5089_v63 }
 0x36c   : > { %5707 = vst.msk [vmem:[%s8524_s26 + $0x520] sm:$0xff] %vm5542_vm1, %v5084_v1  ;;  %v7348_v2 = vpop.f32.mrb[166].mxu1 }
 0x36d   : > { %v5099_v3 = vadd.f32 %v9226_v6, %v7348_v2  ;;  %v5093_v4 = vpop.f32.mrb[167].mxu1 }
 0x36e   : > { %v5094_v34 = vadd.f32 %v9226_v6, %v5093_v4 }
 0x36f   : > { %5710 = vst.msk [vmem:[%s8524_s26 + $0x538] sm:$0xff] %vm5542_vm1, %v5099_v3 }
 0x370   : > { %5709 = vst.msk [vmem:[%s8524_s26 + $0x530] sm:$0xff] %vm5542_vm1, %v5094_v34  ;;  %v7351_v8 = vpop.f32.mrb[168].mxu1 }
 0x371   : > { %v5109_v9 = vadd.f32 %v9226_v6, %v7351_v8  ;;  %v5103_v10 = vpop.f32.mrb[169].mxu1 }
 0x372   : > { %v5104_v32 = vadd.f32 %v9226_v6, %v5103_v10 }
 0x373   : > { %5712 = vst.msk [vmem:[%s8524_s26 + $0x548] sm:$0xff] %vm5542_vm1, %v5109_v9 }
 0x374   : > { %5711 = vst.msk [vmem:[%s8524_s26 + $0x540] sm:$0xff] %vm5542_vm1, %v5104_v32  ;;  %v7354_v11 = vpop.f32.mrb[170].mxu1 }
 0x375   : > { %v5119_v12 = vadd.f32 %v9226_v6, %v7354_v11  ;;  %v5113_v13 = vpop.f32.mrb[171].mxu1 }
 0x376   : > { %v5114_v14 = vadd.f32 %v9226_v6, %v5113_v13 }
 0x377   : > { %5714 = vst.msk [vmem:[%s8524_s26 + $0x558] sm:$0xff] %vm5542_vm1, %v5119_v12 }
 0x378   : > { %5713 = vst.msk [vmem:[%s8524_s26 + $0x550] sm:$0xff] %vm5542_vm1, %v5114_v14  ;;  %v7357_v15 = vpop.f32.mrb[172].mxu1 }
 0x379   : > { %v5129_v16 = vadd.f32 %v9226_v6, %v7357_v15  ;;  %v5123_v17 = vpop.f32.mrb[173].mxu1 }
 0x37a   : > { %v5124_v18 = vadd.f32 %v9226_v6, %v5123_v17 }
 0x37b   : > { %5716 = vst.msk [vmem:[%s8524_s26 + $0x568] sm:$0xff] %vm5542_vm1, %v5129_v16 }
 0x37c   : > { %5715 = vst.msk [vmem:[%s8524_s26 + $0x560] sm:$0xff] %vm5542_vm1, %v5124_v18  ;;  %v7360_v19 = vpop.f32.mrb[174].mxu1 }
 0x37d   : > { %v5139_v20 = vadd.f32 %v9226_v6, %v7360_v19  ;;  %v5133_v21 = vpop.f32.mrb[175].mxu1 }
 0x37e   : > { %v5134_v22 = vadd.f32 %v9226_v6, %v5133_v21 }
 0x37f   : > { %5718 = vst.msk [vmem:[%s8524_s26 + $0x578] sm:$0xff] %vm5542_vm1, %v5139_v20 }
 0x380   : > { %5717 = vst.msk [vmem:[%s8524_s26 + $0x570] sm:$0xff] %vm5542_vm1, %v5134_v22  ;;  %v7363_v23 = vpop.f32.mrb[176].mxu1 }
 0x381   : > { %v5149_v24 = vadd.f32 %v9226_v6, %v7363_v23  ;;  %v5143_v25 = vpop.f32.mrb[177].mxu1 }
 0x382   : > { %v5144_v26 = vadd.f32 %v9226_v6, %v5143_v25 }
 0x383   : > { %5720 = vst.msk [vmem:[%s8524_s26 + $0x588] sm:$0xff] %vm5542_vm1, %v5149_v24 }
 0x384   : > { %5719 = vst.msk [vmem:[%s8524_s26 + $0x580] sm:$0xff] %vm5542_vm1, %v5144_v26  ;;  %v7366_v27 = vpop.f32.mrb[178].mxu1 }
 0x385   : > { %v5159_v7 = vadd.f32 %v9226_v6, %v7366_v27  ;;  %v5153_v28 = vpop.f32.mrb[179].mxu1 }
 0x386   : > { %v5154_v29 = vadd.f32 %v9226_v6, %v5153_v28 }
 0x387   : > { %5722 = vst.msk [vmem:[%s8524_s26 + $0x598] sm:$0xff] %vm5542_vm1, %v5159_v7 }
 0x388   : > { %5721 = vst.msk [vmem:[%s8524_s26 + $0x590] sm:$0xff] %vm5542_vm1, %v5154_v29  ;;  %v7369_v31 = vpop.f32.mrb[180].mxu1 }
 0x389   : > { %v5169_v33 = vadd.f32 %v9226_v6, %v7369_v31  ;;  %v5163_v5 = vpop.f32.mrb[181].mxu1 }
 0x38a   : > { %v5164_v35 = vadd.f32 %v9226_v6, %v5163_v5 }
 0x38b   : > { %5724 = vst.msk [vmem:[%s8524_s26 + $0x5a8] sm:$0xff] %vm5542_vm1, %v5169_v33 }
 0x38c   : > { %5723 = vst.msk [vmem:[%s8524_s26 + $0x5a0] sm:$0xff] %vm5542_vm1, %v5164_v35  ;;  %v7372_v36 = vpop.f32.mrb[182].mxu1 }
 0x38d   : > { %v5179_v37 = vadd.f32 %v9226_v6, %v7372_v36  ;;  %v5173_v61 = vpop.f32.mrb[183].mxu1  ;;  %v9637_v36 = vld [vmem:[#allocation7] ss:$0 sm:$0xff] }
 0x38e   : > { %v5174_v38 = vadd.f32 %v9226_v6, %v5173_v61 }
 0x38f   : > { %5726 = vst.msk [vmem:[%s8524_s26 + $0x5b8] sm:$0xff] %vm5542_vm1, %v5179_v37 }
 0x390   : > { %5725 = vst.msk [vmem:[%s8524_s26 + $0x5b0] sm:$0xff] %vm5542_vm1, %v5174_v38  ;;  %v7375_v39 = vpop.f32.mrb[184].mxu1 }
 0x391   : > { %v5189_v40 = vadd.f32 %v9226_v6, %v7375_v39  ;;  %v5183_v41 = vpop.f32.mrb[185].mxu1 }
 0x392   : > { %v5184_v42 = vadd.f32 %v9226_v6, %v5183_v41 }
 0x393   : > { %5728 = vst.msk [vmem:[%s8524_s26 + $0x5c8] sm:$0xff] %vm5542_vm1, %v5189_v40 }
 0x394   : > { %5727 = vst.msk [vmem:[%s8524_s26 + $0x5c0] sm:$0xff] %vm5542_vm1, %v5184_v42  ;;  %v7378_v43 = vpop.f32.mrb[186].mxu1 }
 0x395   : > { %v5199_v44 = vadd.f32 %v9226_v6, %v7378_v43  ;;  %v5193_v45 = vpop.f32.mrb[187].mxu1 }
 0x396   : > { %v5194_v46 = vadd.f32 %v9226_v6, %v5193_v45 }
 0x397   : > { %5730 = vst.msk [vmem:[%s8524_s26 + $0x5d8] sm:$0xff] %vm5542_vm1, %v5199_v44 }
 0x398   : > { %5729 = vst.msk [vmem:[%s8524_s26 + $0x5d0] sm:$0xff] %vm5542_vm1, %v5194_v46  ;;  %v7381_v47 = vpop.f32.mrb[188].mxu1 }
 0x399   : > { %v5209_v48 = vadd.f32 %v9226_v6, %v7381_v47  ;;  %v5203_v49 = vpop.f32.mrb[189].mxu1 }
 0x39a   : > { %v5204_v50 = vadd.f32 %v9226_v6, %v5203_v49 }
 0x39b   : > { %5732 = vst.msk [vmem:[%s8524_s26 + $0x5e8] sm:$0xff] %vm5542_vm1, %v5209_v48 }
 0x39c   : > { %5731 = vst.msk [vmem:[%s8524_s26 + $0x5e0] sm:$0xff] %vm5542_vm1, %v5204_v50  ;;  %v7384_v51 = vpop.f32.mrb[190].mxu1 }
 0x39d   : > { %v5219_v52 = vadd.f32 %v9226_v6, %v7384_v51  ;;  %v5213_v53 = vpop.f32.mrb[191].mxu1 }
 0x39e   : > { %v5214_v54 = vadd.f32 %v9226_v6, %v5213_v53 }
 0x39f   : > { %5734 = vst.msk [vmem:[%s8524_s26 + $0x5f8] sm:$0xff] %vm5542_vm1, %v5219_v52 }
 0x3a0   : > { %5733 = vst.msk [vmem:[%s8524_s26 + $0x5f0] sm:$0xff] %vm5542_vm1, %v5214_v54  ;;  %v7387_v55 = vpop.f32.mrb[192].mxu1 }
 0x3a1   : > { %v5229_v30 = vadd.f32 %v9226_v6, %v7387_v55  ;;  %v5223_v56 = vpop.f32.mrb[193].mxu1 }
 0x3a2   : > { %v5224_v57 = vadd.f32 %v9226_v6, %v5223_v56 }
 0x3a3   : > { %5736 = vst.msk [vmem:[%s8524_s26 + $0x608] sm:$0xff] %vm5542_vm1, %v5229_v30 }
 0x3a4   : > { %5735 = vst.msk [vmem:[%s8524_s26 + $0x600] sm:$0xff] %vm5542_vm1, %v5224_v57  ;;  %v7390_v58 = vpop.f32.mrb[194].mxu1 }
 0x3a5   : > { %v5239_v59 = vadd.f32 %v9226_v6, %v7390_v58  ;;  %v5233_v60 = vpop.f32.mrb[195].mxu1 }
 0x3a6   : > { %v5234_v62 = vadd.f32 %v9226_v6, %v5233_v60 }
 0x3a7   : > { %5738 = vst.msk [vmem:[%s8524_s26 + $0x618] sm:$0xff] %vm5542_vm1, %v5239_v59 }
 0x3a8   : > { %5737 = vst.msk [vmem:[%s8524_s26 + $0x610] sm:$0xff] %vm5542_vm1, %v5234_v62  ;;  %v7393_v63 = vpop.f32.mrb[196].mxu1 }
 0x3a9   : > { %v5249_v0 = vadd.f32 %v9226_v6, %v7393_v63  ;;  %v5243_v1 = vpop.f32.mrb[197].mxu1 }
 0x3aa   : > { %v5244_v2 = vadd.f32 %v9226_v6, %v5243_v1 }
 0x3ab   : > { %5740 = vst.msk [vmem:[%s8524_s26 + $0x628] sm:$0xff] %vm5542_vm1, %v5249_v0 }
 0x3ac   : > { %5739 = vst.msk [vmem:[%s8524_s26 + $0x620] sm:$0xff] %vm5542_vm1, %v5244_v2  ;;  %v7396_v3 = vpop.f32.mrb[198].mxu1 }
 0x3ad   : > { %v5259_v4 = vadd.f32 %v9226_v6, %v7396_v3  ;;  %v5253_v34 = vpop.f32.mrb[199].mxu1 }
 0x3ae   : > { %v5254_v8 = vadd.f32 %v9226_v6, %v5253_v34 }
 0x3af   : > { %5742 = vst.msk [vmem:[%s8524_s26 + $0x638] sm:$0xff] %vm5542_vm1, %v5259_v4 }
 0x3b0   : > { %5741 = vst.msk [vmem:[%s8524_s26 + $0x630] sm:$0xff] %vm5542_vm1, %v5254_v8  ;;  %v7399_v9 = vpop.f32.mrb[200].mxu1 }
 0x3b1   : > { %v5269_v10 = vadd.f32 %v9226_v6, %v7399_v9  ;;  %v5263_v32 = vpop.f32.mrb[201].mxu1 }
 0x3b2   : > { %v5264_v11 = vadd.f32 %v9226_v6, %v5263_v32 }
 0x3b3   : > { %5744 = vst.msk [vmem:[%s8524_s26 + $0x648] sm:$0xff] %vm5542_vm1, %v5269_v10 }
 0x3b4   : > { %5743 = vst.msk [vmem:[%s8524_s26 + $0x640] sm:$0xff] %vm5542_vm1, %v5264_v11  ;;  %v7402_v12 = vpop.f32.mrb[202].mxu1 }
 0x3b5   : > { %v5279_v13 = vadd.f32 %v9226_v6, %v7402_v12  ;;  %v5273_v14 = vpop.f32.mrb[203].mxu1 }
 0x3b6   : > { %v5274_v15 = vadd.f32 %v9226_v6, %v5273_v14 }
 0x3b7   : > { %5746 = vst.msk [vmem:[%s8524_s26 + $0x658] sm:$0xff] %vm5542_vm1, %v5279_v13 }
 0x3b8   : > { %5745 = vst.msk [vmem:[%s8524_s26 + $0x650] sm:$0xff] %vm5542_vm1, %v5274_v15  ;;  %v7405_v16 = vpop.f32.mrb[204].mxu1 }
 0x3b9   : > { %v5289_v17 = vadd.f32 %v9226_v6, %v7405_v16  ;;  %v5283_v18 = vpop.f32.mrb[205].mxu1 }
 0x3ba   : > { %v5284_v19 = vadd.f32 %v9226_v6, %v5283_v18 }
 0x3bb   : > { %5748 = vst.msk [vmem:[%s8524_s26 + $0x668] sm:$0xff] %vm5542_vm1, %v5289_v17 }
 0x3bc   : > { %5747 = vst.msk [vmem:[%s8524_s26 + $0x660] sm:$0xff] %vm5542_vm1, %v5284_v19  ;;  %v7408_v20 = vpop.f32.mrb[206].mxu1 }
 0x3bd   : > { %v5299_v21 = vadd.f32 %v9226_v6, %v7408_v20  ;;  %v5293_v22 = vpop.f32.mrb[207].mxu1 }
 0x3be   : > { %v5294_v23 = vadd.f32 %v9226_v6, %v5293_v22 }
 0x3bf   : > { %5750 = vst.msk [vmem:[%s8524_s26 + $0x678] sm:$0xff] %vm5542_vm1, %v5299_v21 }
 0x3c0   : > { %5749 = vst.msk [vmem:[%s8524_s26 + $0x670] sm:$0xff] %vm5542_vm1, %v5294_v23  ;;  %v7411_v24 = vpop.f32.mrb[208].mxu1 }
 0x3c1   : > { %v5309_v25 = vadd.f32 %v9226_v6, %v7411_v24  ;;  %v5303_v26 = vpop.f32.mrb[209].mxu1 }
 0x3c2   : > { %v5304_v27 = vadd.f32 %v9226_v6, %v5303_v26 }
 0x3c3   : > { %5752 = vst.msk [vmem:[%s8524_s26 + $0x688] sm:$0xff] %vm5542_vm1, %v5309_v25 }
 0x3c4   : > { %5751 = vst.msk [vmem:[%s8524_s26 + $0x680] sm:$0xff] %vm5542_vm1, %v5304_v27  ;;  %v7414_v7 = vpop.f32.mrb[210].mxu1 }
 0x3c5   : > { %v5319_v28 = vadd.f32 %v9226_v6, %v7414_v7  ;;  %v5313_v29 = vpop.f32.mrb[211].mxu1 }
 0x3c6   : > { %v5314_v31 = vadd.f32 %v9226_v6, %v5313_v29 }
 0x3c7   : > { %5754 = vst.msk [vmem:[%s8524_s26 + $0x698] sm:$0xff] %vm5542_vm1, %v5319_v28 }
 0x3c8   : > { %5753 = vst.msk [vmem:[%s8524_s26 + $0x690] sm:$0xff] %vm5542_vm1, %v5314_v31  ;;  %v7417_v33 = vpop.f32.mrb[212].mxu1 }
 0x3c9   : > { %v5329_v5 = vadd.f32 %v9226_v6, %v7417_v33  ;;  %v5323_v35 = vpop.f32.mrb[213].mxu1 }
 0x3ca   : > { %v5324_v37 = vadd.f32 %v9637_v36, %v5323_v35 }
 0x3cb   : > { %5756 = vst.msk [vmem:[%s8524_s26 + $0x6a8] sm:$0xff] %vm5542_vm1, %v5329_v5 }
 0x3cc   : > { %5755 = vst.msk [vmem:[%s8524_s26 + $0x6a0] sm:$0xff] %vm5542_vm1, %v5324_v37  ;;  %v7420_v61 = vpop.f32.mrb[214].mxu1 }
 0x3cd   : > { %v5339_v38 = vadd.f32 %v9637_v36, %v7420_v61  ;;  %v5333_v39 = vpop.f32.mrb[215].mxu1 }
 0x3ce   : > { %v5334_v40 = vadd.f32 %v9637_v36, %v5333_v39 }
 0x3cf   : > { %5758 = vst.msk [vmem:[%s8524_s26 + $0x6b8] sm:$0xff] %vm5542_vm1, %v5339_v38 }
 0x3d0   : > { %5757 = vst.msk [vmem:[%s8524_s26 + $0x6b0] sm:$0xff] %vm5542_vm1, %v5334_v40  ;;  %v7423_v6 = vpop.f32.mrb[216].mxu1 }
 0x3d1   : > { %v5349_v41 = vadd.f32 %v9637_v36, %v7423_v6  ;;  %v5343_v42 = vpop.f32.mrb[217].mxu1 }
 0x3d2   : > { %v5344_v43 = vadd.f32 %v9637_v36, %v5343_v42 }
 0x3d3   : > { %5760 = vst.msk [vmem:[%s8524_s26 + $0x6c8] sm:$0xff] %vm5542_vm1, %v5349_v41 }
 0x3d4   : > { %5759 = vst.msk [vmem:[%s8524_s26 + $0x6c0] sm:$0xff] %vm5542_vm1, %v5344_v43  ;;  %v7426_v44 = vpop.f32.mrb[218].mxu1 }
 0x3d5   : > { %v5359_v45 = vadd.f32 %v9637_v36, %v7426_v44  ;;  %v5353_v46 = vpop.f32.mrb[219].mxu1 }
 0x3d6   : > { %v5354_v47 = vadd.f32 %v9637_v36, %v5353_v46 }
 0x3d7   : > { %5762 = vst.msk [vmem:[%s8524_s26 + $0x6d8] sm:$0xff] %vm5542_vm1, %v5359_v45 }
 0x3d8   : > { %5761 = vst.msk [vmem:[%s8524_s26 + $0x6d0] sm:$0xff] %vm5542_vm1, %v5354_v47  ;;  %v7429_v48 = vpop.f32.mrb[220].mxu1 }
 0x3d9   : > { %v5369_v49 = vadd.f32 %v9637_v36, %v7429_v48  ;;  %v5363_v50 = vpop.f32.mrb[221].mxu1 }
 0x3da   : > { %v5364_v51 = vadd.f32 %v9637_v36, %v5363_v50 }
 0x3db   : > { %5764 = vst.msk [vmem:[%s8524_s26 + $0x6e8] sm:$0xff] %vm5542_vm1, %v5369_v49 }
 0x3dc   : > { %5763 = vst.msk [vmem:[%s8524_s26 + $0x6e0] sm:$0xff] %vm5542_vm1, %v5364_v51  ;;  %v7432_v52 = vpop.f32.mrb[222].mxu1 }
 0x3dd   : > { %v5379_v53 = vadd.f32 %v9637_v36, %v7432_v52  ;;  %v5373_v54 = vpop.f32.mrb[223].mxu1 }
 0x3de   : > { %v5374_v55 = vadd.f32 %v9637_v36, %v5373_v54 }
 0x3df   : > { %5766 = vst.msk [vmem:[%s8524_s26 + $0x6f8] sm:$0xff] %vm5542_vm1, %v5379_v53 }
 0x3e0   : > { %5765 = vst.msk [vmem:[%s8524_s26 + $0x6f0] sm:$0xff] %vm5542_vm1, %v5374_v55  ;;  %v7435_v30 = vpop.f32.mrb[224].mxu1 }
 0x3e1   : > { %v5389_v56 = vadd.f32 %v9637_v36, %v7435_v30  ;;  %v5383_v57 = vpop.f32.mrb[225].mxu1 }
 0x3e2   : > { %v5384_v58 = vadd.f32 %v9637_v36, %v5383_v57 }
 0x3e3   : > { %5768 = vst.msk [vmem:[%s8524_s26 + $0x708] sm:$0xff] %vm5542_vm1, %v5389_v56 }
 0x3e4   : > { %5767 = vst.msk [vmem:[%s8524_s26 + $0x700] sm:$0xff] %vm5542_vm1, %v5384_v58  ;;  %v7438_v59 = vpop.f32.mrb[226].mxu1 }
 0x3e5   : > { %v5399_v60 = vadd.f32 %v9637_v36, %v7438_v59  ;;  %v5393_v62 = vpop.f32.mrb[227].mxu1 }
 0x3e6   : > { %v5394_v63 = vadd.f32 %v9637_v36, %v5393_v62 }
 0x3e7   : > { %5770 = vst.msk [vmem:[%s8524_s26 + $0x718] sm:$0xff] %vm5542_vm1, %v5399_v60 }
 0x3e8   : > { %5769 = vst.msk [vmem:[%s8524_s26 + $0x710] sm:$0xff] %vm5542_vm1, %v5394_v63  ;;  %v7441_v0 = vpop.f32.mrb[228].mxu1 }
 0x3e9   : > { %v5409_v1 = vadd.f32 %v9637_v36, %v7441_v0  ;;  %v5403_v2 = vpop.f32.mrb[229].mxu1 }
 0x3ea   : > { %v5404_v3 = vadd.f32 %v9637_v36, %v5403_v2 }
 0x3eb   : > { %5772 = vst.msk [vmem:[%s8524_s26 + $0x728] sm:$0xff] %vm5542_vm1, %v5409_v1 }
 0x3ec   : > { %5771 = vst.msk [vmem:[%s8524_s26 + $0x720] sm:$0xff] %vm5542_vm1, %v5404_v3  ;;  %v7444_v4 = vpop.f32.mrb[230].mxu1 }
 0x3ed   : > { %v5419_v34 = vadd.f32 %v9637_v36, %v7444_v4  ;;  %v5413_v8 = vpop.f32.mrb[231].mxu1 }
 0x3ee   : > { %v5414_v9 = vadd.f32 %v9637_v36, %v5413_v8 }
 0x3ef   : > { %5774 = vst.msk [vmem:[%s8524_s26 + $0x738] sm:$0xff] %vm5542_vm1, %v5419_v34 }
 0x3f0   : > { %5773 = vst.msk [vmem:[%s8524_s26 + $0x730] sm:$0xff] %vm5542_vm1, %v5414_v9  ;;  %v7447_v10 = vpop.f32.mrb[232].mxu1 }
 0x3f1   : > { %v5429_v32 = vadd.f32 %v9637_v36, %v7447_v10  ;;  %v5423_v11 = vpop.f32.mrb[233].mxu1 }
 0x3f2   : > { %v5424_v12 = vadd.f32 %v9637_v36, %v5423_v11 }
 0x3f3   : > { %5776 = vst.msk [vmem:[%s8524_s26 + $0x748] sm:$0xff] %vm5542_vm1, %v5429_v32 }
 0x3f4   : > { %5775 = vst.msk [vmem:[%s8524_s26 + $0x740] sm:$0xff] %vm5542_vm1, %v5424_v12  ;;  %v7450_v13 = vpop.f32.mrb[234].mxu1 }
 0x3f5   : > { %v5439_v14 = vadd.f32 %v9637_v36, %v7450_v13  ;;  %v5433_v15 = vpop.f32.mrb[235].mxu1 }
 0x3f6   : > { %v5434_v16 = vadd.f32 %v9637_v36, %v5433_v15 }
 0x3f7   : > { %5778 = vst.msk [vmem:[%s8524_s26 + $0x758] sm:$0xff] %vm5542_vm1, %v5439_v14 }
 0x3f8   : > { %5777 = vst.msk [vmem:[%s8524_s26 + $0x750] sm:$0xff] %vm5542_vm1, %v5434_v16  ;;  %v7453_v17 = vpop.f32.mrb[236].mxu1 }
 0x3f9   : > { %v5449_v18 = vadd.f32 %v9637_v36, %v7453_v17  ;;  %v5443_v19 = vpop.f32.mrb[237].mxu1 }
 0x3fa   : > { %v5444_v20 = vadd.f32 %v9637_v36, %v5443_v19 }
 0x3fb   : > { %5780 = vst.msk [vmem:[%s8524_s26 + $0x768] sm:$0xff] %vm5542_vm1, %v5449_v18 }
 0x3fc   : > { %5779 = vst.msk [vmem:[%s8524_s26 + $0x760] sm:$0xff] %vm5542_vm1, %v5444_v20  ;;  %v7456_v21 = vpop.f32.mrb[238].mxu1 }
 0x3fd   : > { %v5459_v22 = vadd.f32 %v9637_v36, %v7456_v21  ;;  %v5453_v23 = vpop.f32.mrb[239].mxu1 }
 0x3fe   : > { %v5454_v24 = vadd.f32 %v9637_v36, %v5453_v23 }
 0x3ff   : > { %5782 = vst.msk [vmem:[%s8524_s26 + $0x778] sm:$0xff] %vm5542_vm1, %v5459_v22 }
 0x400   : > { %5781 = vst.msk [vmem:[%s8524_s26 + $0x770] sm:$0xff] %vm5542_vm1, %v5454_v24  ;;  %v7459_v25 = vpop.f32.mrb[240].mxu1 }
 0x401   : > { %v5469_v26 = vadd.f32 %v9637_v36, %v7459_v25  ;;  %v5463_v27 = vpop.f32.mrb[241].mxu1 }
 0x402   : > { %v5464_v7 = vadd.f32 %v9637_v36, %v5463_v27 }
 0x403   : > { %5784 = vst.msk [vmem:[%s8524_s26 + $0x788] sm:$0xff] %vm5542_vm1, %v5469_v26 }
 0x404   : > { %5783 = vst.msk [vmem:[%s8524_s26 + $0x780] sm:$0xff] %vm5542_vm1, %v5464_v7  ;;  %v7462_v28 = vpop.f32.mrb[242].mxu1 }
 0x405   : > { %v5479_v29 = vadd.f32 %v9637_v36, %v7462_v28  ;;  %v5473_v31 = vpop.f32.mrb[243].mxu1 }
 0x406   : > { %v5474_v33 = vadd.f32 %v9637_v36, %v5473_v31 }
 0x407   : > { %5786 = vst.msk [vmem:[%s8524_s26 + $0x798] sm:$0xff] %vm5542_vm1, %v5479_v29 }
 0x408   : > { %5785 = vst.msk [vmem:[%s8524_s26 + $0x790] sm:$0xff] %vm5542_vm1, %v5474_v33  ;;  %v7465_v5 = vpop.f32.mrb[244].mxu1 }
 0x409   : > { %v5489_v35 = vadd.f32 %v9637_v36, %v7465_v5  ;;  %v5483_v37 = vpop.f32.mrb[245].mxu1 }
 0x40a   : > { %v5484_v61 = vadd.f32 %v9637_v36, %v5483_v37 }
 0x40b   : > { %5788 = vst.msk [vmem:[%s8524_s26 + $0x7a8] sm:$0xff] %vm5542_vm1, %v5489_v35 }
 0x40c   : > { %5787 = vst.msk [vmem:[%s8524_s26 + $0x7a0] sm:$0xff] %vm5542_vm1, %v5484_v61  ;;  %v7468_v38 = vpop.f32.mrb[246].mxu1 }
 0x40d   : > { %v5499_v39 = vadd.f32 %v9637_v36, %v7468_v38  ;;  %v5493_v40 = vpop.f32.mrb[247].mxu1 }
 0x40e   : > { %v5494_v6 = vadd.f32 %v9637_v36, %v5493_v40 }
 0x40f   : > { %5790 = vst.msk [vmem:[%s8524_s26 + $0x7b8] sm:$0xff] %vm5542_vm1, %v5499_v39 }
 0x410   : > { %5789 = vst.msk [vmem:[%s8524_s26 + $0x7b0] sm:$0xff] %vm5542_vm1, %v5494_v6  ;;  %v7471_v41 = vpop.f32.mrb[248].mxu1 }
 0x411   : > { %v5509_v42 = vadd.f32 %v9637_v36, %v7471_v41  ;;  %v5503_v43 = vpop.f32.mrb[249].mxu1 }
 0x412   : > { %v5504_v44 = vadd.f32 %v9637_v36, %v5503_v43 }
 0x413   : > { %5792 = vst.msk [vmem:[%s8524_s26 + $0x7c8] sm:$0xff] %vm5542_vm1, %v5509_v42 }
 0x414   : > { %5791 = vst.msk [vmem:[%s8524_s26 + $0x7c0] sm:$0xff] %vm5542_vm1, %v5504_v44  ;;  %v7474_v45 = vpop.f32.mrb[250].mxu1 }
 0x415   : > { %v5519_v46 = vadd.f32 %v9637_v36, %v7474_v45  ;;  %v5513_v47 = vpop.f32.mrb[251].mxu1 }
 0x416   : > { %v5514_v48 = vadd.f32 %v9637_v36, %v5513_v47 }
 0x417   : > { %5794 = vst.msk [vmem:[%s8524_s26 + $0x7d8] sm:$0xff] %vm5542_vm1, %v5519_v46 }
 0x418   : > { %5793 = vst.msk [vmem:[%s8524_s26 + $0x7d0] sm:$0xff] %vm5542_vm1, %v5514_v48  ;;  %v7477_v49 = vpop.f32.mrb[252].mxu1 }
 0x419   : > { %v5529_v50 = vadd.f32 %v9637_v36, %v7477_v49  ;;  %v5523_v51 = vpop.f32.mrb[253].mxu1 }
 0x41a   : > { %v5524_v52 = vadd.f32 %v9637_v36, %v5523_v51 }
 0x41b   : > { %5796 = vst.msk [vmem:[%s8524_s26 + $0x7e8] sm:$0xff] %vm5542_vm1, %v5529_v50 }
 0x41c   : > { %5795 = vst.msk [vmem:[%s8524_s26 + $0x7e0] sm:$0xff] %vm5542_vm1, %v5524_v52  ;;  %v7480_v53 = vpop.f32.mrb[254].mxu1 }
 0x41d   : > { %v5539_v54 = vadd.f32 %v9637_v36, %v7480_v53  ;;  %v5533_v55 = vpop.f32.mrb[255].mxu1 }
 0x41e   : > { %v5534_v30 = vadd.f32 %v9637_v36, %v5533_v55 }
 0x41f   : > { %5798 = vst.msk [vmem:[%s8524_s26 + $0x7f8] sm:$0xff] %vm5542_vm1, %v5539_v54 }
 0x420   : > { %5797 = vst.msk [vmem:[%s8524_s26 + $0x7f0] sm:$0xff] %vm5542_vm1, %v5534_v30 }
 0x421 PF: > { %s17_s18 = sadd.s32 1, %s7775_s18  }
 0x422   : > { %p14_p5 = scmp.ge.s32.totalorder %s17_s18, 4  }
 0x424   :  { %16 = sbr.rel (!%p14_p5) target bundleno = 2 (0x2), region = 83 }
 0x42b   :  { %5821 = vsyncpa [#allocation4], 1 }
 0x42c   :  { %5823 = vsyncpa [#allocation4 + $0x1], 1 }
 0x42d   :  { %5824 = vsyncpa [#allocation6], 1 }

</bundles_post_ra>
